<compile_context>
chip_gen: v7x
topology: tpu7x:2x2x1
jax: 0.10.0
libtpu: 0.0.40
codegen_flags: <defaults>
</compile_context>

<pallas_src>
import functools

import jax
import jax.numpy as jnp
from jax.experimental import pallas as pl
from jax.experimental.pallas import tpu as pltpu


_VMEM_LIMIT = 32 * 1024 * 1024  # safe on v5e/v6e (128 MiB) and v7x (64 MiB)

# Static (non-traced) per-layer configuration.  Kept OUT of the params pytree
# so jax.jit never turns these ints into tracers.
CONV_CFG = {
    "conv1": dict(out_c=32,  stride=2, pad=1),
    "conv2": dict(out_c=64,  stride=2, pad=1),
    "conv3": dict(out_c=128, stride=2, pad=1),
    "conv4": dict(out_c=256, stride=1, pad=0),
}


# ----------------------------------------------------------------------------
# helpers
# ----------------------------------------------------------------------------
def _round_up(n, m):
    return ((n + m - 1) // m) * m


def _largest_divisor(n, candidates):
    for c in candidates:
        if n % c == 0:
            return c
    raise ValueError(f"no tile candidate in {candidates} divides {n}")


def _choose_tiles(m_pad, k_pad, n_pad):
    """m_pad is a multiple of 16 (bf16 sublane pack), k_pad/n_pad of 128."""
    tm = _largest_divisor(m_pad, (512, 256, 128, 64, 32, 16))
    tk = _largest_divisor(k_pad, (512, 256, 128))
    tn = _largest_divisor(n_pad, (512, 256, 128))
    # Expose >=2 blocks on a "parallel" axis where shapes allow it so that
    # 2-TensorCore chips (v7x megacore) can split the work.
    if m_pad // tm == 1 and n_pad // tn == 1:
        if tm >= 256:
            tm //= 2
        elif tn >= 256:
            tn //= 2
    return tm, tk, tn


# ----------------------------------------------------------------------------
# Pallas kernel: out = act((X @ W) + bias), tiled over (M, N, K).
# X, W are bf16; accumulation happens in f32 directly in the (k-invariant)
# output block.  bias is f32, (1, tn) per block.
# ----------------------------------------------------------------------------
def _mm_bias_act_kernel(x_ref, w_ref, b_ref, o_ref, *, apply_swish):
    @pl.when(pl.program_id(2) == 0)
    def _():
        o_ref[...] = jnp.zeros_like(o_ref)

    o_ref[...] += jnp.dot(x_ref[...], w_ref[...],
                          preferred_element_type=jnp.float32)

    @pl.when(pl.program_id(2) == pl.num_programs(2) - 1)
    def _():
        y = o_ref[...] + b_ref[...]
        if apply_swish:
            y = y * jax.nn.sigmoid(y)          # Swish: x * sigmoid(x)
        o_ref[...] = y


def matmul_bias_act(x, w, bias, *, swish):
    """x: (M, K) float; w: (K_pad, N_pad) bf16 pre-padded; bias: (1, N_pad) f32.
    Returns (M_pad, N_pad) f32 (caller slices the valid region)."""
    M, K = x.shape
    K_pad, N_pad = w.shape
    assert K <= K_pad

    M_pad = _round_up(M, 16)                    # bf16 sublane packing = 16 rows
    tm, tk, tn = _choose_tiles(M_pad, K_pad, N_pad)

    xp = x.astype(jnp.bfloat16)
    if (M_pad, K_pad) != (M, K):
        xp = jnp.pad(xp, ((0, M_pad - M), (0, K_pad - K)))

    grid = (M_pad // tm, N_pad // tn, K_pad // tk)
    kernel = functools.partial(_mm_bias_act_kernel, apply_swish=swish)

    out = pl.pallas_call(
        kernel,
        out_shape=jax.ShapeDtypeStruct((M_pad, N_pad), jnp.float32),
        grid_spec=pltpu.PrefetchScalarGridSpec(
            num_scalar_prefetch=0,
            grid=grid,
            in_specs=[
                pl.BlockSpec((tm, tk), lambda i, j, k: (i, k)),
                pl.BlockSpec((tk, tn), lambda i, j, k: (k, j)),
                pl.BlockSpec((1, tn), lambda i, j, k: (0, j)),
            ],
            out_specs=pl.BlockSpec((tm, tn), lambda i, j, k: (i, j)),
        ),
        compiler_params=pltpu.CompilerParams(
            dimension_semantics=("parallel", "parallel", "arbitrary"),
            vmem_limit_bytes=_VMEM_LIMIT),
    )(xp, w, bias)
    return out


# ----------------------------------------------------------------------------
# Fused classifier kernel: Linear(6400->1024) -> Swish -> Dropout(eval) ->
# Linear(1024->2*n_latents), one pallas_call, reduction over K of fc1.
# ----------------------------------------------------------------------------
def _classifier_kernel(x_ref, w1_ref, b1_ref, w2_ref, b2_ref, o_ref, h_ref):
    k = pl.program_id(0)

    @pl.when(k == 0)
    def _():
        h_ref[...] = jnp.zeros_like(h_ref)

    h_ref[...] += jnp.dot(x_ref[...], w1_ref[...],
                          preferred_element_type=jnp.float32)

    @pl.when(k == pl.num_programs(0) - 1)
    def _():
        h = h_ref[...] + b1_ref[...]
        h = h * jax.nn.sigmoid(h)              # Swish
        # TODO(synk): Dropout(p=0.1) is the identity in eval mode.
        y = jnp.dot(h.astype(jnp.bfloat16), w2_ref[...],
                    preferred_element_type=jnp.float32) + b2_ref[...]
        o_ref[...] = y


def classifier_fused(x, w1, b1, w2, b2):
    """x: (B, 6400); w1: (6400, 1024) bf16; w2: (1024, N2_pad) bf16."""
    M, K1 = x.shape
    K1w, N1 = w1.shape
    assert K1 == K1w
    N2_pad = w2.shape[1]

    M_pad = _round_up(M, 16)
    tk = _largest_divisor(K1, (512, 256, 128))

    xp = x.astype(jnp.bfloat16)
    if M_pad != M:
        xp = jnp.pad(xp, ((0, M_pad - M), (0, 0)))

    out = pl.pallas_call(
        _classifier_kernel,
        out_shape=jax.ShapeDtypeStruct((M_pad, N2_pad), jnp.float32),
        grid_spec=pltpu.PrefetchScalarGridSpec(
            num_scalar_prefetch=0,
            grid=(K1 // tk,),
            in_specs=[
                pl.BlockSpec((M_pad, tk), lambda k: (0, k)),
                pl.BlockSpec((tk, N1), lambda k: (k, 0)),
                pl.BlockSpec((1, N1), lambda k: (0, 0)),
                pl.BlockSpec((N1, N2_pad), lambda k: (0, 0)),
                pl.BlockSpec((1, N2_pad), lambda k: (0, 0)),
            ],
            out_specs=pl.BlockSpec((M_pad, N2_pad), lambda k: (0, 0)),
            scratch_shapes=[pltpu.VMEM((M_pad, N1), jnp.float32)],
        ),
        compiler_params=pltpu.CompilerParams(
            dimension_semantics=("arbitrary",),
            vmem_limit_bytes=_VMEM_LIMIT),
    )(xp, w1, b1, w2, b2)
    return out


# ----------------------------------------------------------------------------
# Conv2d via NHWC patch extraction (glue) + fused Pallas matmul
# ----------------------------------------------------------------------------
def _extract_patches_nhwc(x_nhwc, kh, kw, stride, pad):
    """x: (B, H, W, C) bf16.  Returns (B*oh*ow, kh*kw*C) with (i, j, c)
    ordering in the contraction dim (weights are permuted to match)."""
    if pad > 0:                                          # static Python int
        x_nhwc = jnp.pad(x_nhwc, ((0, 0), (pad, pad), (pad, pad), (0, 0)))
    B, H, W, C = x_nhwc.shape
    oh = (H - kh) // stride + 1
    ow = (W - kw) // stride + 1
    slices = [x_nhwc[:, i:i + stride * oh:stride, j:j + stride * ow:stride, :]
              for i in range(kh) for j in range(kw)]
    cols = jnp.concatenate(slices, axis=-1)          # (B, oh, ow, kh*kw*C)
    return cols.reshape(B * oh * ow, kh * kw * C), (B, oh, ow)


def conv_bn_swish(x_nhwc, w, b, *, out_c, stride, pad, kh=4, kw=4):
    """w: pre-folded/padded bf16 weight (K_pad, N_pad); b: f32 bias (1, N_pad).
    out_c / stride / pad are STATIC Python ints.  Input/output NHWC, f32 out."""
    cols, (B, oh, ow) = _extract_patches_nhwc(
        x_nhwc.astype(jnp.bfloat16), kh, kw, stride, pad)
    y = matmul_bias_act(cols, w, b, swish=True)
    y = y[:B * oh * ow, :out_c].reshape(B, oh, ow, out_c)
    return y


# ----------------------------------------------------------------------------
# Parameters: raw (PyTorch-layout) init + one-time device-side preparation
# ----------------------------------------------------------------------------
def init_params(key, n_latents):
    """Raw parameters with PyTorch layouts (conv OCHW, Linear (out, in))."""
    ks = jax.random.split(key, 6)
    p = {}
    p["conv1_w"] = 0.02 * jax.random.normal(ks[0], (32, 3, 4, 4), jnp.float32)
    p["conv2_w"] = 0.02 * jax.random.normal(ks[1], (64, 32, 4, 4), jnp.float32)
    p["conv3_w"] = 0.02 * jax.random.normal(ks[2], (128, 64, 4, 4), jnp.float32)
    p["conv4_w"] = 0.02 * jax.random.normal(ks[3], (256, 128, 4, 4), jnp.float32)
    # BatchNorm params (PyTorch defaults: gamma=1, beta=0, mean=0, var=1)
    for name, c in (("bn2", 64), ("bn3", 128), ("bn4", 256)):
        p[name + "_gamma"] = jnp.ones((c,), jnp.float32)
        p[name + "_beta"] = jnp.zeros((c,), jnp.float32)
        p[name + "_mean"] = jnp.zeros((c,), jnp.float32)
        p[name + "_var"] = jnp.ones((c,), jnp.float32)
    p["fc1_w"] = 0.02 * jax.random.normal(ks[4], (1024, 256 * 5 * 5), jnp.float32)
    p["fc1_b"] = jnp.zeros((1024,), jnp.float32)
    p["fc2_w"] = 0.02 * jax.random.normal(ks[5], (2 * n_latents, 1024), jnp.float32)
    p["fc2_b"] = jnp.zeros((2 * n_latents,), jnp.float32)
    return p


def prepare_params(raw, n_latents, eps=1e-5):
    """Fold BN, permute to (kh,kw,C,O) patch order, pad to MXU-friendly shapes,
    cast matmul operands to bf16.  Done ONCE, not per forward call.
    Returns a pytree containing ONLY arrays (no Python-int metadata)."""
    prepped = {}

    def fold_conv(name, w_ochw, gamma, beta, mean, var):
        O, C, kh, kw = w_ochw.shape
        scale = gamma / jnp.sqrt(var + eps)
        shift = beta - mean * scale
        w2d = jnp.transpose(w_ochw, (2, 3, 1, 0)).reshape(kh * kw * C, O)
        w2d = w2d * scale[None, :]                    # fold BN scale into weight
        K, N = w2d.shape
        K_pad, N_pad = _round_up(K, 128), _round_up(N, 128)
        w2d = jnp.pad(w2d, ((0, K_pad - K), (0, N_pad - N))).astype(jnp.bfloat16)
        bias = jnp.pad(shift, (0, N_pad - N)).reshape(1, N_pad).astype(jnp.float32)
        prepped[name + "_w"] = w2d
        prepped[name + "_b"] = bias

    ones = lambda c: jnp.ones((c,), jnp.float32)
    zeros = lambda c: jnp.zeros((c,), jnp.float32)

    # conv1 has no BatchNorm -> identity fold
    fold_conv("conv1", raw["conv1_w"], ones(32), zeros(32), zeros(32), ones(32))
    fold_conv("conv2", raw["conv2_w"], raw["bn2_gamma"], raw["bn2_beta"],
              raw["bn2_mean"], raw["bn2_var"])
    fold_conv("conv3", raw["conv3_w"], raw["bn3_gamma"], raw["bn3_beta"],
              raw["bn3_mean"], raw["bn3_var"])
    fold_conv("conv4", raw["conv4_w"], raw["bn4_gamma"], raw["bn4_beta"],
              raw["bn4_mean"], raw["bn4_var"])

    # fc1: PyTorch rows are indexed by flatten of NCHW (c, h, w); permute the
    # weight rows once to (h, w, c) so the NHWC conv output flattens directly.
    w1 = raw["fc1_w"].T                                   # (6400, 1024), rows (c,h,w)
    w1 = w1.reshape(256, 5, 5, 1024).transpose(1, 2, 0, 3).reshape(6400, 1024)
    prepped["fc1_w"] = w1.astype(jnp.bfloat16)
    prepped["fc1_b"] = raw["fc1_b"].reshape(1, 1024).astype(jnp.float32)

    N2 = 2 * n_latents
    N2_pad = _round_up(N2, 128)
    w2 = raw["fc2_w"].T                                   # (1024, N2)
    prepped["fc2_w"] = jnp.pad(w2, ((0, 0), (0, N2_pad - N2))).astype(jnp.bfloat16)
    prepped["fc2_b"] = jnp.pad(raw["fc2_b"], (0, N2_pad - N2)
                               ).reshape(1, N2_pad).astype(jnp.float32)
    return prepped


# ----------------------------------------------------------------------------
# Forward pass (mirrors ImageEncoder.forward, inference mode)
# ----------------------------------------------------------------------------
def image_encoder_forward(params, x_nchw, n_latents):
    x = jnp.transpose(x_nchw, (0, 2, 3, 1))               # NCHW -> NHWC, once

    h = x
    for name in ("conv1", "conv2", "conv3", "conv4"):
        cfg = CONV_CFG[name]                               # static Python ints
        h = conv_bn_swish(h, params[name + "_w"], params[name + "_b"],
                          out_c=cfg["out_c"], stride=cfg["stride"],
                          pad=cfg["pad"])
    # shapes: (B,32,32,32) -> (B,16,16,64) -> (B,8,8,128) -> (B,5,5,256)

    B = h.shape[0]
    flat = h.reshape(B, 5 * 5 * 256)                      # fc1 rows pre-permuted to match

    out = classifier_fused(flat, params["fc1_w"], params["fc1_b"],
                           params["fc2_w"], params["fc2_b"])
    out = out[:B, :2 * n_latents]
    return out[:, :n_latents], out[:, n_latents:]


if __name__ == "__main__":
    n_latents = 8
    key = jax.random.PRNGKey(0)
    k_param, k_input = jax.random.split(key)

    raw_params = init_params(k_param, n_latents)
    params = prepare_params(raw_params, n_latents)

    # Input must be (B, 3, 64, 64) for the conv stack to yield the 5x5 map.
    x = jax.random.normal(k_input, (2, 3, 64, 64), jnp.float32)

    fwd = jax.jit(functools.partial(image_encoder_forward, n_latents=n_latents))
    mu, logvar = fwd(params, x)
    jax.block_until_ready((mu, logvar))

    assert mu.shape == (2, n_latents) and logvar.shape == (2, n_latents)
    print("KERNEL_OK")
</pallas_src>

<mosaic_0001>
module attributes {stable_mosaic.version = 11 : i64} {
  func.func @_mm_bias_act_kernel(%arg0: i32, %arg1: i32, %arg2: i32, %arg3: memref<512x128xbf16, #tpu.memory_space<vmem>>, %arg4: memref<128x128xbf16, #tpu.memory_space<vmem>>, %arg5: memref<1x128xf32, #tpu.memory_space<vmem>>, %arg6: memref<512x128xf32, #tpu.memory_space<vmem>>) attributes {dimension_semantics = [#tpu.dimension_semantics<parallel>, #tpu.dimension_semantics<parallel>, #tpu.dimension_semantics<arbitrary>], iteration_bounds = array<i64: 4, 1, 1>, scalar_prefetch = 0 : i64, scratch_operands = 0 : i64, tpu.core_type = #tpu.core_type<tc>, window_params = [{transform_indices = @transform_0, window_bounds = array<i64: 512, 128>}, {transform_indices = @transform_1, window_bounds = array<i64: 128, 128>}, {transform_indices = @transform_2, window_bounds = array<i64: 1, 128>}, {transform_indices = @transform_3, window_bounds = array<i64: 512, 128>}]} {
    %c0_i32 = arith.constant 0 : i32
    %0 = arith.cmpi eq, %arg2, %c0_i32 : i32
    %1 = arith.extui %0 : i1 to i32
    %c0_i32_0 = arith.constant 0 : i32
    %2 = arith.cmpi ne, %1, %c0_i32_0 : i32
    scf.if %2 {
      %cst_10 = arith.constant 0.000000e+00 : f32
      %12 = vector.broadcast %cst_10 : f32 to vector<512x128xf32>
      %c0_11 = arith.constant 0 : index
      %c0_12 = arith.constant 0 : index
      %13 = vector.load %arg6[%c0_11, %c0_12] : memref<512x128xf32, #tpu.memory_space<vmem>>, vector<512x128xf32>
      tpu.vector_store %arg6[%c0_11, %c0_12], %12 {strides = array<i32>} : memref<512x128xf32, #tpu.memory_space<vmem>>, vector<512x128xf32>,
    } else {
    }
    %c0 = arith.constant 0 : index
    %c0_1 = arith.constant 0 : index
    %3 = vector.load %arg6[%c0, %c0_1] : memref<512x128xf32, #tpu.memory_space<vmem>>, vector<512x128xf32>
    %c0_2 = arith.constant 0 : index
    %c0_3 = arith.constant 0 : index
    %4 = vector.load %arg3[%c0_2, %c0_3] : memref<512x128xbf16, #tpu.memory_space<vmem>>, vector<512x128xbf16>
    %c0_4 = arith.constant 0 : index
    %c0_5 = arith.constant 0 : index
    %5 = vector.load %arg4[%c0_4, %c0_5] : memref<128x128xbf16, #tpu.memory_space<vmem>>, vector<128x128xbf16>
    %cst = arith.constant dense<0.000000e+00> : vector<512x128xf32>
    %6 = tpu.matmul %4, %5, %cst {dimension_numbers = #tpu.dot_dimension_numbers<[1], [0], [0], [1], [0, 0, 1, 1], [], []>} : vector<512x128xbf16>, vector<128x128xbf16>, vector<512x128xf32> -> vector<512x128xf32>
    %7 = arith.addf %3, %6 : vector<512x128xf32>
    %c0_6 = arith.constant 0 : index
    %c0_7 = arith.constant 0 : index
    %8 = vector.load %arg6[%c0_6, %c0_7] : memref<512x128xf32, #tpu.memory_space<vmem>>, vector<512x128xf32>
    tpu.vector_store %arg6[%c0_6, %c0_7], %7 {strides = array<i32>} : memref<512x128xf32, #tpu.memory_space<vmem>>, vector<512x128xf32>,
    %c0_i32_8 = arith.constant 0 : i32
    %9 = arith.cmpi eq, %arg2, %c0_i32_8 : i32
    %10 = arith.extui %9 : i1 to i32
    %c0_i32_9 = arith.constant 0 : i32
    %11 = arith.cmpi ne, %10, %c0_i32_9 : i32
    scf.if %11 {
      %c0_10 = arith.constant 0 : index
      %c0_11 = arith.constant 0 : index
      %12 = vector.load %arg6[%c0_10, %c0_11] : memref<512x128xf32, #tpu.memory_space<vmem>>, vector<512x128xf32>
      %c0_12 = arith.constant 0 : index
      %c0_13 = arith.constant 0 : index
      %13 = vector.load %arg5[%c0_12, %c0_13] : memref<1x128xf32, #tpu.memory_space<vmem>>, vector<1x128xf32>
      %14 = vector.broadcast %13 : vector<1x128xf32> to vector<512x128xf32>
      %15 = arith.addf %12, %14 : vector<512x128xf32>
      %16 = arith.negf %15 : vector<512x128xf32>
      %17 = math.exp %16 : vector<512x128xf32>
      %cst_14 = arith.constant 1.000000e+00 : f32
      %18 = vector.broadcast %cst_14 : f32 to vector<512x128xf32>
      %19 = arith.addf %18, %17 : vector<512x128xf32>
      %20 = arith.divf %18, %19 : vector<512x128xf32>
      %21 = arith.mulf %15, %20 : vector<512x128xf32>
      %c0_15 = arith.constant 0 : index
      %c0_16 = arith.constant 0 : index
      %22 = vector.load %arg6[%c0_15, %c0_16] : memref<512x128xf32, #tpu.memory_space<vmem>>, vector<512x128xf32>
      tpu.vector_store %arg6[%c0_15, %c0_16], %21 {strides = array<i32>} : memref<512x128xf32, #tpu.memory_space<vmem>>, vector<512x128xf32>,
    } else {
    }
    return
  }
  func.func @transform_0(%arg0: i32, %arg1: i32, %arg2: i32) -> (i32, i32) {
    %c0_i32 = arith.constant 0 : i32
    return %arg0, %arg2 : i32, i32
  }
  func.func @transform_1(%arg0: i32, %arg1: i32, %arg2: i32) -> (i32, i32) {
    %c0_i32 = arith.constant 0 : i32
    return %arg2, %arg1 : i32, i32
  }
  func.func @transform_2(%arg0: i32, %arg1: i32, %arg2: i32) -> (i32, i32) {
    %c0_i32 = arith.constant 0 : i32
    %c0_i32_0 = arith.constant 0 : i32
    return %c0_i32, %arg1 : i32, i32
  }
  func.func @transform_3(%arg0: i32, %arg1: i32, %arg2: i32) -> (i32, i32) {
    %c0_i32 = arith.constant 0 : i32
    return %arg0, %arg1 : i32, i32
  }
}

module attributes {stable_mosaic.version = 11 : i64} {
  func.func @_mm_bias_act_kernel(%arg0: i32, %arg1: i32, %arg2: i32, %arg3: memref<256x512xbf16, #tpu.memory_space<vmem>>, %arg4: memref<512x128xbf16, #tpu.memory_space<vmem>>, %arg5: memref<1x128xf32, #tpu.memory_space<vmem>>, %arg6: memref<256x128xf32, #tpu.memory_space<vmem>>) attributes {dimension_semantics = [#tpu.dimension_semantics<parallel>, #tpu.dimension_semantics<parallel>, #tpu.dimension_semantics<arbitrary>], iteration_bounds = array<i64: 2, 1, 1>, scalar_prefetch = 0 : i64, scratch_operands = 0 : i64, tpu.core_type = #tpu.core_type<tc>, window_params = [{transform_indices = @transform_0, window_bounds = array<i64: 256, 512>}, {transform_indices = @transform_1, window_bounds = array<i64: 512, 128>}, {transform_indices = @transform_2, window_bounds = array<i64: 1, 128>}, {transform_indices = @transform_3, window_bounds = array<i64: 256, 128>}]} {
    %c0_i32 = arith.constant 0 : i32
    %0 = arith.cmpi eq, %arg2, %c0_i32 : i32
    %1 = arith.extui %0 : i1 to i32
    %c0_i32_0 = arith.constant 0 : i32
    %2 = arith.cmpi ne, %1, %c0_i32_0 : i32
    scf.if %2 {
      %cst_10 = arith.constant 0.000000e+00 : f32
      %12 = vector.broadcast %cst_10 : f32 to vector<256x128xf32>
      %c0_11 = arith.constant 0 : index
      %c0_12 = arith.constant 0 : index
      %13 = vector.load %arg6[%c0_11, %c0_12] : memref<256x128xf32, #tpu.memory_space<vmem>>, vector<256x128xf32>
      tpu.vector_store %arg6[%c0_11, %c0_12], %12 {strides = array<i32>} : memref<256x128xf32, #tpu.memory_space<vmem>>, vector<256x128xf32>,
    } else {
    }
    %c0 = arith.constant 0 : index
    %c0_1 = arith.constant 0 : index
    %3 = vector.load %arg6[%c0, %c0_1] : memref<256x128xf32, #tpu.memory_space<vmem>>, vector<256x128xf32>
    %c0_2 = arith.constant 0 : index
    %c0_3 = arith.constant 0 : index
    %4 = vector.load %arg3[%c0_2, %c0_3] : memref<256x512xbf16, #tpu.memory_space<vmem>>, vector<256x512xbf16>
    %c0_4 = arith.constant 0 : index
    %c0_5 = arith.constant 0 : index
    %5 = vector.load %arg4[%c0_4, %c0_5] : memref<512x128xbf16, #tpu.memory_space<vmem>>, vector<512x128xbf16>
    %cst = arith.constant dense<0.000000e+00> : vector<256x128xf32>
    %6 = tpu.matmul %4, %5, %cst {dimension_numbers = #tpu.dot_dimension_numbers<[1], [0], [0], [1], [0, 0, 1, 1], [], []>} : vector<256x512xbf16>, vector<512x128xbf16>, vector<256x128xf32> -> vector<256x128xf32>
    %7 = arith.addf %3, %6 : vector<256x128xf32>
    %c0_6 = arith.constant 0 : index
    %c0_7 = arith.constant 0 : index
    %8 = vector.load %arg6[%c0_6, %c0_7] : memref<256x128xf32, #tpu.memory_space<vmem>>, vector<256x128xf32>
    tpu.vector_store %arg6[%c0_6, %c0_7], %7 {strides = array<i32>} : memref<256x128xf32, #tpu.memory_space<vmem>>, vector<256x128xf32>,
    %c0_i32_8 = arith.constant 0 : i32
    %9 = arith.cmpi eq, %arg2, %c0_i32_8 : i32
    %10 = arith.extui %9 : i1 to i32
    %c0_i32_9 = arith.constant 0 : i32
    %11 = arith.cmpi ne, %10, %c0_i32_9 : i32
    scf.if %11 {
      %c0_10 = arith.constant 0 : index
      %c0_11 = arith.constant 0 : index
      %12 = vector.load %arg6[%c0_10, %c0_11] : memref<256x128xf32, #tpu.memory_space<vmem>>, vector<256x128xf32>
      %c0_12 = arith.constant 0 : index
      %c0_13 = arith.constant 0 : index
      %13 = vector.load %arg5[%c0_12, %c0_13] : memref<1x128xf32, #tpu.memory_space<vmem>>, vector<1x128xf32>
      %14 = vector.broadcast %13 : vector<1x128xf32> to vector<256x128xf32>
      %15 = arith.addf %12, %14 : vector<256x128xf32>
      %16 = arith.negf %15 : vector<256x128xf32>
      %17 = math.exp %16 : vector<256x128xf32>
      %cst_14 = arith.constant 1.000000e+00 : f32
      %18 = vector.broadcast %cst_14 : f32 to vector<256x128xf32>
      %19 = arith.addf %18, %17 : vector<256x128xf32>
      %20 = arith.divf %18, %19 : vector<256x128xf32>
      %21 = arith.mulf %15, %20 : vector<256x128xf32>
      %c0_15 = arith.constant 0 : index
      %c0_16 = arith.constant 0 : index
      %22 = vector.load %arg6[%c0_15, %c0_16] : memref<256x128xf32, #tpu.memory_space<vmem>>, vector<256x128xf32>
      tpu.vector_store %arg6[%c0_15, %c0_16], %21 {strides = array<i32>} : memref<256x128xf32, #tpu.memory_space<vmem>>, vector<256x128xf32>,
    } else {
    }
    return
  }
  func.func @transform_0(%arg0: i32, %arg1: i32, %arg2: i32) -> (i32, i32) {
    %c0_i32 = arith.constant 0 : i32
    return %arg0, %arg2 : i32, i32
  }
  func.func @transform_1(%arg0: i32, %arg1: i32, %arg2: i32) -> (i32, i32) {
    %c0_i32 = arith.constant 0 : i32
    return %arg2, %arg1 : i32, i32
  }
  func.func @transform_2(%arg0: i32, %arg1: i32, %arg2: i32) -> (i32, i32) {
    %c0_i32 = arith.constant 0 : i32
    %c0_i32_0 = arith.constant 0 : i32
    return %c0_i32, %arg1 : i32, i32
  }
  func.func @transform_3(%arg0: i32, %arg1: i32, %arg2: i32) -> (i32, i32) {
    %c0_i32 = arith.constant 0 : i32
    return %arg0, %arg1 : i32, i32
  }
}

module attributes {stable_mosaic.version = 11 : i64} {
  func.func @_mm_bias_act_kernel(%arg0: i32, %arg1: i32, %arg2: i32, %arg3: memref<128x512xbf16, #tpu.memory_space<vmem>>, %arg4: memref<512x128xbf16, #tpu.memory_space<vmem>>, %arg5: memref<1x128xf32, #tpu.memory_space<vmem>>, %arg6: memref<128x128xf32, #tpu.memory_space<vmem>>) attributes {dimension_semantics = [#tpu.dimension_semantics<parallel>, #tpu.dimension_semantics<parallel>, #tpu.dimension_semantics<arbitrary>], iteration_bounds = array<i64: 1, 1, 2>, scalar_prefetch = 0 : i64, scratch_operands = 0 : i64, tpu.core_type = #tpu.core_type<tc>, window_params = [{transform_indices = @transform_0, window_bounds = array<i64: 128, 512>}, {transform_indices = @transform_1, window_bounds = array<i64: 512, 128>}, {transform_indices = @transform_2, window_bounds = array<i64: 1, 128>}, {transform_indices = @transform_3, window_bounds = array<i64: 128, 128>}]} {
    %c0_i32 = arith.constant 0 : i32
    %0 = arith.cmpi eq, %arg2, %c0_i32 : i32
    %1 = arith.extui %0 : i1 to i32
    %c0_i32_0 = arith.constant 0 : i32
    %2 = arith.cmpi ne, %1, %c0_i32_0 : i32
    scf.if %2 {
      %cst_9 = arith.constant 0.000000e+00 : f32
      %12 = vector.broadcast %cst_9 : f32 to vector<128x128xf32>
      %c0_10 = arith.constant 0 : index
      %c0_11 = arith.constant 0 : index
      %13 = vector.load %arg6[%c0_10, %c0_11] : memref<128x128xf32, #tpu.memory_space<vmem>>, vector<128x128xf32>
      tpu.vector_store %arg6[%c0_10, %c0_11], %12 {strides = array<i32>} : memref<128x128xf32, #tpu.memory_space<vmem>>, vector<128x128xf32>,
    } else {
    }
    %c0 = arith.constant 0 : index
    %c0_1 = arith.constant 0 : index
    %3 = vector.load %arg6[%c0, %c0_1] : memref<128x128xf32, #tpu.memory_space<vmem>>, vector<128x128xf32>
    %c0_2 = arith.constant 0 : index
    %c0_3 = arith.constant 0 : index
    %4 = vector.load %arg3[%c0_2, %c0_3] : memref<128x512xbf16, #tpu.memory_space<vmem>>, vector<128x512xbf16>
    %c0_4 = arith.constant 0 : index
    %c0_5 = arith.constant 0 : index
    %5 = vector.load %arg4[%c0_4, %c0_5] : memref<512x128xbf16, #tpu.memory_space<vmem>>, vector<512x128xbf16>
    %cst = arith.constant dense<0.000000e+00> : vector<128x128xf32>
    %6 = tpu.matmul %4, %5, %cst {dimension_numbers = #tpu.dot_dimension_numbers<[1], [0], [0], [1], [0, 0, 1, 1], [], []>} : vector<128x512xbf16>, vector<512x128xbf16>, vector<128x128xf32> -> vector<128x128xf32>
    %7 = arith.addf %3, %6 : vector<128x128xf32>
    %c0_6 = arith.constant 0 : index
    %c0_7 = arith.constant 0 : index
    %8 = vector.load %arg6[%c0_6, %c0_7] : memref<128x128xf32, #tpu.memory_space<vmem>>, vector<128x128xf32>
    tpu.vector_store %arg6[%c0_6, %c0_7], %7 {strides = array<i32>} : memref<128x128xf32, #tpu.memory_space<vmem>>, vector<128x128xf32>,
    %c1_i32 = arith.constant 1 : i32
    %9 = arith.cmpi eq, %arg2, %c1_i32 : i32
    %10 = arith.extui %9 : i1 to i32
    %c0_i32_8 = arith.constant 0 : i32
    %11 = arith.cmpi ne, %10, %c0_i32_8 : i32
    scf.if %11 {
      %c0_9 = arith.constant 0 : index
      %c0_10 = arith.constant 0 : index
      %12 = vector.load %arg6[%c0_9, %c0_10] : memref<128x128xf32, #tpu.memory_space<vmem>>, vector<128x128xf32>
      %c0_11 = arith.constant 0 : index
      %c0_12 = arith.constant 0 : index
      %13 = vector.load %arg5[%c0_11, %c0_12] : memref<1x128xf32, #tpu.memory_space<vmem>>, vector<1x128xf32>
      %14 = vector.broadcast %13 : vector<1x128xf32> to vector<128x128xf32>
      %15 = arith.addf %12, %14 : vector<128x128xf32>
      %16 = arith.negf %15 : vector<128x128xf32>
      %17 = math.exp %16 : vector<128x128xf32>
      %cst_13 = arith.constant 1.000000e+00 : f32
      %18 = vector.broadcast %cst_13 : f32 to vector<128x128xf32>
      %19 = arith.addf %18, %17 : vector<128x128xf32>
      %20 = arith.divf %18, %19 : vector<128x128xf32>
      %21 = arith.mulf %15, %20 : vector<128x128xf32>
      %c0_14 = arith.constant 0 : index
      %c0_15 = arith.constant 0 : index
      %22 = vector.load %arg6[%c0_14, %c0_15] : memref<128x128xf32, #tpu.memory_space<vmem>>, vector<128x128xf32>
      tpu.vector_store %arg6[%c0_14, %c0_15], %21 {strides = array<i32>} : memref<128x128xf32, #tpu.memory_space<vmem>>, vector<128x128xf32>,
    } else {
    }
    return
  }
  func.func @transform_0(%arg0: i32, %arg1: i32, %arg2: i32) -> (i32, i32) {
    %c0_i32 = arith.constant 0 : i32
    return %arg0, %arg2 : i32, i32
  }
  func.func @transform_1(%arg0: i32, %arg1: i32, %arg2: i32) -> (i32, i32) {
    %c0_i32 = arith.constant 0 : i32
    return %arg2, %arg1 : i32, i32
  }
  func.func @transform_2(%arg0: i32, %arg1: i32, %arg2: i32) -> (i32, i32) {
    %c0_i32 = arith.constant 0 : i32
    %c0_i32_0 = arith.constant 0 : i32
    return %c0_i32, %arg1 : i32, i32
  }
  func.func @transform_3(%arg0: i32, %arg1: i32, %arg2: i32) -> (i32, i32) {
    %c0_i32 = arith.constant 0 : i32
    return %arg0, %arg1 : i32, i32
  }
}

module attributes {stable_mosaic.version = 11 : i64} {
  func.func @_mm_bias_act_kernel(%arg0: i32, %arg1: i32, %arg2: i32, %arg3: memref<64x512xbf16, #tpu.memory_space<vmem>>, %arg4: memref<512x128xbf16, #tpu.memory_space<vmem>>, %arg5: memref<1x128xf32, #tpu.memory_space<vmem>>, %arg6: memref<64x128xf32, #tpu.memory_space<vmem>>) attributes {dimension_semantics = [#tpu.dimension_semantics<parallel>, #tpu.dimension_semantics<parallel>, #tpu.dimension_semantics<arbitrary>], iteration_bounds = array<i64: 1, 2, 4>, scalar_prefetch = 0 : i64, scratch_operands = 0 : i64, tpu.core_type = #tpu.core_type<tc>, window_params = [{transform_indices = @transform_0, window_bounds = array<i64: 64, 512>}, {transform_indices = @transform_1, window_bounds = array<i64: 512, 128>}, {transform_indices = @transform_2, window_bounds = array<i64: 1, 128>}, {transform_indices = @transform_3, window_bounds = array<i64: 64, 128>}]} {
    %c0_i32 = arith.constant 0 : i32
    %0 = arith.cmpi eq, %arg2, %c0_i32 : i32
    %1 = arith.extui %0 : i1 to i32
    %c0_i32_0 = arith.constant 0 : i32
    %2 = arith.cmpi ne, %1, %c0_i32_0 : i32
    scf.if %2 {
      %cst_9 = arith.constant 0.000000e+00 : f32
      %12 = vector.broadcast %cst_9 : f32 to vector<64x128xf32>
      %c0_10 = arith.constant 0 : index
      %c0_11 = arith.constant 0 : index
      %13 = vector.load %arg6[%c0_10, %c0_11] : memref<64x128xf32, #tpu.memory_space<vmem>>, vector<64x128xf32>
      tpu.vector_store %arg6[%c0_10, %c0_11], %12 {strides = array<i32>} : memref<64x128xf32, #tpu.memory_space<vmem>>, vector<64x128xf32>,
    } else {
    }
    %c0 = arith.constant 0 : index
    %c0_1 = arith.constant 0 : index
    %3 = vector.load %arg6[%c0, %c0_1] : memref<64x128xf32, #tpu.memory_space<vmem>>, vector<64x128xf32>
    %c0_2 = arith.constant 0 : index
    %c0_3 = arith.constant 0 : index
    %4 = vector.load %arg3[%c0_2, %c0_3] : memref<64x512xbf16, #tpu.memory_space<vmem>>, vector<64x512xbf16>
    %c0_4 = arith.constant 0 : index
    %c0_5 = arith.constant 0 : index
    %5 = vector.load %arg4[%c0_4, %c0_5] : memref<512x128xbf16, #tpu.memory_space<vmem>>, vector<512x128xbf16>
    %cst = arith.constant dense<0.000000e+00> : vector<64x128xf32>
    %6 = tpu.matmul %4, %5, %cst {dimension_numbers = #tpu.dot_dimension_numbers<[1], [0], [0], [1], [0, 0, 1, 1], [], []>} : vector<64x512xbf16>, vector<512x128xbf16>, vector<64x128xf32> -> vector<64x128xf32>
    %7 = arith.addf %3, %6 : vector<64x128xf32>
    %c0_6 = arith.constant 0 : index
    %c0_7 = arith.constant 0 : index
    %8 = vector.load %arg6[%c0_6, %c0_7] : memref<64x128xf32, #tpu.memory_space<vmem>>, vector<64x128xf32>
    tpu.vector_store %arg6[%c0_6, %c0_7], %7 {strides = array<i32>} : memref<64x128xf32, #tpu.memory_space<vmem>>, vector<64x128xf32>,
    %c3_i32 = arith.constant 3 : i32
    %9 = arith.cmpi eq, %arg2, %c3_i32 : i32
    %10 = arith.extui %9 : i1 to i32
    %c0_i32_8 = arith.constant 0 : i32
    %11 = arith.cmpi ne, %10, %c0_i32_8 : i32
    scf.if %11 {
      %c0_9 = arith.constant 0 : index
      %c0_10 = arith.constant 0 : index
      %12 = vector.load %arg6[%c0_9, %c0_10] : memref<64x128xf32, #tpu.memory_space<vmem>>, vector<64x128xf32>
      %c0_11 = arith.constant 0 : index
      %c0_12 = arith.constant 0 : index
      %13 = vector.load %arg5[%c0_11, %c0_12] : memref<1x128xf32, #tpu.memory_space<vmem>>, vector<1x128xf32>
      %14 = vector.broadcast %13 : vector<1x128xf32> to vector<64x128xf32>
      %15 = arith.addf %12, %14 : vector<64x128xf32>
      %16 = arith.negf %15 : vector<64x128xf32>
      %17 = math.exp %16 : vector<64x128xf32>
      %cst_13 = arith.constant 1.000000e+00 : f32
      %18 = vector.broadcast %cst_13 : f32 to vector<64x128xf32>
      %19 = arith.addf %18, %17 : vector<64x128xf32>
      %20 = arith.divf %18, %19 : vector<64x128xf32>
      %21 = arith.mulf %15, %20 : vector<64x128xf32>
      %c0_14 = arith.constant 0 : index
      %c0_15 = arith.constant 0 : index
      %22 = vector.load %arg6[%c0_14, %c0_15] : memref<64x128xf32, #tpu.memory_space<vmem>>, vector<64x128xf32>
      tpu.vector_store %arg6[%c0_14, %c0_15], %21 {strides = array<i32>} : memref<64x128xf32, #tpu.memory_space<vmem>>, vector<64x128xf32>,
    } else {
    }
    return
  }
  func.func @transform_0(%arg0: i32, %arg1: i32, %arg2: i32) -> (i32, i32) {
    %c0_i32 = arith.constant 0 : i32
    return %arg0, %arg2 : i32, i32
  }
  func.func @transform_1(%arg0: i32, %arg1: i32, %arg2: i32) -> (i32, i32) {
    %c0_i32 = arith.constant 0 : i32
    return %arg2, %arg1 : i32, i32
  }
  func.func @transform_2(%arg0: i32, %arg1: i32, %arg2: i32) -> (i32, i32) {
    %c0_i32 = arith.constant 0 : i32
    %c0_i32_0 = arith.constant 0 : i32
    return %c0_i32, %arg1 : i32, i32
  }
  func.func @transform_3(%arg0: i32, %arg1: i32, %arg2: i32) -> (i32, i32) {
    %c0_i32 = arith.constant 0 : i32
    return %arg0, %arg1 : i32, i32
  }
}

module attributes {stable_mosaic.version = 11 : i64} {
  func.func @_classifier_kernel(%arg0: i32, %arg1: memref<16x256xbf16, #tpu.memory_space<vmem>>, %arg2: memref<256x1024xbf16, #tpu.memory_space<vmem>>, %arg3: memref<1x1024xf32, #tpu.memory_space<vmem>>, %arg4: memref<1024x128xbf16, #tpu.memory_space<vmem>>, %arg5: memref<1x128xf32, #tpu.memory_space<vmem>>, %arg6: memref<16x128xf32, #tpu.memory_space<vmem>>, %arg7: memref<16x1024xf32, #tpu.memory_space<vmem>>) attributes {dimension_semantics = [#tpu.dimension_semantics<arbitrary>], iteration_bounds = array<i64: 25>, scalar_prefetch = 0 : i64, scratch_operands = 1 : i64, tpu.core_type = #tpu.core_type<tc>, window_params = [{transform_indices = @transform_0, window_bounds = array<i64: 16, 256>}, {transform_indices = @transform_1, window_bounds = array<i64: 256, 1024>}, {pipeline_mode = #tpu.pipeline_mode<synchronous>, transform_indices = @transform_2, window_bounds = array<i64: 1, 1024>}, {pipeline_mode = #tpu.pipeline_mode<synchronous>, transform_indices = @transform_3, window_bounds = array<i64: 1024, 128>}, {pipeline_mode = #tpu.pipeline_mode<synchronous>, transform_indices = @transform_4, window_bounds = array<i64: 1, 128>}, {pipeline_mode = #tpu.pipeline_mode<synchronous>, transform_indices = @transform_5, window_bounds = array<i64: 16, 128>}]} {
    %c0_i32 = arith.constant 0 : i32
    %0 = arith.cmpi eq, %arg0, %c0_i32 : i32
    %1 = arith.extui %0 : i1 to i32
    %c0_i32_0 = arith.constant 0 : i32
    %2 = arith.cmpi ne, %1, %c0_i32_0 : i32
    scf.if %2 {
      %cst_9 = arith.constant 0.000000e+00 : f32
      %12 = vector.broadcast %cst_9 : f32 to vector<16x1024xf32>
      %c0_10 = arith.constant 0 : index
      %c0_11 = arith.constant 0 : index
      %13 = vector.load %arg7[%c0_10, %c0_11] : memref<16x1024xf32, #tpu.memory_space<vmem>>, vector<16x1024xf32>
      tpu.vector_store %arg7[%c0_10, %c0_11], %12 {strides = array<i32>} : memref<16x1024xf32, #tpu.memory_space<vmem>>, vector<16x1024xf32>,
    } else {
    }
    %c0 = arith.constant 0 : index
    %c0_1 = arith.constant 0 : index
    %3 = vector.load %arg7[%c0, %c0_1] : memref<16x1024xf32, #tpu.memory_space<vmem>>, vector<16x1024xf32>
    %c0_2 = arith.constant 0 : index
    %c0_3 = arith.constant 0 : index
    %4 = vector.load %arg1[%c0_2, %c0_3] : memref<16x256xbf16, #tpu.memory_space<vmem>>, vector<16x256xbf16>
    %c0_4 = arith.constant 0 : index
    %c0_5 = arith.constant 0 : index
    %5 = vector.load %arg2[%c0_4, %c0_5] : memref<256x1024xbf16, #tpu.memory_space<vmem>>, vector<256x1024xbf16>
    %cst = arith.constant dense<0.000000e+00> : vector<16x1024xf32>
    %6 = tpu.matmul %4, %5, %cst {dimension_numbers = #tpu.dot_dimension_numbers<[1], [0], [0], [1], [0, 0, 1, 1], [], []>} : vector<16x256xbf16>, vector<256x1024xbf16>, vector<16x1024xf32> -> vector<16x1024xf32>
    %7 = arith.addf %3, %6 : vector<16x1024xf32>
    %c0_6 = arith.constant 0 : index
    %c0_7 = arith.constant 0 : index
    %8 = vector.load %arg7[%c0_6, %c0_7] : memref<16x1024xf32, #tpu.memory_space<vmem>>, vector<16x1024xf32>
    tpu.vector_store %arg7[%c0_6, %c0_7], %7 {strides = array<i32>} : memref<16x1024xf32, #tpu.memory_space<vmem>>, vector<16x1024xf32>,
    %c24_i32 = arith.constant 24 : i32
    %9 = arith.cmpi eq, %arg0, %c24_i32 : i32
    %10 = arith.extui %9 : i1 to i32
    %c0_i32_8 = arith.constant 0 : i32
    %11 = arith.cmpi ne, %10, %c0_i32_8 : i32
    scf.if %11 {
      %c0_9 = arith.constant 0 : index
      %c0_10 = arith.constant 0 : index
      %12 = vector.load %arg7[%c0_9, %c0_10] : memref<16x1024xf32, #tpu.memory_space<vmem>>, vector<16x1024xf32>
      %c0_11 = arith.constant 0 : index
      %c0_12 = arith.constant 0 : index
      %13 = vector.load %arg3[%c0_11, %c0_12] : memref<1x1024xf32, #tpu.memory_space<vmem>>, vector<1x1024xf32>
      %14 = vector.broadcast %13 : vector<1x1024xf32> to vector<16x1024xf32>
      %15 = arith.addf %12, %14 : vector<16x1024xf32>
      %16 = arith.negf %15 : vector<16x1024xf32>
      %17 = math.exp %16 : vector<16x1024xf32>
      %cst_13 = arith.constant 1.000000e+00 : f32
      %18 = vector.broadcast %cst_13 : f32 to vector<16x1024xf32>
      %19 = arith.addf %18, %17 : vector<16x1024xf32>
      %20 = arith.divf %18, %19 : vector<16x1024xf32>
      %21 = arith.mulf %15, %20 : vector<16x1024xf32>
      %22 = arith.truncf %21 : vector<16x1024xf32> to vector<16x1024xbf16>
      %c0_14 = arith.constant 0 : index
      %c0_15 = arith.constant 0 : index
      %23 = vector.load %arg4[%c0_14, %c0_15] : memref<1024x128xbf16, #tpu.memory_space<vmem>>, vector<1024x128xbf16>
      %cst_16 = arith.constant dense<0.000000e+00> : vector<16x128xf32>
      %24 = tpu.matmul %22, %23, %cst_16 {dimension_numbers = #tpu.dot_dimension_numbers<[1], [0], [0], [1], [0, 0, 1, 1], [], []>} : vector<16x1024xbf16>, vector<1024x128xbf16>, vector<16x128xf32> -> vector<16x128xf32>
      %c0_17 = arith.constant 0 : index
      %c0_18 = arith.constant 0 : index
      %25 = vector.load %arg5[%c0_17, %c0_18] : memref<1x128xf32, #tpu.memory_space<vmem>>, vector<1x128xf32>
      %26 = vector.broadcast %25 : vector<1x128xf32> to vector<16x128xf32>
      %27 = arith.addf %24, %26 : vector<16x128xf32>
      %c0_19 = arith.constant 0 : index
      %c0_20 = arith.constant 0 : index
      %28 = vector.load %arg6[%c0_19, %c0_20] : memref<16x128xf32, #tpu.memory_space<vmem>>, vector<16x128xf32>
      tpu.vector_store %arg6[%c0_19, %c0_20], %27 {strides = array<i32>} : memref<16x128xf32, #tpu.memory_space<vmem>>, vector<16x128xf32>,
    } else {
    }
    return
  }
  func.func @transform_0(%arg0: i32) -> (i32, i32) {
    %c0_i32 = arith.constant 0 : i32
    %c0_i32_0 = arith.constant 0 : i32
    return %c0_i32, %arg0 : i32, i32
  }
  func.func @transform_1(%arg0: i32) -> (i32, i32) {
    %c0_i32 = arith.constant 0 : i32
    %c0_i32_0 = arith.constant 0 : i32
    return %arg0, %c0_i32 : i32, i32
  }
  func.func @transform_2(%arg0: i32) -> (i32, i32) {
    %c0_i32 = arith.constant 0 : i32
    %c0_i32_0 = arith.constant 0 : i32
    %c0_i32_1 = arith.constant 0 : i32
    return %c0_i32, %c0_i32_0 : i32, i32
  }
  func.func @transform_3(%arg0: i32) -> (i32, i32) {
    %c0_i32 = arith.constant 0 : i32
    %c0_i32_0 = arith.constant 0 : i32
    %c0_i32_1 = arith.constant 0 : i32
    return %c0_i32, %c0_i32_0 : i32, i32
  }
  func.func @transform_4(%arg0: i32) -> (i32, i32) {
    %c0_i32 = arith.constant 0 : i32
    %c0_i32_0 = arith.constant 0 : i32
    %c0_i32_1 = arith.constant 0 : i32
    return %c0_i32, %c0_i32_0 : i32, i32
  }
  func.func @transform_5(%arg0: i32) -> (i32, i32) {
    %c0_i32 = arith.constant 0 : i32
    %c0_i32_0 = arith.constant 0 : i32
    %c0_i32_1 = arith.constant 0 : i32
    return %c0_i32, %c0_i32_0 : i32, i32
  }
}

</mosaic_0001>

<bundles_post_ra>
// kernel: image_encoder_forward.5
= control target key start
LH: loop header
LB: loop body
LE: loop exit
PB: predicated region body
PF: predicated region fallthrough
CT: control target
= control target key end

     0   :  { %8 = vsyncpa [#allocation3], 0  ;;  %s3277_s0 = inlined_call_operand.vmem [shape: bf16[2048,128], index: 0, kind: input, shape index: {}]   ;;  %s3278_s1 = inlined_call_operand.hbm [shape: bf16[128,128], index: 1, kind: input, shape index: {}]   ;;  %s3279_s2 = inlined_call_operand.hbm [shape: f32[1,128], index: 2, kind: input, shape index: {}]   ;;  %s3280_s3 = inlined_call_operand.vmem [shape: f32[2048,128], index: 3, kind: output, shape index: {}]  }
   0x1   :  { %9 = vsyncpa [#allocation5], 0  ;;  %s2601_s12 = smov 0   ;;  %s2603_s13 = smov 0  }
   0x2   :  { %s2605_s14 = smov 0  }
   0x3 LB: > { %s1888_s15 = sadd.s32 4294967295, %s2575_s14   ;;  %s34_s16 = sadd.s32 1, %s2571_s13  ;;  %s2575_s14 = sphi %s2605_s14, %s15_s14   ;;  %s2571_s13 = sphi %s2603_s13, %s3290_s13   ;;  %s2567_s12 = sphi %s2601_s12, %s3289_s12  }
   0x4   : > { %p36_p0 = scmp.ge.s32.totalorder %s34_s16, 4  ;;  %p1890_p1 = scmp.ge.s32.totalorder %s2575_s14, 1 }
   0x5   : > { %p149_p2 = scmp.lt.s32.totalorder %s2575_s14, 5  ;;  %p2626_p4 = scmp.eq.s32.totalorder %s1888_s15, 0 }
   0x6   : > { %s3292_s16 = smov (%p36_p0, %s34_s16), 0  ;;  %s2577_s19 = smov [#allocation2]  }
   0x7   : > { %p2622_p3 = pnand %p1890_p1, %p149_p2  ;;  %s165_s20 = sshll.u32 %s2577_s19, 4  ;;  %s166_s20 = int_to_ptr.vmem [resolvable:$true] %s165_s20 }
   0x8   : > { %s3285_s18 = scalar_select %p2626_p4, 1, 0 }
   0x9   : > { %s3284_s17 = scalar_select %p2622_p3, 1, 0 }
   0xa   : > { %p2152_p5 = pneg %p2622_p3  ;;  %s2578_s22 = smov [#allocation4]  }
   0xb   : > { %s181_s23 = sshll.u32 %s2578_s22, 4  ;;  %s2489_s26 = scalar_lea.hbm %s3278_s1, 1024  ;;  %s2638_s23 = int_to_ptr.vmem [resolvable:$true] %s181_s23 }
   0xc   : > { %p2634_p6 = pnand %p2626_p4, %p2152_p5  ;;  %p2490_p7 = scmp.ne.s32.totalorder %s3278_s1, %s2489_s26 }
   0xd   : > { %p2496_p11 = scmp.lt.u32.totalorder %s2489_s26, %s3278_s1 }
   0xe   : > { %p2491_p8 = pneg %p2634_p6 }
  0x10   : > { %p2492_p9 = pnand %p2491_p8, %p2490_p7 }
  0x12   : > { %p2493_p10 = pneg %p2492_p9 }
  0x14   : > { %p2498_p12 = pnand %p2496_p11, %p2493_p10 }
  0x16   : > { %2501 = shalt.err (!%p2498_p12)
}
  0x17   : > { %s2502_s4 = scalar_lea.vmem %s166_s20, 1024  ;;  %p2510_p2 = scmp.lt.s32.totalorder %s166_s20, %s166_s20 }
  0x18   : > { %p2503_p13 = scmp.ne.s32.totalorder %s166_s20, %s2502_s4  ;;  %p2511_p5 = scmp.lt.s32.totalorder %s2502_s4, %s2502_s4 }
  0x1a   : > { %p2505_p0 = pnand %p2503_p13, %p2491_p8  ;;  %p2512_p4 = por %p2511_p5, %p2510_p2 }
  0x1c   : > { %p2506_p1 = pneg %p2505_p0 }
  0x1e   : > { %p2513_p3 = pnand %p2512_p4, %p2506_p1 }
  0x20   : > { %2516 = shalt.err (!%p2513_p3)
}
  0x21   : > { %s2579_s5 = smov 64   ;;  %s2580_s6 = smov 4  }
  0x22   : > { %2155 = dma.hbm_to_vmem [thread:$0]  (!%p2634_p6), %s3278_s1, 1024, %s166_s20, [#allocation3], %s2579_s5, %s2579_s5, %s2580_s6  }
  0x23   : > { %s2517_s11 = scalar_lea.hbm %s3279_s2, 16 }
  0x24   : > { %p2518_p7 = scmp.ne.s32.totalorder %s3279_s2, %s2517_s11  ;;  %p2524_p9 = scmp.lt.u32.totalorder %s2517_s11, %s3279_s2 }
  0x26   : > { %p2520_p3 = pnand %p2518_p7, %p2491_p8 }
  0x28   : > { %p2521_p4 = pneg %p2520_p3 }
  0x2a   : > { %p2526_p10 = pnand %p2524_p9, %p2521_p4 }
  0x2c   : > { %2529 = shalt.err (!%p2526_p10)
}
  0x2d   : > { %s2530_s20 = scalar_lea.vmem %s2638_s23, 16  ;;  %s2537_s25 = scalar_lea.vmem %s2638_s23, 32 }
  0x2e   : > { %p2531_p11 = scmp.ne.s32.totalorder %s2638_s23, %s2530_s20  ;;  %p2538_p0 = scmp.lt.s32.totalorder %s2638_s23, %s2638_s23 }
  0x2f   : > { %p2539_p1 = scmp.lt.s32.totalorder %s2537_s25, %s2530_s20 }
  0x30   : > { %p2533_p12 = pnand %p2531_p11, %p2491_p8 }
  0x31   : > { %p2540_p2 = por %p2539_p1, %p2538_p0 }
  0x32   : > { %p2534_p13 = pneg %p2533_p12 }
  0x34   : > { %p2541_p5 = pnand %p2540_p2, %p2534_p13 }
  0x36   : > { %2544 = shalt.err (!%p2541_p5)
}
  0x37   : > { %2158 = dma.hbm_to_vmem [thread:$0]  (!%p2634_p6), %s3279_s2, 16, %s2638_s23, [#allocation5]  }
  0x38   : > { %p3287_p7 = scmp.ne.s32.totalorder %s3284_s17, 0 }
  0x39   : > { %p3288_p8 = scmp.ne.s32.totalorder (!%p3287_p7), %s3285_s18, 0 }
  0x3a   : > { %206 = sbr.rel (%p3287_p7) target bundleno = 464 (0x1d0), region = 32 }
  0x41   : > { %2558 = dma.done.wait (%p3288_p8), [#allocation3], 1024  }
  0x42   : > { %2560 = vsyncadd (%p3288_p8), [#allocation3], 4294966272 }
  0x43   : > { %2562 = dma.done.wait (%p3288_p8), [#allocation5], 16  }
  0x44   : > { %2564 = vsyncadd (%p3288_p8), [#allocation5], 4294967280  ;;  %s1897_s21 = sshll.u32 %s2567_s12, 6  ;;  %v2192_v0 = vld [vmem:[#allocation2] sm:$0xff]   ;;  %v2193_v1 = vld [vmem:[#allocation2 + $0x8] sm:$0xff]  }
  0x45   : > { %p241_p3 = scmp.lt.s32.totalorder %s1897_s21, 255  ;;  %2048 = vmatprep.subr.bf16.mxu0 %v2192_v0  ;;  %2128 = vmatprep.subr.bf16.mxu1 %v2192_v0  ;;  %v2194_v2 = vld [vmem:[#allocation2 + $0x10] sm:$0xff]   ;;  %v2195_v3 = vld [vmem:[#allocation2 + $0x18] sm:$0xff]   ;;  %v2196_v6 = vld [vmem:[#allocation2 + $0x20] sm:$0xff]  }
  0x46   : > { %2049 = vmatpush3.bf16.msra.mxu0 %v2192_v0  ;;  %2136 = vmatpush3.bf16.msra.mxu1 %v2192_v0  ;;  %v2197_v7 = vld [vmem:[#allocation2 + $0x28] sm:$0xff]   ;;  %v2198_v8 = vld [vmem:[#allocation2 + $0x30] sm:$0xff]   ;;  %v2199_v9 = vld [vmem:[#allocation2 + $0x38] sm:$0xff]  }
  0x47   : > { %s3294_s21 = smov (!%p241_p3, %s1897_s21), 255  ;;  %2050 = vmatprep.subr.bf16.mxu0 %v2193_v1  ;;  %2129 = vmatprep.subr.bf16.mxu1 %v2193_v1  ;;  %v2739_v41 = vld [vmem:[#allocation4] ss:$0 sm:$0xff] }
  0x48   : > { %s1898_s17 = sshll.u32 %s3294_s21, 2  ;;  %s1900_s12 = sshll.u32 %s3294_s21, 3 }
  0x49   : > { %s2705_s18 = scalar_lea.vmem %s3277_s0, %s1898_s17  ;;  %s2845_s4 = scalar_lea.vmem %s3280_s3, %s1900_s12 }
  0x4a   : > { %2051 = vmatpush3.bf16.msra.mxu0 %v2193_v1  ;;  %2137 = vmatpush3.bf16.msra.mxu1 %v2193_v1  ;;  %v2200_v4 = vld [vmem:[%s2705_s18] sm:$0xff]   ;;  %v2202_v10 = vld [vmem:[%s2705_s18 + $0x8] sm:$0xff]   ;;  %v2204_v12 = vld [vmem:[%s2705_s18 + $0x10] sm:$0xff]  }
  0x4b   : > { %2052 = vmatprep.subr.bf16.mxu0 %v2194_v2  ;;  %2130 = vmatprep.subr.bf16.mxu1 %v2194_v2  ;;  %v2201_v5 = vld [vmem:[%s2705_s18 + $0x80] sm:$0xff]   ;;  %v2203_v11 = vld [vmem:[%s2705_s18 + $0x88] sm:$0xff]   ;;  %v2205_v13 = vld [vmem:[%s2705_s18 + $0x90] sm:$0xff]  }
  0x4c   : > { %2064 = vmatprep.mubr.bf16.mxu0 %v2200_v4  ;;  %2096 = vmatprep.mubr.bf16.mxu1 %v2201_v5  ;;  %v2206_v14 = vld [vmem:[%s2705_s18 + $0x18] sm:$0xff]   ;;  %v2208_v16 = vld [vmem:[%s2705_s18 + $0x20] sm:$0xff]   ;;  %v2210_v18 = vld [vmem:[%s2705_s18 + $0x28] sm:$0xff]  }
  0x4d   : > { %v2207_v15 = vld [vmem:[%s2705_s18 + $0x98] sm:$0xff]   ;;  %v2209_v17 = vld [vmem:[%s2705_s18 + $0xa0] sm:$0xff]   ;;  %v2211_v19 = vld [vmem:[%s2705_s18 + $0xa8] sm:$0xff]  }
  0x4e   : > { %2053 = vmatpush3.bf16.msra.mxu0 %v2194_v2  ;;  %2138 = vmatpush3.bf16.msra.mxu1 %v2194_v2  ;;  %v2212_v20 = vld [vmem:[%s2705_s18 + $0x30] sm:$0xff]   ;;  %v2214_v22 = vld [vmem:[%s2705_s18 + $0x38] sm:$0xff]   ;;  %v2216_v24 = vld [vmem:[%s2705_s18 + $0x40] sm:$0xff]  }
  0x4f   : > { %2054 = vmatprep.subr.bf16.mxu0 %v2195_v3  ;;  %2131 = vmatprep.subr.bf16.mxu1 %v2195_v3  ;;  %v2213_v21 = vld [vmem:[%s2705_s18 + $0xb0] sm:$0xff]   ;;  %v2215_v23 = vld [vmem:[%s2705_s18 + $0xb8] sm:$0xff]   ;;  %v2217_v25 = vld [vmem:[%s2705_s18 + $0xc0] sm:$0xff]  }
  0x50   : > { %v2218_v26 = vld [vmem:[%s2705_s18 + $0x48] sm:$0xff]   ;;  %v2220_v28 = vld [vmem:[%s2705_s18 + $0x50] sm:$0xff]   ;;  %v2222_v30 = vld [vmem:[%s2705_s18 + $0x58] sm:$0xff]  }
  0x51   : > { %v2219_v27 = vld [vmem:[%s2705_s18 + $0xc8] sm:$0xff]   ;;  %v2221_v29 = vld [vmem:[%s2705_s18 + $0xd0] sm:$0xff]   ;;  %v2223_v31 = vld [vmem:[%s2705_s18 + $0xd8] sm:$0xff]  }
  0x52   : > { %2055 = vmatpush3.bf16.msra.mxu0 %v2195_v3  ;;  %2139 = vmatpush3.bf16.msra.mxu1 %v2195_v3  ;;  %v2224_v32 = vld [vmem:[%s2705_s18 + $0x60] sm:$0xff]   ;;  %v2226_v34 = vld [vmem:[%s2705_s18 + $0x68] sm:$0xff]   ;;  %v2228_v36 = vld [vmem:[%s2705_s18 + $0x70] sm:$0xff]  }
  0x53   : > { %2056 = vmatprep.subr.bf16.mxu0 %v2196_v6  ;;  %2132 = vmatprep.subr.bf16.mxu1 %v2196_v6  ;;  %v2225_v33 = vld [vmem:[%s2705_s18 + $0xe0] sm:$0xff]   ;;  %v2227_v35 = vld [vmem:[%s2705_s18 + $0xe8] sm:$0xff]   ;;  %v2229_v37 = vld [vmem:[%s2705_s18 + $0xf0] sm:$0xff]  }
  0x54   : > { %v2230_v38 = vld [vmem:[%s2705_s18 + $0x78] sm:$0xff]  }
  0x55   : > { %v2231_v39 = vld [vmem:[%s2705_s18 + $0xf8] sm:$0xff]  }
  0x56   : > { %2057 = vmatpush3.bf16.msra.mxu0 %v2196_v6  ;;  %2140 = vmatpush3.bf16.msra.mxu1 %v2196_v6 }
  0x57   : > { %2058 = vmatprep.subr.bf16.mxu0 %v2197_v7  ;;  %2133 = vmatprep.subr.bf16.mxu1 %v2197_v7 }
  0x5a   : > { %2059 = vmatpush3.bf16.msra.mxu0 %v2197_v7  ;;  %2141 = vmatpush3.bf16.msra.mxu1 %v2197_v7 }
  0x5b   : > { %2060 = vmatprep.subr.bf16.mxu0 %v2198_v8  ;;  %2134 = vmatprep.subr.bf16.mxu1 %v2198_v8 }
  0x5e   : > { %2061 = vmatpush3.bf16.msra.mxu0 %v2198_v8  ;;  %2142 = vmatpush3.bf16.msra.mxu1 %v2198_v8 }
  0x5f   : > { %2062 = vmatprep.subr.bf16.mxu0 %v2199_v9  ;;  %2135 = vmatprep.subr.bf16.mxu1 %v2199_v9 }
  0x62   : > { %2063 = vmatpush3.bf16.msra.mxu0 %v2199_v9  ;;  %2143 = vmatpush3.bf16.msra.mxu1 %v2199_v9 }
  0x65   : > { %2065 = vmatmul.mubr.bf16.vlgmr.msra.gmra.mrb[0].mxu0 %v2202_v10  ;;  %2097 = vmatmul.mubr.bf16.vlgmr.msra.gmra.mrb[0].mxu1 %v2203_v11 }
  0x66   : > { %2068 = vmatprep.mubr.bf16.mxu0 %v2204_v12  ;;  %2100 = vmatprep.mubr.bf16.mxu1 %v2205_v13 }
  0x6d   : > { %2069 = vmatmul.mubr.bf16.gmra.mrb[4].mxu0 %v2206_v14  ;;  %2101 = vmatmul.mubr.bf16.gmra.mrb[4].mxu1 %v2207_v15 }
  0x6e   : > { %2072 = vmatprep.mubr.bf16.mxu0 %v2208_v16  ;;  %2104 = vmatprep.mubr.bf16.mxu1 %v2209_v17 }
  0x75   : > { %2073 = vmatmul.mubr.bf16.gmra.mrb[8].mxu0 %v2210_v18  ;;  %2105 = vmatmul.mubr.bf16.gmra.mrb[8].mxu1 %v2211_v19 }
  0x76   : > { %2076 = vmatprep.mubr.bf16.mxu0 %v2212_v20  ;;  %2108 = vmatprep.mubr.bf16.mxu1 %v2213_v21 }
  0x7d   : > { %2077 = vmatmul.mubr.bf16.gmra.mrb[12].mxu0 %v2214_v22  ;;  %2109 = vmatmul.mubr.bf16.gmra.mrb[12].mxu1 %v2215_v23 }
  0x7e   : > { %2080 = vmatprep.mubr.bf16.mxu0 %v2216_v24  ;;  %2112 = vmatprep.mubr.bf16.mxu1 %v2217_v25 }
  0x85   : > { %2081 = vmatmul.mubr.bf16.gmra.mrb[16].mxu0 %v2218_v26  ;;  %2113 = vmatmul.mubr.bf16.gmra.mrb[16].mxu1 %v2219_v27 }
  0x86   : > { %2084 = vmatprep.mubr.bf16.mxu0 %v2220_v28  ;;  %2116 = vmatprep.mubr.bf16.mxu1 %v2221_v29 }
  0x8d   : > { %2085 = vmatmul.mubr.bf16.gmra.mrb[20].mxu0 %v2222_v30  ;;  %2117 = vmatmul.mubr.bf16.gmra.mrb[20].mxu1 %v2223_v31 }
  0x8e   : > { %2088 = vmatprep.mubr.bf16.mxu0 %v2224_v32  ;;  %2120 = vmatprep.mubr.bf16.mxu1 %v2225_v33 }
  0x95   : > { %2089 = vmatmul.mubr.bf16.gmra.mrb[24].mxu0 %v2226_v34  ;;  %2121 = vmatmul.mubr.bf16.gmra.mrb[24].mxu1 %v2227_v35 }
  0x96   : > { %2092 = vmatprep.mubr.bf16.mxu0 %v2228_v36  ;;  %2124 = vmatprep.mubr.bf16.mxu1 %v2229_v37 }
  0x9d   : > { %2093 = vmatmul.mubr.bf16.gmra.mrb[28].mxu0 %v2230_v38  ;;  %2125 = vmatmul.mubr.bf16.gmra.mrb[28].mxu1 %v2231_v39 }
 0x138   : > { %v2066_v40 = vpop.f32.mrb[0].mxu0  ;;  %v2098_v42 = vpop.f32.mrb[0].mxu1 }
 0x139   : > { %v746_v43 = vpop.f32.mrb[1].mxu0  ;;  %v874_v44 = vpop.f32.mrb[1].mxu1  ;;  %v2742_v47 = vadd.f32 %v2066_v40, %v2739_v41  ;;  %v2745_v48 = vadd.f32 %v2098_v42, %v2739_v41 }
 0x13a   : > { %v2067_v45 = vpop.f32.mrb[2].mxu0  ;;  %v2099_v46 = vpop.f32.mrb[2].mxu1  ;;  %v2748_v51 = vadd.f32 %v2739_v41, %v746_v43  ;;  %v2751_v52 = vadd.f32 %v2739_v41, %v874_v44 }
 0x13b   : > { %v749_v49 = vpop.f32.mrb[3].mxu0  ;;  %v877_v50 = vpop.f32.mrb[3].mxu1  ;;  %v1944_v53 = vmul.f32 -1.442695, %v2742_v47  ;;  %v1976_v54 = vmul.f32 -1.442695, %v2745_v48  ;;  %v2756_v55 = vadd.f32 %v2067_v45, %v2739_v41  ;;  %v2759_v56 = vadd.f32 %v2099_v46, %v2739_v41 }
 0x13c   : > { %v1942_v57 = vmul.f32 -1.442695, %v2748_v51  ;;  %v1974_v58 = vmul.f32 -1.442695, %v2751_v52  ;;  %v2764_v59 = vadd.f32 %v2739_v41, %v749_v49  ;;  %v2767_v60 = vadd.f32 %v2739_v41, %v877_v50 }
 0x13d   : > { %2232 = vpow2.f32 %v1944_v53  ;;  %v1945_v61 = vmul.f32 -1.442695, %v2756_v55  ;;  %v1977_v62 = vmul.f32 -1.442695, %v2759_v56 }
 0x13e   : > { %2234 = vpow2.f32 %v1976_v54  ;;  %v1943_v1 = vmul.f32 -1.442695, %v2764_v59  ;;  %v1975_v4 = vmul.f32 -1.442695, %v2767_v60 }
 0x13f   : > { %2236 = vpow2.f32 %v1942_v57 }
 0x140   : > { %v2070_v63 = vpop.f32.mrb[4].mxu0  ;;  %v2102_v0 = vpop.f32.mrb[4].mxu1  ;;  %2238 = vpow2.f32 %v1974_v58 }
 0x141   : > { %v762_v2 = vpop.f32.mrb[5].mxu0  ;;  %v890_v3 = vpop.f32.mrb[5].mxu1  ;;  %2240 = vpow2.f32 %v1945_v61  ;;  %v2774_v7 = vadd.f32 %v2070_v63, %v2739_v41  ;;  %v2777_v8 = vadd.f32 %v2102_v0, %v2739_v41 }
 0x142   : > { %v2071_v5 = vpop.f32.mrb[6].mxu0  ;;  %v2103_v6 = vpop.f32.mrb[6].mxu1  ;;  %2242 = vpow2.f32 %v1977_v62  ;;  %v2780_v11 = vadd.f32 %v2739_v41, %v762_v2  ;;  %v2783_v12 = vadd.f32 %v2739_v41, %v890_v3 }
 0x143   : > { %v765_v9 = vpop.f32.mrb[7].mxu0  ;;  %v893_v10 = vpop.f32.mrb[7].mxu1  ;;  %2244 = vpow2.f32 %v1943_v1  ;;  %v1948_v13 = vmul.f32 -1.442695, %v2774_v7  ;;  %v1980_v14 = vmul.f32 -1.442695, %v2777_v8  ;;  %v2788_v15 = vadd.f32 %v2071_v5, %v2739_v41 }
 0x144   : > { %2246 = vpow2.f32 %v1975_v4  ;;  %v1946_v16 = vmul.f32 -1.442695, %v2780_v11  ;;  %v1978_v17 = vmul.f32 -1.442695, %v2783_v12  ;;  %v2804_v36 = vadd.f32 %v2103_v6, %v2739_v41 }
 0x145   : > { %2248 = vpow2.f32 %v1948_v13  ;;  %v1949_v18 = vmul.f32 -1.442695, %v2788_v15  ;;  %v2807_v39 = vadd.f32 %v2739_v41, %v765_v9  ;;  %v2810_v43 = vadd.f32 %v2739_v41, %v893_v10 }
 0x146   : > { %2250 = vpow2.f32 %v1980_v14  ;;  %v1981_v54 = vmul.f32 -1.442695, %v2804_v36 }
 0x147   : > { %v2233_v21 = vpop.eup %2232  ;;  %2252 = vpow2.f32 %v1946_v16  ;;  %v1947_v0 = vmul.f32 -1.442695, %v2807_v39  ;;  %v1979_v6 = vmul.f32 -1.442695, %v2810_v43 }
 0x148   : > { %v2074_v19 = vpop.f32.mrb[8].mxu0  ;;  %v2106_v20 = vpop.f32.mrb[8].mxu1  ;;  %v1461_v25 = vadd.f32 1.0, %v2233_v21  ;;  %2254 = vpow2.f32 %v1978_v17 }
 0x149   : > { %v778_v22 = vpop.f32.mrb[9].mxu0  ;;  %v2793_v23 = vpop.f32.mrb[9].mxu1  ;;  %2256 = vpow2.f32 %v1949_v18  ;;  %v2818_v57 = vadd.f32 %v2074_v19, %v2739_v41  ;;  %v2826_v1 = vadd.f32 %v2106_v20, %v2739_v41 }
 0x14a   : > { %v2235_v24 = vpop.eup %2234  ;;  %v2795_v26 = vpop.f32.mrb[10].mxu0  ;;  %2258 = vrcp.f32 %v1461_v25  ;;  %v2839_v16 = vadd.f32 %v2739_v41, %v778_v22 }
 0x14b   : > { %v2797_v27 = vpop.f32.mrb[10].mxu1  ;;  %v2237_v28 = vpop.eup %2236  ;;  %v1493_v29 = vadd.f32 1.0, %v2235_v24  ;;  %v1952_v19 = vmul.f32 -1.442695, %v2818_v57  ;;  %v1984_v24 = vmul.f32 -1.442695, %v2826_v1 }
 0x14c   : > { %v2799_v30 = vpop.f32.mrb[11].mxu0  ;;  %v2239_v31 = vpop.eup %2238  ;;  %v1459_v32 = vadd.f32 1.0, %v2237_v28  ;;  %v2851_v28 = vadd.f32 %v2739_v41, %v2793_v23  ;;  %v2866_v23 = vadd.f32 %v2797_v27, %v2739_v41 }
 0x14d   : > { %v2801_v33 = vpop.f32.mrb[11].mxu1  ;;  %v2241_v34 = vpop.eup %2240  ;;  %2260 = vrcp.f32 %v1493_v29  ;;  %v1491_v35 = vadd.f32 1.0, %v2239_v31 }
 0x14e   : > { %v2243_v37 = vpop.eup %2242  ;;  %2262 = vrcp.f32 %v1459_v32  ;;  %v1462_v38 = vadd.f32 1.0, %v2241_v34  ;;  %v2856_v32 = vadd.f32 %v2795_v26, %v2739_v41 }
 0x14f   : > { %v2245_v40 = vpop.eup %2244  ;;  %2264 = vrcp.f32 %v1491_v35  ;;  %v1494_v42 = vadd.f32 1.0, %v2243_v37 }
 0x150   : > { %v2247_v44 = vpop.eup %2246  ;;  %2266 = vrcp.f32 %v1462_v38  ;;  %v1460_v45 = vadd.f32 1.0, %v2245_v40  ;;  %v2812_v46 = vpop.f32.mrb[12].mxu0 }
 0x151   : > { %v2814_v49 = vpop.f32.mrb[12].mxu1  ;;  %v2249_v50 = vpop.eup %2248  ;;  %2268 = vrcp.f32 %v1494_v42  ;;  %v1492_v53 = vadd.f32 1.0, %v2247_v44  ;;  %v1950_v42 = vmul.f32 -1.442695, %v2839_v16 }
 0x152   : > { %v2820_v58 = vpop.f32.mrb[13].mxu0  ;;  %v2822_v61 = vpop.f32.mrb[13].mxu1  ;;  %2270 = vrcp.f32 %v1460_v45  ;;  %v1465_v63 = vadd.f32 1.0, %v2249_v50 }
 0x153   : > { %v2251_v62 = vpop.eup %2250  ;;  %v2828_v2 = vpop.f32.mrb[14].mxu0  ;;  %2272 = vrcp.f32 %v1492_v53  ;;  %v1982_v53 = vmul.f32 -1.442695, %v2851_v28 }
 0x154   : > { %v2830_v3 = vpop.f32.mrb[14].mxu1  ;;  %v2253_v4 = vpop.eup %2252  ;;  %v1497_v5 = vadd.f32 1.0, %v2251_v62  ;;  %2274 = vrcp.f32 %v1465_v63 }
 0x155   : > { %v2834_v9 = vpop.f32.mrb[15].mxu0  ;;  %v2836_v10 = vpop.f32.mrb[15].mxu1  ;;  %v1463_v14 = vadd.f32 1.0, %v2253_v4 }
 0x156   : > { %v2255_v13 = vpop.eup %2254  ;;  %2276 = vrcp.f32 %v1497_v5  ;;  %v1985_v5 = vmul.f32 -1.442695, %v2866_v23 }
 0x157   : > { %v2257_v17 = vpop.eup %2256  ;;  %v1495_v18 = vadd.f32 1.0, %v2255_v13  ;;  %2278 = vrcp.f32 %v1463_v14 }
 0x158   : > { %v2259_v20 = vpop.eup %2258  ;;  %v1466_v21 = vadd.f32 1.0, %v2257_v17  ;;  %v2858_v34 = vpop.f32.mrb[16].mxu0 }
 0x159   : > { %v2261_v25 = vpop.eup %2260  ;;  %v1653_v22 = vmul.f32 %v2259_v20, %v2742_v47  ;;  %2280 = vrcp.f32 %v1495_v18  ;;  %v2860_v35 = vpop.f32.mrb[16].mxu1 }
 0x15a   : > { %v2263_v29 = vpop.eup %2262  ;;  %v1685_v31 = vmul.f32 %v2261_v25, %v2745_v48  ;;  %2282 = vrcp.f32 %v1466_v21  ;;  %v2868_v48 = vpop.f32.mrb[17].mxu0 }
 0x15b   : > { %v2265_v37 = vpop.eup %2264  ;;  %1717 = vst [vmem:[%s2845_s4 + $0x10] sm:$0xff] %v1653_v22  ;;  %v1651_v47 = vmul.f32 %v2263_v29, %v2748_v51  ;;  %2284 = vpow2.f32 %v1981_v54  ;;  %v2870_v38 = vpop.f32.mrb[17].mxu1  ;;  %v2877_v51 = vadd.f32 %v2739_v41, %v2799_v30 }
 0x15c   : > { %v2267_v26 = vpop.eup %2266  ;;  %1749 = vst [vmem:[%s2845_s4 + $0x110] sm:$0xff] %v1685_v31  ;;  %v1683_v40 = vmul.f32 %v2265_v37, %v2751_v52  ;;  %2286 = vpow2.f32 %v1947_v0  ;;  %v2879_v44 = vpop.f32.mrb[18].mxu0  ;;  %v2888_v52 = vadd.f32 %v2739_v41, %v2801_v33  ;;  %v2899_v0 = vadd.f32 %v2812_v46, %v2739_v41 }
 0x15d   : > { %v2881_v27 = vpop.f32.mrb[18].mxu1  ;;  %v2269_v45 = vpop.eup %2268  ;;  %1715 = vst [vmem:[%s2845_s4] sm:$0xff] %v1651_v47  ;;  %v1654_v50 = vmul.f32 %v2267_v26, %v2756_v55  ;;  %2288 = vpow2.f32 %v1979_v6  ;;  %v1953_v55 = vmul.f32 -1.442695, %v2856_v32  ;;  %v2906_v6 = vadd.f32 %v2814_v49, %v2739_v41 }
 0x15e   : > { %v2890_v54 = vpop.f32.mrb[19].mxu0  ;;  %v2892_v30 = vpop.f32.mrb[19].mxu1  ;;  %1747 = vst [vmem:[%s2845_s4 + $0x100] sm:$0xff] %v1683_v40  ;;  %v1686_v63 = vmul.f32 %v2269_v45, %v2759_v56  ;;  %2290 = vpow2.f32 %v1952_v19  ;;  %v1951_v46 = vmul.f32 -1.442695, %v2877_v51 }
 0x15f   : > { %v2271_v62 = vpop.eup %2270  ;;  %1718 = vst [vmem:[%s2845_s4 + $0x18] sm:$0xff] %v1654_v50  ;;  %2292 = vpow2.f32 %v1984_v24  ;;  %v1956_v19 = vmul.f32 -1.442695, %v2899_v0  ;;  %v1988_v24 = vmul.f32 -1.442695, %v2906_v6 }
 0x160   : > { %v2273_v4 = vpop.eup %2272  ;;  %v1652_v33 = vmul.f32 %v2271_v62, %v2764_v59  ;;  %1750 = vst [vmem:[%s2845_s4 + $0x118] sm:$0xff] %v1686_v63  ;;  %2294 = vpow2.f32 %v1950_v42  ;;  %v1983_v59 = vmul.f32 -1.442695, %v2888_v52  ;;  %v2919_v20 = vpop.f32.mrb[20].mxu1 }
 0x161   : > { %v2275_v56 = vpop.eup %2274  ;;  %v1684_v13 = vmul.f32 %v2273_v4, %v2767_v60  ;;  %2296 = vpow2.f32 %v1982_v53  ;;  %v2917_v60 = vpop.f32.mrb[20].mxu0 }
 0x162   : > { %v2277_v14 = vpop.eup %2276  ;;  %1716 = vst [vmem:[%s2845_s4 + $0x8] sm:$0xff] %v1652_v33  ;;  %v1657_v17 = vmul.f32 %v2275_v56, %v2774_v7  ;;  %2298 = vpow2.f32 %v1953_v55  ;;  %v2924_v25 = vpop.f32.mrb[21].mxu0 }
 0x163   : > { %v2279_v18 = vpop.eup %2278  ;;  %1748 = vst [vmem:[%s2845_s4 + $0x108] sm:$0xff] %v1684_v13  ;;  %v1689_v49 = vmul.f32 %v2277_v14, %v2777_v8  ;;  %2300 = vpow2.f32 %v1985_v5  ;;  %v2926_v22 = vpop.f32.mrb[21].mxu1  ;;  %v2948_v5 = vadd.f32 %v2739_v41, %v2822_v61  ;;  %v2964_v61 = vadd.f32 %v2830_v3, %v2739_v41 }
 0x164   : > { %v2281_v21 = vpop.eup %2280  ;;  %1721 = vst [vmem:[%s2845_s4 + $0x30] sm:$0xff] %v1657_v17  ;;  %v1655_v7 = vmul.f32 %v2279_v18, %v2780_v11  ;;  %2302 = vpow2.f32 %v1951_v46  ;;  %v2930_v31 = vpop.f32.mrb[22].mxu0  ;;  %v2956_v17 = vadd.f32 %v2828_v2, %v2739_v41 }
 0x165   : > { %v2283_v8 = vpop.eup %2282  ;;  %1753 = vst [vmem:[%s2845_s4 + $0x130] sm:$0xff] %v1689_v49  ;;  %v1687_v29 = vmul.f32 %v2281_v21, %v2783_v12  ;;  %v2932_v37 = vpop.f32.mrb[22].mxu1  ;;  %2304 = vpow2.f32 %v1983_v59 }
 0x166   : > { %v2285_v47 = vpop.eup %2284  ;;  %1719 = vst [vmem:[%s2845_s4 + $0x20] sm:$0xff] %v1655_v7  ;;  %v1658_v11 = vmul.f32 %v2283_v8, %v2788_v15  ;;  %v2936_v26 = vpop.f32.mrb[23].mxu0  ;;  %2306 = vpow2.f32 %v1956_v19  ;;  %v2944_v15 = vadd.f32 %v2739_v41, %v2820_v58  ;;  %v2973_v8 = vadd.f32 %v2739_v41, %v2834_v9 }
 0x167   : > { %v2938_v40 = vpop.f32.mrb[23].mxu1  ;;  %v2287_v42 = vpop.eup %2286  ;;  %1751 = vst [vmem:[%s2845_s4 + $0x120] sm:$0xff] %v1687_v29  ;;  %v1498_v45 = vadd.f32 1.0, %v2285_v47  ;;  %2308 = vpow2.f32 %v1988_v24  ;;  %v1989_v9 = vmul.f32 -1.442695, %v2964_v61 }
 0x168   : > { %v2289_v50 = vpop.eup %2288  ;;  %1722 = vst [vmem:[%s2845_s4 + $0x38] sm:$0xff] %v1658_v11  ;;  %v1464_v12 = vadd.f32 1.0, %v2287_v42  ;;  %v2950_v56 = vpop.f32.mrb[24].mxu0  ;;  %v1954_v2 = vmul.f32 -1.442695, %v2944_v15 }
 0x169   : > { %v2291_v53 = vpop.eup %2290  ;;  %2310 = vrcp.f32 %v1498_v45  ;;  %v1496_v62 = vadd.f32 1.0, %v2289_v50  ;;  %v2952_v13 = vpop.f32.mrb[24].mxu1  ;;  %v1986_v42 = vmul.f32 -1.442695, %v2948_v5 }
 0x16a   : > { %v2293_v63 = vpop.eup %2292  ;;  %2312 = vrcp.f32 %v1464_v12  ;;  %v1469_v55 = vadd.f32 1.0, %v2291_v53  ;;  %v2958_v58 = vpop.f32.mrb[25].mxu0  ;;  %v1957_v12 = vmul.f32 -1.442695, %v2956_v17 }
 0x16b   : > { %v2295_v4 = vpop.eup %2294  ;;  %2314 = vrcp.f32 %v1496_v62  ;;  %v1501_v33 = vadd.f32 1.0, %v2293_v63  ;;  %v2960_v59 = vpop.f32.mrb[25].mxu1 }
 0x16c   : > { %v2297_v46 = vpop.eup %2296  ;;  %2316 = vrcp.f32 %v1469_v55  ;;  %v1467_v14 = vadd.f32 1.0, %v2295_v4  ;;  %v2966_v19 = vpop.f32.mrb[26].mxu0  ;;  %v1955_v4 = vmul.f32 -1.442695, %v2973_v8 }
 0x16d   : > { %v2299_v18 = vpop.eup %2298  ;;  %2318 = vrcp.f32 %v1501_v33  ;;  %v1499_v49 = vadd.f32 1.0, %v2297_v46  ;;  %v2968_v21 = vpop.f32.mrb[26].mxu1 }
 0x16e   : > { %v2301_v7 = vpop.eup %2300  ;;  %2320 = vrcp.f32 %v1467_v14  ;;  %v1470_v24 = vadd.f32 1.0, %v2299_v18  ;;  %v2975_v29 = vpop.f32.mrb[27].mxu0  ;;  %v2985_v14 = vadd.f32 %v2739_v41, %v2836_v10 }
 0x16f   : > { %v2977_v47 = vpop.f32.mrb[27].mxu1  ;;  %v2303_v11 = vpop.eup %2302  ;;  %2322 = vrcp.f32 %v1499_v49  ;;  %v1502_v3 = vadd.f32 1.0, %v2301_v7 }
 0x170   : > { %v2305_v45 = vpop.eup %2304  ;;  %2324 = vrcp.f32 %v1470_v24  ;;  %v1468_v50 = vadd.f32 1.0, %v2303_v11  ;;  %v2987_v18 = vpop.f32.mrb[28].mxu0  ;;  %v2994_v11 = vadd.f32 %v2858_v34, %v2739_v41 }
 0x171   : > { %v2307_v53 = vpop.eup %2306  ;;  %2326 = vrcp.f32 %v1502_v3  ;;  %v1500_v62 = vadd.f32 1.0, %v2305_v45  ;;  %v2989_v49 = vpop.f32.mrb[28].mxu1 }
 0x172   : > { %v2309_v63 = vpop.eup %2308  ;;  %2328 = vrcp.f32 %v1468_v50  ;;  %v1473_v55 = vadd.f32 1.0, %v2307_v53  ;;  %v2996_v3 = vpop.f32.mrb[29].mxu0  ;;  %v3003_v53 = vadd.f32 %v2860_v35, %v2739_v41 }
 0x173   : > { %v2311_v33 = vpop.eup %2310  ;;  %2330 = vrcp.f32 %v1500_v62  ;;  %v1505_v46 = vadd.f32 1.0, %v2309_v63  ;;  %v2998_v45 = vpop.f32.mrb[29].mxu1 }
 0x174   : > { %v2313_v7 = vpop.eup %2312  ;;  %v1690_v24 = vmul.f32 %v2311_v33, %v2804_v36  ;;  %2332 = vrcp.f32 %v1473_v55  ;;  %v3005_v62 = vpop.f32.mrb[30].mxu0  ;;  %v3013_v55 = vadd.f32 %v2739_v41, %v2868_v48 }
 0x175   : > { %v2315_v10 = vpop.eup %2314  ;;  %v1656_v50 = vmul.f32 %v2313_v7, %v2807_v39  ;;  %2334 = vrcp.f32 %v1505_v46  ;;  %v3007_v36 = vpop.f32.mrb[30].mxu1  ;;  %v1987_v7 = vmul.f32 -1.442695, %v2985_v14 }
 0x176   : > { %v2317_v34 = vpop.eup %2316  ;;  %1754 = vst [vmem:[%s2845_s4 + $0x138] sm:$0xff] %v1690_v24  ;;  %v1688_v63 = vmul.f32 %v2315_v10, %v2810_v43  ;;  %2336 = vpow2.f32 %v1954_v2  ;;  %v3015_v39 = vpop.f32.mrb[31].mxu0  ;;  %v3024_v43 = vadd.f32 %v2739_v41, %v2870_v38  ;;  %v1960_v24 = vmul.f32 -1.442695, %v2994_v11 }
 0x177   : > { %v3017_v33 = vpop.f32.mrb[31].mxu1  ;;  %v2319_v35 = vpop.eup %2318  ;;  %1720 = vst [vmem:[%s2845_s4 + $0x28] sm:$0xff] %v1656_v50  ;;  %v1661_v46 = vmul.f32 %v2317_v34, %v2818_v57  ;;  %2338 = vpow2.f32 %v1986_v42  ;;  %v3031_v10 = vadd.f32 %v2879_v44, %v2739_v41  ;;  %v1992_v38 = vmul.f32 -1.442695, %v3003_v53 }
 0x178   : > { %v2321_v2 = vpop.eup %2320  ;;  %1752 = vst [vmem:[%s2845_s4 + $0x128] sm:$0xff] %v1688_v63  ;;  %v1693_v48 = vmul.f32 %v2319_v35, %v2826_v1  ;;  %2340 = vpow2.f32 %v1957_v12  ;;  %v3038_v50 = vadd.f32 %v2881_v27, %v2739_v41  ;;  %v1958_v44 = vmul.f32 -1.442695, %v3013_v55 }
 0x179   : > { %v2323_v57 = vpop.eup %2322  ;;  %1725 = vst [vmem:[%s2845_s4 + $0x50] sm:$0xff] %v1661_v46  ;;  %v1659_v42 = vmul.f32 %v2321_v2, %v2839_v16  ;;  %2342 = vpow2.f32 %v1989_v9  ;;  %v3045_v34 = vadd.f32 %v2739_v41, %v2890_v54  ;;  %v1990_v27 = vmul.f32 -1.442695, %v3024_v43 }
 0x17a   : > { %v2325_v1 = vpop.eup %2324  ;;  %1757 = vst [vmem:[%s2845_s4 + $0x150] sm:$0xff] %v1693_v48  ;;  %v1691_v12 = vmul.f32 %v2323_v57, %v2851_v28  ;;  %2344 = vpow2.f32 %v1955_v4  ;;  %v1961_v4 = vmul.f32 -1.442695, %v3031_v10 }
 0x17b   : > { %v2327_v16 = vpop.eup %2326  ;;  %1723 = vst [vmem:[%s2845_s4 + $0x40] sm:$0xff] %v1659_v42  ;;  %v1662_v9 = vmul.f32 %v2325_v1, %v2856_v32  ;;  %2346 = vpow2.f32 %v1987_v7  ;;  %v1993_v32 = vmul.f32 -1.442695, %v3038_v50 }
 0x17c   : > { %v2329_v63 = vpop.eup %2328  ;;  %1755 = vst [vmem:[%s2845_s4 + $0x140] sm:$0xff] %v1691_v12  ;;  %v1694_v28 = vmul.f32 %v2327_v16, %v2866_v23  ;;  %2348 = vpow2.f32 %v1960_v24  ;;  %v1959_v23 = vmul.f32 -1.442695, %v3045_v34  ;;  %v3067_v16 = vadd.f32 %v2739_v41, %v2892_v30 }
 0x17d   : > { %v2331_v35 = vpop.eup %2330  ;;  %1726 = vst [vmem:[%s2845_s4 + $0x58] sm:$0xff] %v1662_v9  ;;  %v1660_v54 = vmul.f32 %v2329_v63, %v2877_v51  ;;  %2350 = vpow2.f32 %v1992_v38  ;;  %v3079_v30 = vadd.f32 %v2739_v41, %v2924_v25 }
 0x17e   : > { %v2333_v46 = vpop.eup %2332  ;;  %1758 = vst [vmem:[%s2845_s4 + $0x158] sm:$0xff] %v1694_v28  ;;  %v1692_v7 = vmul.f32 %v2331_v35, %v2888_v52  ;;  %2352 = vpow2.f32 %v1958_v44 }
 0x17f   : > { %v2335_v2 = vpop.eup %2334  ;;  %1724 = vst [vmem:[%s2845_s4 + $0x48] sm:$0xff] %v1660_v54  ;;  %v1665_v48 = vmul.f32 %v2333_v46, %v2899_v0  ;;  %2354 = vpow2.f32 %v1990_v27  ;;  %v3071_v27 = vadd.f32 %v2917_v60, %v2739_v41  ;;  %v1991_v60 = vmul.f32 -1.442695, %v3067_v16 }
 0x180   : > { %v2337_v24 = vpop.eup %2336  ;;  %1756 = vst [vmem:[%s2845_s4 + $0x148] sm:$0xff] %v1692_v7  ;;  %v1697_v51 = vmul.f32 %v2335_v2, %v2906_v6  ;;  %2356 = vpow2.f32 %v1961_v4  ;;  %v3075_v4 = vadd.f32 %v2919_v20, %v2739_v41  ;;  %v3084_v7 = vadd.f32 %v2739_v41, %v2926_v22 }
 0x181   : > { %v2339_v57 = vpop.eup %2338  ;;  %1729 = vst [vmem:[%s2845_s4 + $0x70] sm:$0xff] %v1665_v48  ;;  %v1471_v42 = vadd.f32 1.0, %v2337_v24  ;;  %2358 = vpow2.f32 %v1993_v32  ;;  %v1964_v2 = vmul.f32 -1.442695, %v3071_v27 }
 0x182   : > { %v2341_v38 = vpop.eup %2340  ;;  %1761 = vst [vmem:[%s2845_s4 + $0x170] sm:$0xff] %v1697_v51  ;;  %v1503_v52 = vadd.f32 1.0, %v2339_v57  ;;  %2360 = vpow2.f32 %v1959_v23  ;;  %v1996_v25 = vmul.f32 -1.442695, %v3075_v4 }
 0x183   : > { %v2343_v1 = vpop.eup %2342  ;;  %2362 = vrcp.f32 %v1471_v42  ;;  %v1474_v12 = vadd.f32 1.0, %v2341_v38  ;;  %v1962_v42 = vmul.f32 -1.442695, %v3079_v30 }
 0x184   : > { %v2345_v44 = vpop.eup %2344  ;;  %2364 = vrcp.f32 %v1503_v52  ;;  %v1506_v0 = vadd.f32 1.0, %v2343_v1  ;;  %v1994_v52 = vmul.f32 -1.442695, %v3084_v7 }
 0x185   : > { %v2347_v6 = vpop.eup %2346  ;;  %2366 = vrcp.f32 %v1474_v12  ;;  %v1472_v9 = vadd.f32 1.0, %v2345_v44  ;;  %v3092_v44 = vadd.f32 %v2930_v31, %v2739_v41 }
 0x186   : > { %v2349_v63 = vpop.eup %2348  ;;  %2368 = vrcp.f32 %v1506_v0  ;;  %v1504_v28 = vadd.f32 1.0, %v2347_v6 }
 0x187   : > { %v2351_v35 = vpop.eup %2350  ;;  %2370 = vrcp.f32 %v1472_v9  ;;  %v1477_v54 = vadd.f32 1.0, %v2349_v63  ;;  %v3097_v9 = vadd.f32 %v2932_v37, %v2739_v41 }
 0x188   : > { %v2353_v32 = vpop.eup %2352  ;;  %2372 = vrcp.f32 %v1504_v28  ;;  %v1509_v46 = vadd.f32 1.0, %v2351_v35  ;;  %v3102_v35 = vadd.f32 %v2739_v41, %v2936_v26  ;;  %v3115_v26 = vadd.f32 %v2950_v56, %v2739_v41 }
 0x189   : > { %v2355_v23 = vpop.eup %2354  ;;  %2374 = vrcp.f32 %v1477_v54  ;;  %v1475_v20 = vadd.f32 1.0, %v2353_v32 }
 0x18a   : > { %v2357_v48 = vpop.eup %2356  ;;  %2376 = vrcp.f32 %v1509_v46  ;;  %v1507_v24 = vadd.f32 1.0, %v2355_v23  ;;  %v1963_v56 = vmul.f32 -1.442695, %v3102_v35 }
 0x18b   : > { %v2359_v51 = vpop.eup %2358  ;;  %2378 = vrcp.f32 %v1475_v20  ;;  %v1478_v57 = vadd.f32 1.0, %v2357_v48  ;;  %v3129_v20 = vadd.f32 %v2739_v41, %v2958_v58  ;;  %v3136_v48 = vadd.f32 %v2739_v41, %v2960_v59 }
 0x18c   : > { %v2361_v38 = vpop.eup %2360  ;;  %2380 = vrcp.f32 %v1507_v24  ;;  %v1510_v22 = vadd.f32 1.0, %v2359_v51  ;;  %v1968_v58 = vmul.f32 -1.442695, %v3115_v26 }
 0x18d   : > { %v2363_v1 = vpop.eup %2362  ;;  %2382 = vrcp.f32 %v1478_v57  ;;  %v1476_v12 = vadd.f32 1.0, %v2361_v38  ;;  %v1966_v59 = vmul.f32 -1.442695, %v3129_v20 }
 0x18e   : > { %v2365_v0 = vpop.eup %2364  ;;  %v1663_v6 = vmul.f32 %v2363_v1, %v2944_v15  ;;  %2384 = vrcp.f32 %v1510_v22  ;;  %v3108_v15 = vadd.f32 %v2739_v41, %v2938_v40  ;;  %v1997_v40 = vmul.f32 -1.442695, %v3097_v9 }
 0x18f   : > { %v2367_v63 = vpop.eup %2366  ;;  %v1695_v28 = vmul.f32 %v2365_v0, %v2948_v5  ;;  %2386 = vrcp.f32 %v1476_v12  ;;  %v1965_v5 = vmul.f32 -1.442695, %v3092_v44 }
 0x190   : > { %v2369_v54 = vpop.eup %2368  ;;  %1727 = vst [vmem:[%s2845_s4 + $0x60] sm:$0xff] %v1663_v6  ;;  %v1666_v31 = vmul.f32 %v2367_v63, %v2956_v17  ;;  %2388 = vpow2.f32 %v1991_v60  ;;  %v3122_v60 = vadd.f32 %v2952_v13, %v2739_v41  ;;  %v1995_v13 = vmul.f32 -1.442695, %v3108_v15 }
 0x191   : > { %v2371_v37 = vpop.eup %2370  ;;  %1759 = vst [vmem:[%s2845_s4 + $0x160] sm:$0xff] %v1695_v28  ;;  %v1698_v32 = vmul.f32 %v2369_v54, %v2964_v61  ;;  %2390 = vpow2.f32 %v1964_v2  ;;  %v3156_v54 = vld [vmem:[#allocation4] ss:$0 sm:$0xff] }
 0x192   : > { %v2373_v46 = vpop.eup %2372  ;;  %1730 = vst [vmem:[%s2845_s4 + $0x78] sm:$0xff] %v1666_v31  ;;  %v1664_v17 = vmul.f32 %v2371_v37, %v2973_v8  ;;  %2392 = vpow2.f32 %v1996_v25  ;;  %v2000_v51 = vmul.f32 -1.442695, %v3122_v60 }
 0x193   : > { %v2375_v61 = vpop.eup %2374  ;;  %1762 = vst [vmem:[%s2845_s4 + $0x178] sm:$0xff] %v1698_v32  ;;  %v1696_v23 = vmul.f32 %v2373_v46, %v2985_v14  ;;  %2394 = vpow2.f32 %v1962_v42  ;;  %v3164_v32 = vadd.f32 %v3156_v54, %v2968_v21 }
 0x194   : > { %v2377_v8 = vpop.eup %2376  ;;  %1728 = vst [vmem:[%s2845_s4 + $0x68] sm:$0xff] %v1664_v17  ;;  %v1669_v2 = vmul.f32 %v2375_v61, %v2994_v11  ;;  %2396 = vpow2.f32 %v1994_v52  ;;  %v3168_v17 = vadd.f32 %v3156_v54, %v2975_v29 }
 0x195   : > { %v2379_v14 = vpop.eup %2378  ;;  %1760 = vst [vmem:[%s2845_s4 + $0x168] sm:$0xff] %v1696_v23  ;;  %v1701_v24 = vmul.f32 %v2377_v8, %v3003_v53  ;;  %2398 = vpow2.f32 %v1965_v5 }
 0x196   : > { %v2381_v25 = vpop.eup %2380  ;;  %1733 = vst [vmem:[%s2845_s4 + $0x90] sm:$0xff] %v1669_v2  ;;  %v1667_v11 = vmul.f32 %v2379_v14, %v3013_v55  ;;  %2400 = vpow2.f32 %v1997_v40  ;;  %v1998_v55 = vmul.f32 -1.442695, %v3136_v48 }
 0x197   : > { %v2383_v57 = vpop.eup %2382  ;;  %1765 = vst [vmem:[%s2845_s4 + $0x190] sm:$0xff] %v1701_v24  ;;  %v1699_v41 = vmul.f32 %v2381_v25, %v3024_v43  ;;  %2402 = vpow2.f32 %v1963_v56  ;;  %v1967_v24 = vmul.f32 -1.442695, %v3168_v17 }
 0x198   : > { %v2385_v53 = vpop.eup %2384  ;;  %1731 = vst [vmem:[%s2845_s4 + $0x80] sm:$0xff] %v1667_v11  ;;  %v1670_v42 = vmul.f32 %v2383_v57, %v3031_v10  ;;  %2404 = vpow2.f32 %v1995_v13  ;;  %v2001_v13 = vmul.f32 -1.442695, %v3164_v32  ;;  %v3180_v57 = vadd.f32 %v3156_v54, %v2987_v18 }
 0x199   : > { %v2387_v38 = vpop.eup %2386  ;;  %1763 = vst [vmem:[%s2845_s4 + $0x180] sm:$0xff] %v1699_v41  ;;  %v1702_v22 = vmul.f32 %v2385_v53, %v3038_v50  ;;  %2406 = vpow2.f32 %v1968_v58  ;;  %v3184_v53 = vadd.f32 %v3156_v54, %v2989_v49 }
 0x19a   : > { %v2389_v52 = vpop.eup %2388  ;;  %1734 = vst [vmem:[%s2845_s4 + $0x98] sm:$0xff] %v1670_v42  ;;  %v1668_v43 = vmul.f32 %v2387_v38, %v3045_v34  ;;  %2408 = vpow2.f32 %v2000_v51  ;;  %v3160_v34 = vadd.f32 %v3156_v54, %v2966_v19  ;;  %v3172_v19 = vadd.f32 %v3156_v54, %v2977_v47 }
 0x19b   : > { %v2391_v1 = vpop.eup %2390  ;;  %1766 = vst [vmem:[%s2845_s4 + $0x198] sm:$0xff] %v1702_v22  ;;  %v1508_v12 = vadd.f32 1.0, %v2389_v52  ;;  %2410 = vpow2.f32 %v1966_v59  ;;  %v3189_v38 = vadd.f32 %v3156_v54, %v2996_v3  ;;  %v3194_v52 = vadd.f32 %v3156_v54, %v2998_v45 }
 0x19c   : > { %v2393_v0 = vpop.eup %2392  ;;  %1732 = vst [vmem:[%s2845_s4 + $0x88] sm:$0xff] %v1668_v43  ;;  %v1481_v10 = vadd.f32 1.0, %v2391_v1  ;;  %2412 = vpow2.f32 %v1998_v55  ;;  %v1969_v21 = vmul.f32 -1.442695, %v3160_v34  ;;  %v1999_v47 = vmul.f32 -1.442695, %v3172_v19 }
 0x19d   : > { %v2395_v6 = vpop.eup %2394  ;;  %2414 = vrcp.f32 %v1508_v12  ;;  %v1513_v63 = vadd.f32 1.0, %v2393_v0  ;;  %v3201_v3 = vadd.f32 %v3156_v54, %v3005_v62  ;;  %v2004_v45 = vmul.f32 -1.442695, %v3184_v53 }
 0x19e   : > { %v2397_v28 = vpop.eup %2396  ;;  %2416 = vrcp.f32 %v1481_v10  ;;  %v1479_v50 = vadd.f32 1.0, %v2395_v6  ;;  %v3208_v12 = vadd.f32 %v3156_v54, %v3007_v36  ;;  %v1970_v62 = vmul.f32 -1.442695, %v3189_v38 }
 0x19f   : > { %v2399_v31 = vpop.eup %2398  ;;  %2418 = vrcp.f32 %v1513_v63  ;;  %v1511_v37 = vadd.f32 1.0, %v2397_v28  ;;  %v3215_v10 = vadd.f32 %v3156_v54, %v3015_v39  ;;  %v2002_v36 = vmul.f32 -1.442695, %v3194_v52 }
 0x1a0   : > { %v2401_v5 = vpop.eup %2400  ;;  %2420 = vrcp.f32 %v1479_v50  ;;  %v1482_v46 = vadd.f32 1.0, %v2399_v31  ;;  %v3222_v63 = vadd.f32 %v3156_v54, %v3017_v33  ;;  %v1973_v39 = vmul.f32 -1.442695, %v3201_v3 }
 0x1a1   : > { %v2403_v40 = vpop.eup %2402  ;;  %2422 = vrcp.f32 %v1511_v37  ;;  %v1514_v61 = vadd.f32 1.0, %v2401_v5  ;;  %v2005_v31 = vmul.f32 -1.442695, %v3208_v12 }
 0x1a2   : > { %v2405_v23 = vpop.eup %2404  ;;  %2424 = vrcp.f32 %v1482_v46  ;;  %v1480_v56 = vadd.f32 1.0, %v2403_v40 }
 0x1a3   : > { %v2407_v8 = vpop.eup %2406  ;;  %2426 = vrcp.f32 %v1514_v61  ;;  %v1512_v2 = vadd.f32 1.0, %v2405_v23 }
 0x1a4   : > { %v2409_v14 = vpop.eup %2408  ;;  %2428 = vrcp.f32 %v1480_v56  ;;  %v1485_v29 = vadd.f32 1.0, %v2407_v8 }
 0x1a5   : > { %v2411_v58 = vpop.eup %2410  ;;  %2430 = vrcp.f32 %v1512_v2  ;;  %v1517_v25 = vadd.f32 1.0, %v2409_v14 }
 0x1a6   : > { %v2413_v11 = vpop.eup %2412  ;;  %2432 = vrcp.f32 %v1485_v29  ;;  %v1483_v51 = vadd.f32 1.0, %v2411_v58 }
 0x1a7   : > { %v2415_v41 = vpop.eup %2414  ;;  %2434 = vrcp.f32 %v1517_v25  ;;  %v1515_v59 = vadd.f32 1.0, %v2413_v11 }
 0x1a8   : > { %v2417_v42 = vpop.eup %2416  ;;  %v1700_v55 = vmul.f32 %v2415_v41, %v3067_v16  ;;  %2436 = vrcp.f32 %v1483_v51  ;;  %v1972_v16 = vmul.f32 -1.442695, %v3180_v57 }
 0x1a9   : > { %v2419_v22 = vpop.eup %2418  ;;  %v1673_v18 = vmul.f32 %v2417_v42, %v3071_v27  ;;  %2438 = vrcp.f32 %v1515_v59 }
 0x1aa   : > { %v2421_v49 = vpop.eup %2420  ;;  %1764 = vst [vmem:[%s2845_s4 + $0x188] sm:$0xff] %v1700_v55  ;;  %v1705_v43 = vmul.f32 %v2419_v22, %v3075_v4  ;;  %2440 = vpow2.f32 %v1969_v21 }
 0x1ab   : > { %v2423_v1 = vpop.eup %2422  ;;  %1737 = vst [vmem:[%s2845_s4 + $0xb0] sm:$0xff] %v1673_v18  ;;  %v1671_v27 = vmul.f32 %v2421_v49, %v3079_v30  ;;  %2442 = vpow2.f32 %v2001_v13 }
 0x1ac   : > { %v2425_v4 = vpop.eup %2424  ;;  %1769 = vst [vmem:[%s2845_s4 + $0x1b0] sm:$0xff] %v1705_v43  ;;  %v1703_v0 = vmul.f32 %v2423_v1, %v3084_v7  ;;  %2444 = vpow2.f32 %v1967_v24 }
 0x1ad   : > { %v2427_v30 = vpop.eup %2426  ;;  %1735 = vst [vmem:[%s2845_s4 + $0xa0] sm:$0xff] %v1671_v27  ;;  %v1674_v6 = vmul.f32 %v2425_v4, %v3092_v44  ;;  %2446 = vpow2.f32 %v1999_v47 }
 0x1ae   : > { %v2429_v7 = vpop.eup %2428  ;;  %1767 = vst [vmem:[%s2845_s4 + $0x1a0] sm:$0xff] %v1703_v0  ;;  %v1706_v28 = vmul.f32 %v2427_v30, %v3097_v9  ;;  %2448 = vpow2.f32 %v1972_v16  ;;  %v1971_v9 = vmul.f32 -1.442695, %v3215_v10 }
 0x1af   : > { %v2431_v50 = vpop.eup %2430  ;;  %1738 = vst [vmem:[%s2845_s4 + $0xb8] sm:$0xff] %v1674_v6  ;;  %v1672_v44 = vmul.f32 %v2429_v7, %v3102_v35  ;;  %2450 = vpow2.f32 %v2004_v45  ;;  %v2003_v35 = vmul.f32 -1.442695, %v3222_v63 }
 0x1b0   : > { %v2433_v37 = vpop.eup %2432  ;;  %1770 = vst [vmem:[%s2845_s4 + $0x1b8] sm:$0xff] %v1706_v28  ;;  %v1704_v33 = vmul.f32 %v2431_v50, %v3108_v15  ;;  %2452 = vpow2.f32 %v1970_v62 }
 0x1b1   : > { %v2435_v54 = vpop.eup %2434  ;;  %1736 = vst [vmem:[%s2845_s4 + $0xa8] sm:$0xff] %v1672_v44  ;;  %v1677_v5 = vmul.f32 %v2433_v37, %v3115_v26  ;;  %2454 = vpow2.f32 %v2002_v36 }
 0x1b2   : > { %v2437_v46 = vpop.eup %2436  ;;  %1768 = vst [vmem:[%s2845_s4 + $0x1a8] sm:$0xff] %v1704_v33  ;;  %v1709_v40 = vmul.f32 %v2435_v54, %v3122_v60  ;;  %2456 = vpow2.f32 %v1973_v39 }
 0x1b3   : > { %v2439_v61 = vpop.eup %2438  ;;  %1741 = vst [vmem:[%s2845_s4 + $0xd0] sm:$0xff] %v1677_v5  ;;  %v1675_v15 = vmul.f32 %v2437_v46, %v3129_v20  ;;  %2458 = vpow2.f32 %v2005_v31 }
 0x1b4   : > { %v2441_v23 = vpop.eup %2440  ;;  %1773 = vst [vmem:[%s2845_s4 + $0x1d0] sm:$0xff] %v1709_v40  ;;  %v1707_v56 = vmul.f32 %v2439_v61, %v3136_v48  ;;  %2460 = vpow2.f32 %v1971_v9 }
 0x1b5   : > { %v2443_v26 = vpop.eup %2442  ;;  %1739 = vst [vmem:[%s2845_s4 + $0xc0] sm:$0xff] %v1675_v15  ;;  %v1486_v21 = vadd.f32 1.0, %v2441_v23  ;;  %2462 = vpow2.f32 %v2003_v35 }
 0x1b6   : > { %v2445_v8 = vpop.eup %2444  ;;  %1771 = vst [vmem:[%s2845_s4 + $0x1c0] sm:$0xff] %v1707_v56  ;;  %v1518_v2 = vadd.f32 1.0, %v2443_v26 }
 0x1b7   : > { %v2447_v13 = vpop.eup %2446  ;;  %2464 = vrcp.f32 %v1486_v21  ;;  %v1484_v60 = vadd.f32 1.0, %v2445_v8 }
 0x1b8   : > { %v2449_v14 = vpop.eup %2448  ;;  %2466 = vrcp.f32 %v1518_v2  ;;  %v1516_v29 = vadd.f32 1.0, %v2447_v13 }
 0x1b9   : > { %v2451_v20 = vpop.eup %2450  ;;  %2468 = vrcp.f32 %v1484_v60  ;;  %v1489_v24 = vadd.f32 1.0, %v2449_v14 }
 0x1ba   : > { %v2453_v58 = vpop.eup %2452  ;;  %2470 = vrcp.f32 %v1516_v29  ;;  %v1521_v48 = vadd.f32 1.0, %v2451_v20 }
 0x1bb   : > { %v2455_v25 = vpop.eup %2454  ;;  %2472 = vrcp.f32 %v1489_v24  ;;  %v1487_v47 = vadd.f32 1.0, %v2453_v58 }
 0x1bc   : > { %v2457_v11 = vpop.eup %2456  ;;  %2474 = vrcp.f32 %v1521_v48  ;;  %v1519_v51 = vadd.f32 1.0, %v2455_v25 }
 0x1bd   : > { %v2459_v41 = vpop.eup %2458  ;;  %2476 = vrcp.f32 %v1487_v47  ;;  %v1490_v59 = vadd.f32 1.0, %v2457_v11 }
 0x1be   : > { %v2461_v42 = vpop.eup %2460  ;;  %2478 = vrcp.f32 %v1519_v51  ;;  %v1522_v55 = vadd.f32 1.0, %v2459_v41 }
 0x1bf   : > { %v2463_v22 = vpop.eup %2462  ;;  %2480 = vrcp.f32 %v1490_v59  ;;  %v1488_v18 = vadd.f32 1.0, %v2461_v42 }
 0x1c0   : > { %2482 = vrcp.f32 %v1522_v55  ;;  %v1520_v49 = vadd.f32 1.0, %v2463_v22 }
 0x1c1   : > { %v2465_v43 = vpop.eup %2464  ;;  %2484 = vrcp.f32 %v1488_v18 }
 0x1c2   : > { %v2467_v16 = vpop.eup %2466  ;;  %v1678_v1 = vmul.f32 %v2465_v43, %v3160_v34  ;;  %2486 = vrcp.f32 %v1520_v49 }
 0x1c3   : > { %v2469_v27 = vpop.eup %2468  ;;  %v1710_v45 = vmul.f32 %v2467_v16, %v3164_v32 }
 0x1c4   : > { %v2471_v4 = vpop.eup %2470  ;;  %1742 = vst [vmem:[%s2845_s4 + $0xd8] sm:$0xff] %v1678_v1  ;;  %v1676_v0 = vmul.f32 %v2469_v27, %v3168_v17 }
 0x1c5   : > { %v2473_v62 = vpop.eup %2472  ;;  %1774 = vst [vmem:[%s2845_s4 + $0x1d8] sm:$0xff] %v1710_v45  ;;  %v1708_v30 = vmul.f32 %v2471_v4, %v3172_v19 }
 0x1c6   : > { %v2475_v6 = vpop.eup %2474  ;;  %1740 = vst [vmem:[%s2845_s4 + $0xc8] sm:$0xff] %v1676_v0  ;;  %v1681_v34 = vmul.f32 %v2473_v62, %v3180_v57 }
 0x1c7   : > { %v2477_v36 = vpop.eup %2476  ;;  %1772 = vst [vmem:[%s2845_s4 + $0x1c8] sm:$0xff] %v1708_v30  ;;  %v1713_v32 = vmul.f32 %v2475_v6, %v3184_v53 }
 0x1c8   : > { %v2479_v7 = vpop.eup %2478  ;;  %1745 = vst [vmem:[%s2845_s4 + $0xf0] sm:$0xff] %v1681_v34  ;;  %v1679_v17 = vmul.f32 %v2477_v36, %v3189_v38 }
 0x1c9   : > { %v2481_v28 = vpop.eup %2480  ;;  %1777 = vst [vmem:[%s2845_s4 + $0x1f0] sm:$0xff] %v1713_v32  ;;  %v1711_v19 = vmul.f32 %v2479_v7, %v3194_v52 }
 0x1ca   : > { %v2483_v39 = vpop.eup %2482  ;;  %1743 = vst [vmem:[%s2845_s4 + $0xe0] sm:$0xff] %v1679_v17  ;;  %v1682_v57 = vmul.f32 %v2481_v28, %v3201_v3 }
 0x1cb   : > { %v2485_v50 = vpop.eup %2484  ;;  %1775 = vst [vmem:[%s2845_s4 + $0x1e0] sm:$0xff] %v1711_v19  ;;  %v1714_v44 = vmul.f32 %v2483_v39, %v3208_v12 }
 0x1cc   : > { %v2487_v53 = vpop.eup %2486  ;;  %1746 = vst [vmem:[%s2845_s4 + $0xf8] sm:$0xff] %v1682_v57  ;;  %v1680_v31 = vmul.f32 %v2485_v50, %v3215_v10 }
 0x1cd   : > { %1778 = vst [vmem:[%s2845_s4 + $0x1f8] sm:$0xff] %v1714_v44  ;;  %v1712_v38 = vmul.f32 %v2487_v53, %v3222_v63 }
 0x1ce   : > { %1744 = vst [vmem:[%s2845_s4 + $0xe8] sm:$0xff] %v1680_v31 }
 0x1cf   : > { %1776 = vst [vmem:[%s2845_s4 + $0x1e8] sm:$0xff] %v1712_v38 }
 0x1d0 PF: > { %s15_s14 = sadd.s32 1, %s2575_s14   ;;  %s3289_s12 = smov %s2571_s13 }
 0x1d1   : > { %p12_p6 = scmp.ge.s32.totalorder %s15_s14, 6   ;;  %s3290_s13 = smov %s3292_s16 }
 0x1d3   :  { %14 = sbr.rel (!%p12_p6) target bundleno = 3 (0x3), region = 81 }
 0x1da   :  { %1807 = vsyncpa [#allocation3], 1 }
 0x1db   :  { %1809 = vsyncpa [#allocation3 + $0x1], 1 }
 0x1dc   :  { %1810 = vsyncpa [#allocation5], 1 }

// kernel: image_encoder_forward.6
= control target key start
LH: loop header
LB: loop body
LE: loop exit
PB: predicated region body
PF: predicated region fallthrough
CT: control target
= control target key end

     0   :  { %s2499_s12 = smov 0   ;;  %s2501_s13 = smov 0   ;;  %s2888_s0 = inlined_call_operand.vmem [shape: bf16[512,512], index: 0, kind: input, shape index: {}]   ;;  %s2889_s1 = inlined_call_operand.vmem [shape: bf16[512,128], index: 1, kind: input, shape index: {}]   ;;  %s2890_s2 = inlined_call_operand.vmem [shape: f32[1,128], index: 2, kind: input, shape index: {}]   ;;  %s2891_s3 = inlined_call_operand.vmem [shape: f32[512,128], index: 3, kind: output, shape index: {}]  }
   0x1   :  { %s2503_s14 = smov 0  }
   0x2 LB: > { %s32_s15 = sadd.s32 1, %s2473_s13  ;;  %p1812_p0 = scmp.ge.s32.totalorder %s2477_s14, 1  ;;  %s2477_s14 = sphi %s2503_s14, %s13_s14   ;;  %s2473_s13 = sphi %s2501_s13, %s2893_s13   ;;  %s2469_s12 = sphi %s2499_s12, %s2892_s12  }
   0x3   : > { %p34_p1 = scmp.ge.s32.totalorder %s32_s15, 2  ;;  %p191_p2 = scmp.lt.s32.totalorder %s2477_s14, 3 }
   0x5   : > { %s2895_s15 = smov (%p34_p1, %s32_s15), 0  ;;  %p192_p3 = pnand %p1812_p0, %p191_p2 }
   0x6   : > { %v2199_v0 = vld [vmem:[%s2889_s1 + $0x40] sm:$0xff] (!%p192_p3)   ;;  %v2203_v4 = vld [vmem:[%s2889_s1 + $0x48] sm:$0xff] (!%p192_p3)   ;;  %v2207_v8 = vld [vmem:[%s2889_s1 + $0x50] sm:$0xff] (!%p192_p3)   ;;  %s1813_s25 = sshll.u32 (!%p192_p3), %s2469_s12, 5 }
   0x7   : > { %195 = sbr.rel (%p192_p3) target bundleno = 411 (0x19b), region = 32  ;;  %v2200_v1 = vld [vmem:[%s2889_s1 + $0xc0] sm:$0xff] (!%p192_p3)   ;;  %1950 = vmatprep.subr.bf16.mxu0 (!%p192_p3), %v2199_v0  ;;  %v2204_v5 = vld [vmem:[%s2889_s1 + $0xc8] sm:$0xff] (!%p192_p3)   ;;  %v2208_v9 = vld [vmem:[%s2889_s1 + $0xd0] sm:$0xff] (!%p192_p3)   ;;  %p236_p4 = scmp.lt.s32.totalorder (!%p192_p3), %s1813_s25, 63 }
   0x8   : > { %v2201_v2 = vld [vmem:[%s2889_s1] sm:$0xff] (!%p192_p3)   ;;  %2062 = vmatprep.subr.bf16.mxu1 (!%p192_p3), %v2200_v1  ;;  %v2205_v6 = vld [vmem:[%s2889_s1 + $0x8] sm:$0xff] (!%p192_p3)   ;;  %v2209_v10 = vld [vmem:[%s2889_s1 + $0x10] sm:$0xff] (!%p192_p3)  }
   0x9   : > { %v2202_v3 = vld [vmem:[%s2889_s1 + $0x80] sm:$0xff] (!%p192_p3)   ;;  %1951 = vmatpush3.bf16.msra.mxu0 (!%p192_p3), %v2201_v2  ;;  %v2206_v7 = vld [vmem:[%s2889_s1 + $0x88] sm:$0xff] (!%p192_p3)   ;;  %v2210_v11 = vld [vmem:[%s2889_s1 + $0x90] sm:$0xff] (!%p192_p3)  }
   0xa   : > { %2063 = vmatpush3.bf16.msra.mxu1 (!%p192_p3), %v2202_v3  ;;  %1952 = vmatprep.subr.bf16.mxu0 (!%p192_p3), %v2203_v4  ;;  %v2211_v12 = vld [vmem:[%s2889_s1 + $0x58] sm:$0xff] (!%p192_p3)   ;;  %v2215_v16 = vld [vmem:[%s2889_s1 + $0x60] sm:$0xff] (!%p192_p3)   ;;  %v2219_v20 = vld [vmem:[%s2889_s1 + $0x68] sm:$0xff] (!%p192_p3)  }
   0xb   : > { %2064 = vmatprep.subr.bf16.mxu1 (!%p192_p3), %v2204_v5  ;;  %v2212_v13 = vld [vmem:[%s2889_s1 + $0xd8] sm:$0xff] (!%p192_p3)   ;;  %v2216_v17 = vld [vmem:[%s2889_s1 + $0xe0] sm:$0xff] (!%p192_p3)   ;;  %v2220_v21 = vld [vmem:[%s2889_s1 + $0xe8] sm:$0xff] (!%p192_p3)  }
   0xc   : > { %v2213_v14 = vld [vmem:[%s2889_s1 + $0x18] sm:$0xff] (!%p192_p3)   ;;  %v2217_v18 = vld [vmem:[%s2889_s1 + $0x20] sm:$0xff] (!%p192_p3)   ;;  %v2221_v22 = vld [vmem:[%s2889_s1 + $0x28] sm:$0xff] (!%p192_p3)  }
   0xd   : > { %1953 = vmatpush3.bf16.msra.mxu0 (!%p192_p3), %v2205_v6  ;;  %v2214_v15 = vld [vmem:[%s2889_s1 + $0x98] sm:$0xff] (!%p192_p3)   ;;  %v2218_v19 = vld [vmem:[%s2889_s1 + $0xa0] sm:$0xff] (!%p192_p3)   ;;  %v2222_v23 = vld [vmem:[%s2889_s1 + $0xa8] sm:$0xff] (!%p192_p3)  }
   0xe   : > { %2065 = vmatpush3.bf16.msra.mxu1 %v2206_v7  ;;  %1954 = vmatprep.subr.bf16.mxu0 %v2207_v8  ;;  %s2897_s25 = smov (!%p236_p4, %s1813_s25), 63  ;;  %v2223_v24 = vld [vmem:[%s2889_s1 + $0x70] sm:$0xff]   ;;  %v2227_v28 = vld [vmem:[%s2889_s1 + $0x78] sm:$0xff]  }
   0xf   : > { %2066 = vmatprep.subr.bf16.mxu1 %v2208_v9  ;;  %v2224_v25 = vld [vmem:[%s2889_s1 + $0xf0] sm:$0xff]   ;;  %s1949_s24 = sshll.u32 %s2897_s25, 4  ;;  %v2228_v29 = vld [vmem:[%s2889_s1 + $0xf8] sm:$0xff]   ;;  %s1817_s17 = sshll.u32 %s2897_s25, 3 }
  0x10   : > { %v2225_v26 = vld [vmem:[%s2889_s1 + $0x30] sm:$0xff]   ;;  %s2616_s12 = scalar_lea.vmem %s2888_s0, %s1949_s24  ;;  %v2229_v30 = vld [vmem:[%s2889_s1 + $0x38] sm:$0xff]   ;;  %s2728_s19 = scalar_lea.vmem %s2891_s3, %s1817_s17 }
  0x11   : > { %1955 = vmatpush3.bf16.msra.mxu0 %v2209_v10  ;;  %v2226_v27 = vld [vmem:[%s2889_s1 + $0xb0] sm:$0xff]   ;;  %v2230_v31 = vld [vmem:[%s2889_s1 + $0xb8] sm:$0xff]  }
  0x12   : > { %2067 = vmatpush3.bf16.msra.mxu1 %v2210_v11  ;;  %1956 = vmatprep.subr.bf16.mxu0 %v2211_v12  ;;  %v2231_v32 = vld [vmem:[%s2616_s12] ss:$16 sps:$4 sm:$0xff]   ;;  %v2233_v33 = vld [vmem:[%s2616_s12 + $0x4] ss:$16 sps:$4 sm:$0xff]   ;;  %v2234_v34 = vld [vmem:[%s2616_s12 + $0x8] ss:$16 sps:$4 sm:$0xff]  }
  0x13   : > { %2068 = vmatprep.subr.bf16.mxu1 %v2212_v13  ;;  %v2236_v35 = vld [vmem:[%s2616_s12 + $0xc] ss:$16 sps:$4 sm:$0xff]   ;;  %1008 = vmatprep.mubr.bf16.mxu0 %v2233_v33  ;;  %v2237_v36 = vld [vmem:[%s2616_s12 + $0x24] ss:$16 sps:$4 sm:$0xff]   ;;  %v2241_v38 = vld [vmem:[%s2616_s12 + $0x20] ss:$16 sps:$4 sm:$0xff]  }
  0x14   : > { %1169 = vmatprep.mubr.bf16.mxu1 %v2236_v35  ;;  %v2239_v37 = vld [vmem:[%s2616_s12 + $0x2c] ss:$16 sps:$4 sm:$0xff]   ;;  %v2242_v39 = vld [vmem:[%s2616_s12 + $0x28] ss:$16 sps:$4 sm:$0xff]   ;;  %v2243_v40 = vld [vmem:[%s2616_s12 + $0x44] ss:$16 sps:$4 sm:$0xff]  }
  0x15   : > { %1957 = vmatpush3.bf16.msra.mxu0 %v2213_v14  ;;  %v2245_v41 = vld [vmem:[%s2616_s12 + $0x4c] ss:$16 sps:$4 sm:$0xff]   ;;  %v2247_v42 = vld [vmem:[%s2616_s12 + $0x40] ss:$16 sps:$4 sm:$0xff]   ;;  %v2248_v43 = vld [vmem:[%s2616_s12 + $0x48] ss:$16 sps:$4 sm:$0xff]  }
  0x16   : > { %2069 = vmatpush3.bf16.msra.mxu1 %v2214_v15  ;;  %1958 = vmatprep.subr.bf16.mxu0 %v2215_v16  ;;  %v2249_v44 = vld [vmem:[%s2616_s12 + $0x64] ss:$16 sps:$4 sm:$0xff]   ;;  %v2251_v45 = vld [vmem:[%s2616_s12 + $0x6c] ss:$16 sps:$4 sm:$0xff]   ;;  %v2253_v46 = vld [vmem:[%s2616_s12 + $0x60] ss:$16 sps:$4 sm:$0xff]  }
  0x17   : > { %2070 = vmatprep.subr.bf16.mxu1 %v2216_v17  ;;  %v2254_v47 = vld [vmem:[%s2616_s12 + $0x68] ss:$16 sps:$4 sm:$0xff]   ;;  %v2255_v48 = vld [vmem:[%s2616_s12 + $0x84] ss:$16 sps:$4 sm:$0xff]   ;;  %v2257_v49 = vld [vmem:[%s2616_s12 + $0x8c] ss:$16 sps:$4 sm:$0xff]  }
  0x18   : > { %v2259_v50 = vld [vmem:[%s2616_s12 + $0x80] ss:$16 sps:$4 sm:$0xff]   ;;  %v2260_v51 = vld [vmem:[%s2616_s12 + $0x88] ss:$16 sps:$4 sm:$0xff]   ;;  %v2261_v52 = vld [vmem:[%s2616_s12 + $0xa4] ss:$16 sps:$4 sm:$0xff]  }
  0x19   : > { %1959 = vmatpush3.bf16.msra.mxu0 %v2217_v18  ;;  %v2263_v53 = vld [vmem:[%s2616_s12 + $0xac] ss:$16 sps:$4 sm:$0xff]   ;;  %v2265_v54 = vld [vmem:[%s2616_s12 + $0xa0] ss:$16 sps:$4 sm:$0xff]   ;;  %v2266_v55 = vld [vmem:[%s2616_s12 + $0xa8] ss:$16 sps:$4 sm:$0xff]  }
  0x1a   : > { %2071 = vmatpush3.bf16.msra.mxu1 %v2218_v19  ;;  %1960 = vmatprep.subr.bf16.mxu0 %v2219_v20  ;;  %v2267_v56 = vld [vmem:[%s2616_s12 + $0xc4] ss:$16 sps:$4 sm:$0xff]   ;;  %v2269_v57 = vld [vmem:[%s2616_s12 + $0xcc] ss:$16 sps:$4 sm:$0xff]   ;;  %v2271_v58 = vld [vmem:[%s2616_s12 + $0xc0] ss:$16 sps:$4 sm:$0xff]  }
  0x1b   : > { %2072 = vmatprep.subr.bf16.mxu1 %v2220_v21  ;;  %v2272_v59 = vld [vmem:[%s2616_s12 + $0xc8] ss:$16 sps:$4 sm:$0xff]   ;;  %v2273_v60 = vld [vmem:[%s2616_s12 + $0xe4] ss:$16 sps:$4 sm:$0xff]   ;;  %v2275_v61 = vld [vmem:[%s2616_s12 + $0xec] ss:$16 sps:$4 sm:$0xff]  }
  0x1c   : > { %v2277_v62 = vld [vmem:[%s2616_s12 + $0xe0] ss:$16 sps:$4 sm:$0xff]   ;;  %v2278_v63 = vld [vmem:[%s2616_s12 + $0xe8] ss:$16 sps:$4 sm:$0xff]   ;;  %v2279_v0 = vld [vmem:[%s2616_s12 + $0x104] ss:$16 sps:$4 sm:$0xff]  }
  0x1d   : > { %1961 = vmatpush3.bf16.msra.mxu0 %v2221_v22  ;;  %v2281_v1 = vld [vmem:[%s2616_s12 + $0x10c] ss:$16 sps:$4 sm:$0xff]   ;;  %v2283_v2 = vld [vmem:[%s2616_s12 + $0x100] ss:$16 sps:$4 sm:$0xff]   ;;  %v2284_v3 = vld [vmem:[%s2616_s12 + $0x108] ss:$16 sps:$4 sm:$0xff]  }
  0x1e   : > { %2073 = vmatpush3.bf16.msra.mxu1 %v2222_v23  ;;  %1962 = vmatprep.subr.bf16.mxu0 %v2223_v24  ;;  %v2285_v4 = vld [vmem:[%s2616_s12 + $0x124] ss:$16 sps:$4 sm:$0xff]   ;;  %v2287_v5 = vld [vmem:[%s2616_s12 + $0x12c] ss:$16 sps:$4 sm:$0xff]   ;;  %v2289_v6 = vld [vmem:[%s2616_s12 + $0x120] ss:$16 sps:$4 sm:$0xff]  }
  0x1f   : > { %2074 = vmatprep.subr.bf16.mxu1 %v2224_v25  ;;  %v2290_v7 = vld [vmem:[%s2616_s12 + $0x128] ss:$16 sps:$4 sm:$0xff]   ;;  %v2291_v8 = vld [vmem:[%s2616_s12 + $0x144] ss:$16 sps:$4 sm:$0xff]   ;;  %v2293_v9 = vld [vmem:[%s2616_s12 + $0x14c] ss:$16 sps:$4 sm:$0xff]  }
  0x20   : > { %v2295_v10 = vld [vmem:[%s2616_s12 + $0x140] ss:$16 sps:$4 sm:$0xff]   ;;  %v2296_v11 = vld [vmem:[%s2616_s12 + $0x148] ss:$16 sps:$4 sm:$0xff]   ;;  %v2297_v12 = vld [vmem:[%s2616_s12 + $0x164] ss:$16 sps:$4 sm:$0xff]  }
  0x21   : > { %1963 = vmatpush3.bf16.msra.mxu0 %v2225_v26  ;;  %v2299_v13 = vld [vmem:[%s2616_s12 + $0x16c] ss:$16 sps:$4 sm:$0xff]   ;;  %v2301_v14 = vld [vmem:[%s2616_s12 + $0x160] ss:$16 sps:$4 sm:$0xff]   ;;  %v2302_v15 = vld [vmem:[%s2616_s12 + $0x168] ss:$16 sps:$4 sm:$0xff]  }
  0x22   : > { %2075 = vmatpush3.bf16.msra.mxu1 %v2226_v27  ;;  %1964 = vmatprep.subr.bf16.mxu0 %v2227_v28  ;;  %v2303_v16 = vld [vmem:[%s2616_s12 + $0x184] ss:$16 sps:$4 sm:$0xff]   ;;  %v2305_v17 = vld [vmem:[%s2616_s12 + $0x18c] ss:$16 sps:$4 sm:$0xff]   ;;  %v2307_v18 = vld [vmem:[%s2616_s12 + $0x180] ss:$16 sps:$4 sm:$0xff]  }
  0x23   : > { %2076 = vmatprep.subr.bf16.mxu1 %v2228_v29  ;;  %v2308_v19 = vld [vmem:[%s2616_s12 + $0x188] ss:$16 sps:$4 sm:$0xff]   ;;  %v2309_v20 = vld [vmem:[%s2616_s12 + $0x1a4] ss:$16 sps:$4 sm:$0xff]   ;;  %v2311_v21 = vld [vmem:[%s2616_s12 + $0x1ac] ss:$16 sps:$4 sm:$0xff]  }
  0x24   : > { %v2313_v22 = vld [vmem:[%s2616_s12 + $0x1a0] ss:$16 sps:$4 sm:$0xff]   ;;  %v2314_v23 = vld [vmem:[%s2616_s12 + $0x1a8] ss:$16 sps:$4 sm:$0xff]   ;;  %v2315_v24 = vld [vmem:[%s2616_s12 + $0x1c4] ss:$16 sps:$4 sm:$0xff]  }
  0x25   : > { %1965 = vmatpush3.bf16.msra.mxu0 %v2229_v30  ;;  %v2317_v25 = vld [vmem:[%s2616_s12 + $0x1cc] ss:$16 sps:$4 sm:$0xff]   ;;  %v2319_v26 = vld [vmem:[%s2616_s12 + $0x1c0] ss:$16 sps:$4 sm:$0xff]   ;;  %v2320_v27 = vld [vmem:[%s2616_s12 + $0x1c8] ss:$16 sps:$4 sm:$0xff]  }
  0x26   : > { %2077 = vmatpush3.bf16.msra.mxu1 %v2230_v31  ;;  %v2321_v28 = vld [vmem:[%s2616_s12 + $0x1e4] ss:$16 sps:$4 sm:$0xff]   ;;  %v2323_v29 = vld [vmem:[%s2616_s12 + $0x1ec] ss:$16 sps:$4 sm:$0xff]   ;;  %v2325_v30 = vld [vmem:[%s2616_s12 + $0x1e0] ss:$16 sps:$4 sm:$0xff]  }
  0x27   : > { %v2326_v31 = vld [vmem:[%s2616_s12 + $0x1e8] ss:$16 sps:$4 sm:$0xff]  }
  0x28   : > { %1009 = vmatmul.mubr.bf16.vlgmr.msra.gmra.mrb[0].mxu0 %v2231_v32 }
  0x29   : > { %1170 = vmatmul.mubr.bf16.vlgmr.msra.gmra.mrb[0].mxu1 %v2234_v34  ;;  %1016 = vmatprep.mubr.bf16.mxu0 %v2237_v36 }
  0x2a   : > { %1177 = vmatprep.mubr.bf16.mxu1 %v2239_v37 }
  0x30   : > { %1017 = vmatmul.mubr.bf16.gmra.mrb[4].mxu0 %v2241_v38 }
  0x31   : > { %1178 = vmatmul.mubr.bf16.gmra.mrb[4].mxu1 %v2242_v39  ;;  %1024 = vmatprep.mubr.bf16.mxu0 %v2243_v40 }
  0x32   : > { %1185 = vmatprep.mubr.bf16.mxu1 %v2245_v41 }
  0x38   : > { %1025 = vmatmul.mubr.bf16.gmra.mrb[8].mxu0 %v2247_v42 }
  0x39   : > { %1186 = vmatmul.mubr.bf16.gmra.mrb[8].mxu1 %v2248_v43  ;;  %1032 = vmatprep.mubr.bf16.mxu0 %v2249_v44 }
  0x3a   : > { %1193 = vmatprep.mubr.bf16.mxu1 %v2251_v45  ;;  %v2691_v45 = vld [vmem:[%s2890_s2] ss:$0 sm:$0xff] }
  0x40   : > { %1033 = vmatmul.mubr.bf16.gmra.mrb[12].mxu0 %v2253_v46 }
  0x41   : > { %1194 = vmatmul.mubr.bf16.gmra.mrb[12].mxu1 %v2254_v47  ;;  %1040 = vmatprep.mubr.bf16.mxu0 %v2255_v48 }
  0x42   : > { %1201 = vmatprep.mubr.bf16.mxu1 %v2257_v49 }
  0x48   : > { %1041 = vmatmul.mubr.bf16.gmra.mrb[16].mxu0 %v2259_v50 }
  0x49   : > { %1202 = vmatmul.mubr.bf16.gmra.mrb[16].mxu1 %v2260_v51  ;;  %1048 = vmatprep.mubr.bf16.mxu0 %v2261_v52 }
  0x4a   : > { %1209 = vmatprep.mubr.bf16.mxu1 %v2263_v53 }
  0x50   : > { %1049 = vmatmul.mubr.bf16.gmra.mrb[20].mxu0 %v2265_v54 }
  0x51   : > { %1210 = vmatmul.mubr.bf16.gmra.mrb[20].mxu1 %v2266_v55  ;;  %1056 = vmatprep.mubr.bf16.mxu0 %v2267_v56 }
  0x52   : > { %1217 = vmatprep.mubr.bf16.mxu1 %v2269_v57 }
  0x58   : > { %1057 = vmatmul.mubr.bf16.gmra.mrb[24].mxu0 %v2271_v58 }
  0x59   : > { %1218 = vmatmul.mubr.bf16.gmra.mrb[24].mxu1 %v2272_v59  ;;  %1064 = vmatprep.mubr.bf16.mxu0 %v2273_v60 }
  0x5a   : > { %1225 = vmatprep.mubr.bf16.mxu1 %v2275_v61 }
  0x60   : > { %1065 = vmatmul.mubr.bf16.gmra.mrb[28].mxu0 %v2277_v62 }
  0x61   : > { %1226 = vmatmul.mubr.bf16.gmra.mrb[28].mxu1 %v2278_v63  ;;  %1072 = vmatprep.mubr.bf16.mxu0 %v2279_v0 }
  0x62   : > { %1233 = vmatprep.mubr.bf16.mxu1 %v2281_v1 }
  0x68   : > { %1073 = vmatmul.mubr.bf16.gmra.mrb[32].mxu0 %v2283_v2 }
  0x69   : > { %1234 = vmatmul.mubr.bf16.gmra.mrb[32].mxu1 %v2284_v3  ;;  %1080 = vmatprep.mubr.bf16.mxu0 %v2285_v4 }
  0x6a   : > { %1241 = vmatprep.mubr.bf16.mxu1 %v2287_v5 }
  0x70   : > { %1081 = vmatmul.mubr.bf16.gmra.mrb[36].mxu0 %v2289_v6 }
  0x71   : > { %1242 = vmatmul.mubr.bf16.gmra.mrb[36].mxu1 %v2290_v7  ;;  %1088 = vmatprep.mubr.bf16.mxu0 %v2291_v8 }
  0x72   : > { %1249 = vmatprep.mubr.bf16.mxu1 %v2293_v9 }
  0x78   : > { %1089 = vmatmul.mubr.bf16.gmra.mrb[40].mxu0 %v2295_v10 }
  0x79   : > { %1250 = vmatmul.mubr.bf16.gmra.mrb[40].mxu1 %v2296_v11  ;;  %1096 = vmatprep.mubr.bf16.mxu0 %v2297_v12 }
  0x7a   : > { %1257 = vmatprep.mubr.bf16.mxu1 %v2299_v13 }
  0x80   : > { %1097 = vmatmul.mubr.bf16.gmra.mrb[44].mxu0 %v2301_v14 }
  0x81   : > { %1258 = vmatmul.mubr.bf16.gmra.mrb[44].mxu1 %v2302_v15  ;;  %1104 = vmatprep.mubr.bf16.mxu0 %v2303_v16 }
  0x82   : > { %1265 = vmatprep.mubr.bf16.mxu1 %v2305_v17 }
  0x88   : > { %1105 = vmatmul.mubr.bf16.gmra.mrb[48].mxu0 %v2307_v18 }
  0x89   : > { %1266 = vmatmul.mubr.bf16.gmra.mrb[48].mxu1 %v2308_v19  ;;  %1112 = vmatprep.mubr.bf16.mxu0 %v2309_v20 }
  0x8a   : > { %1273 = vmatprep.mubr.bf16.mxu1 %v2311_v21 }
  0x90   : > { %1113 = vmatmul.mubr.bf16.gmra.mrb[52].mxu0 %v2313_v22 }
  0x91   : > { %1274 = vmatmul.mubr.bf16.gmra.mrb[52].mxu1 %v2314_v23  ;;  %1120 = vmatprep.mubr.bf16.mxu0 %v2315_v24 }
  0x92   : > { %1281 = vmatprep.mubr.bf16.mxu1 %v2317_v25 }
  0x98   : > { %1121 = vmatmul.mubr.bf16.gmra.mrb[56].mxu0 %v2319_v26 }
  0x99   : > { %1282 = vmatmul.mubr.bf16.gmra.mrb[56].mxu1 %v2320_v27  ;;  %1128 = vmatprep.mubr.bf16.mxu0 %v2321_v28 }
  0x9a   : > { %1289 = vmatprep.mubr.bf16.mxu1 %v2323_v29 }
  0xa0   : > { %1129 = vmatmul.mubr.bf16.gmra.mrb[60].mxu0 %v2325_v30 }
  0xa1   : > { %1290 = vmatmul.mubr.bf16.gmra.mrb[60].mxu1 %v2326_v31 }
  0xfb   : > { %v1966_v32 = vpop.f32.mrb[0].mxu0 }
  0xfc   : > { %v2078_v33 = vpop.f32.mrb[0].mxu1  ;;  %v1967_v34 = vpop.f32.mrb[1].mxu0 }
  0xfd   : > { %v1968_v35 = vadd.f32 %v1967_v34, %v1966_v32  ;;  %v2079_v36 = vpop.f32.mrb[1].mxu1  ;;  %v1969_v37 = vpop.f32.mrb[2].mxu0 }
  0xfe   : > { %v2080_v38 = vadd.f32 %v2079_v36, %v2078_v33  ;;  %v2081_v39 = vpop.f32.mrb[2].mxu1  ;;  %v1970_v40 = vpop.f32.mrb[3].mxu0 }
  0xff   : > { %v1971_v41 = vadd.f32 %v1970_v40, %v1969_v37  ;;  %v2082_v42 = vpop.f32.mrb[3].mxu1 }
 0x100   : > { %v1172_v43 = vadd.f32 %v2080_v38, %v1968_v35  ;;  %v2083_v44 = vadd.f32 %v2082_v42, %v2081_v39 }
 0x102   : > { %v1175_v46 = vadd.f32 %v2083_v44, %v1971_v41  ;;  %v2694_v48 = vadd.f32 %v2691_v45, %v1172_v43 }
 0x103   : > { %v1972_v47 = vpop.f32.mrb[4].mxu0 }
 0x104   : > { %v2084_v49 = vpop.f32.mrb[4].mxu1  ;;  %v1973_v50 = vpop.f32.mrb[5].mxu0  ;;  %v1915_v54 = vmul.f32 -1.442695, %v2694_v48  ;;  %v2698_v55 = vadd.f32 %v2691_v45, %v1175_v46 }
 0x105   : > { %v1974_v51 = vadd.f32 %v1973_v50, %v1972_v47  ;;  %v2085_v52 = vpop.f32.mrb[5].mxu1  ;;  %v1975_v53 = vpop.f32.mrb[6].mxu0 }
 0x106   : > { %v2086_v56 = vadd.f32 %v2085_v52, %v2084_v49  ;;  %v2087_v57 = vpop.f32.mrb[6].mxu1  ;;  %v1976_v58 = vpop.f32.mrb[7].mxu0  ;;  %2327 = vpow2.f32 %v1915_v54  ;;  %v1916_v61 = vmul.f32 -1.442695, %v2698_v55 }
 0x107   : > { %v1977_v59 = vadd.f32 %v1976_v58, %v1975_v53  ;;  %v2088_v60 = vpop.f32.mrb[7].mxu1 }
 0x108   : > { %v1180_v62 = vadd.f32 %v2086_v56, %v1974_v51  ;;  %v2089_v63 = vadd.f32 %v2088_v60, %v2087_v57  ;;  %2329 = vpow2.f32 %v1916_v61 }
 0x10a   : > { %v1183_v0 = vadd.f32 %v2089_v63, %v1977_v59  ;;  %v2702_v2 = vadd.f32 %v2691_v45, %v1180_v62 }
 0x10b   : > { %v1978_v1 = vpop.f32.mrb[8].mxu0 }
 0x10c   : > { %v2090_v3 = vpop.f32.mrb[8].mxu1  ;;  %v1979_v4 = vpop.f32.mrb[9].mxu0  ;;  %v1917_v8 = vmul.f32 -1.442695, %v2702_v2  ;;  %v2706_v9 = vadd.f32 %v2691_v45, %v1183_v0 }
 0x10d   : > { %v1980_v5 = vadd.f32 %v1979_v4, %v1978_v1  ;;  %v2091_v6 = vpop.f32.mrb[9].mxu1  ;;  %v1981_v7 = vpop.f32.mrb[10].mxu0 }
 0x10e   : > { %v2092_v10 = vadd.f32 %v2091_v6, %v2090_v3  ;;  %v2093_v11 = vpop.f32.mrb[10].mxu1  ;;  %v1982_v12 = vpop.f32.mrb[11].mxu0  ;;  %2331 = vpow2.f32 %v1917_v8  ;;  %v1918_v15 = vmul.f32 -1.442695, %v2706_v9 }
 0x10f   : > { %v1983_v13 = vadd.f32 %v1982_v12, %v1981_v7  ;;  %v2094_v14 = vpop.f32.mrb[11].mxu1 }
 0x110   : > { %v1188_v16 = vadd.f32 %v2092_v10, %v1980_v5  ;;  %v2095_v17 = vadd.f32 %v2094_v14, %v2093_v11  ;;  %v2328_v18 = vpop.eup %2327  ;;  %2333 = vpow2.f32 %v1918_v15 }
 0x111   : > { %v1532_v20 = vadd.f32 1.0, %v2328_v18 }
 0x112   : > { %v1191_v19 = vadd.f32 %v2095_v17, %v1983_v13  ;;  %v2330_v22 = vpop.eup %2329  ;;  %v2710_v23 = vadd.f32 %v2691_v45, %v1188_v16 }
 0x113   : > { %v1984_v21 = vpop.f32.mrb[12].mxu0  ;;  %2335 = vrcp.f32 %v1532_v20  ;;  %v1533_v26 = vadd.f32 1.0, %v2330_v22 }
 0x114   : > { %v2096_v24 = vpop.f32.mrb[12].mxu1  ;;  %v1985_v25 = vpop.f32.mrb[13].mxu0  ;;  %v1919_v30 = vmul.f32 -1.442695, %v2710_v23  ;;  %v2714_v31 = vadd.f32 %v2691_v45, %v1191_v19 }
 0x115   : > { %v1986_v27 = vadd.f32 %v1985_v25, %v1984_v21  ;;  %v2097_v28 = vpop.f32.mrb[13].mxu1  ;;  %v1987_v29 = vpop.f32.mrb[14].mxu0  ;;  %2337 = vrcp.f32 %v1533_v26 }
 0x116   : > { %v2098_v32 = vadd.f32 %v2097_v28, %v2096_v24  ;;  %v2099_v33 = vpop.f32.mrb[14].mxu1  ;;  %v1988_v34 = vpop.f32.mrb[15].mxu0  ;;  %2339 = vpow2.f32 %v1919_v30  ;;  %v1920_v37 = vmul.f32 -1.442695, %v2714_v31 }
 0x117   : > { %v1989_v35 = vadd.f32 %v1988_v34, %v1987_v29  ;;  %v2100_v36 = vpop.f32.mrb[15].mxu1 }
 0x118   : > { %v1196_v38 = vadd.f32 %v2098_v32, %v1986_v27  ;;  %v2101_v39 = vadd.f32 %v2100_v36, %v2099_v33  ;;  %v2332_v40 = vpop.eup %2331  ;;  %2341 = vpow2.f32 %v1920_v37 }
 0x119   : > { %v1534_v42 = vadd.f32 1.0, %v2332_v40 }
 0x11a   : > { %v1199_v41 = vadd.f32 %v2101_v39, %v1989_v35  ;;  %v2334_v44 = vpop.eup %2333  ;;  %v2719_v46 = vadd.f32 %v2691_v45, %v1196_v38 }
 0x11b   : > { %v1990_v43 = vpop.f32.mrb[16].mxu0  ;;  %2343 = vrcp.f32 %v1534_v42  ;;  %v1535_v50 = vadd.f32 1.0, %v2334_v44 }
 0x11c   : > { %v2102_v47 = vpop.f32.mrb[16].mxu1  ;;  %v1991_v49 = vpop.f32.mrb[17].mxu0  ;;  %v1921_v54 = vmul.f32 -1.442695, %v2719_v46  ;;  %v2723_v56 = vadd.f32 %v2691_v45, %v1199_v41 }
 0x11d   : > { %v1992_v51 = vadd.f32 %v1991_v49, %v1990_v43  ;;  %v2103_v52 = vpop.f32.mrb[17].mxu1  ;;  %v1993_v53 = vpop.f32.mrb[18].mxu0  ;;  %2345 = vrcp.f32 %v1535_v50 }
 0x11e   : > { %v2104_v57 = vadd.f32 %v2103_v52, %v2102_v47  ;;  %v2105_v58 = vpop.f32.mrb[18].mxu1  ;;  %v1994_v59 = vpop.f32.mrb[19].mxu0  ;;  %2347 = vpow2.f32 %v1921_v54  ;;  %v1922_v0 = vmul.f32 -1.442695, %v2723_v56 }
 0x11f   : > { %v2336_v60 = vpop.eup %2335  ;;  %v1995_v61 = vadd.f32 %v1994_v59, %v1993_v53  ;;  %v2106_v62 = vpop.f32.mrb[19].mxu1 }
 0x120   : > { %v1628_v63 = vmul.f32 %v2336_v60, %v2694_v48  ;;  %v1204_v1 = vadd.f32 %v2104_v57, %v1992_v51  ;;  %v2338_v3 = vpop.eup %2337  ;;  %v2107_v4 = vadd.f32 %v2106_v62, %v2105_v58  ;;  %2349 = vpow2.f32 %v1922_v0 }
 0x121   : > { %v2340_v5 = vpop.eup %2339  ;;  %v1629_v6 = vmul.f32 %v2338_v3, %v2698_v55 }
 0x122   : > { %1660 = vst [vmem:[%s2728_s19] sm:$0xff] %v1628_v63  ;;  %v1536_v7 = vadd.f32 1.0, %v2340_v5  ;;  %v1207_v8 = vadd.f32 %v2107_v4, %v1995_v61  ;;  %v2342_v11 = vpop.eup %2341  ;;  %v2736_v12 = vadd.f32 %v2691_v45, %v1204_v1 }
 0x123   : > { %v1996_v10 = vpop.f32.mrb[20].mxu0  ;;  %1661 = vst [vmem:[%s2728_s19 + $0x8] sm:$0xff] %v1629_v6  ;;  %v1537_v14 = vadd.f32 1.0, %v2342_v11 }
 0x124   : > { %v2108_v48 = vpop.f32.mrb[20].mxu1  ;;  %v1997_v13 = vpop.f32.mrb[21].mxu0  ;;  %2351 = vrcp.f32 %v1536_v7  ;;  %v1923_v18 = vmul.f32 -1.442695, %v2736_v12  ;;  %v2740_v22 = vadd.f32 %v2691_v45, %v1207_v8 }
 0x125   : > { %v1998_v15 = vadd.f32 %v1997_v13, %v1996_v10  ;;  %v2109_v16 = vpop.f32.mrb[21].mxu1  ;;  %v1999_v17 = vpop.f32.mrb[22].mxu0  ;;  %2353 = vrcp.f32 %v1537_v14 }
 0x126   : > { %v2110_v55 = vadd.f32 %v2109_v16, %v2108_v48  ;;  %v2111_v19 = vpop.f32.mrb[22].mxu1  ;;  %v2000_v20 = vpop.f32.mrb[23].mxu0  ;;  %2355 = vpow2.f32 %v1923_v18  ;;  %v1924_v30 = vmul.f32 -1.442695, %v2740_v22 }
 0x127   : > { %v2344_v21 = vpop.eup %2343  ;;  %v2001_v24 = vadd.f32 %v2000_v20, %v1999_v17  ;;  %v2112_v25 = vpop.f32.mrb[23].mxu1 }
 0x128   : > { %v1630_v26 = vmul.f32 %v2344_v21, %v2702_v2  ;;  %v1212_v27 = vadd.f32 %v2110_v55, %v1998_v15  ;;  %v2113_v28 = vadd.f32 %v2112_v25, %v2111_v19  ;;  %v2346_v29 = vpop.eup %2345  ;;  %2357 = vpow2.f32 %v1924_v30 }
 0x129   : > { %v2348_v32 = vpop.eup %2347  ;;  %v1631_v33 = vmul.f32 %v2346_v29, %v2706_v9 }
 0x12a   : > { %1662 = vst [vmem:[%s2728_s19 + $0x10] sm:$0xff] %v1630_v26  ;;  %v1215_v34 = vadd.f32 %v2113_v28, %v2001_v24  ;;  %v1538_v35 = vadd.f32 1.0, %v2348_v32  ;;  %v2350_v37 = vpop.eup %2349  ;;  %v2748_v38 = vadd.f32 %v2691_v45, %v1212_v27 }
 0x12b   : > { %v2002_v36 = vpop.f32.mrb[24].mxu0  ;;  %1663 = vst [vmem:[%s2728_s19 + $0x18] sm:$0xff] %v1631_v33  ;;  %v1539_v40 = vadd.f32 1.0, %v2350_v37 }
 0x12c   : > { %v2114_v2 = vpop.f32.mrb[24].mxu1  ;;  %v2003_v39 = vpop.f32.mrb[25].mxu0  ;;  %2359 = vrcp.f32 %v1538_v35  ;;  %v1925_v44 = vmul.f32 -1.442695, %v2748_v38  ;;  %v2752_v9 = vadd.f32 %v2691_v45, %v1215_v34 }
 0x12d   : > { %v2004_v41 = vadd.f32 %v2003_v39, %v2002_v36  ;;  %v2115_v42 = vpop.f32.mrb[25].mxu1  ;;  %v2005_v43 = vpop.f32.mrb[26].mxu0  ;;  %2361 = vrcp.f32 %v1539_v40 }
 0x12e   : > { %v2116_v47 = vadd.f32 %v2115_v42, %v2114_v2  ;;  %v2117_v49 = vpop.f32.mrb[26].mxu1  ;;  %v2006_v50 = vpop.f32.mrb[27].mxu0  ;;  %2363 = vpow2.f32 %v1925_v44  ;;  %v1926_v57 = vmul.f32 -1.442695, %v2752_v9 }
 0x12f   : > { %v2352_v51 = vpop.eup %2351  ;;  %v2007_v52 = vadd.f32 %v2006_v50, %v2005_v43  ;;  %v2118_v53 = vpop.f32.mrb[27].mxu1 }
 0x130   : > { %v1632_v54 = vmul.f32 %v2352_v51, %v2710_v23  ;;  %v1220_v58 = vadd.f32 %v2116_v47, %v2004_v41  ;;  %v2354_v59 = vpop.eup %2353  ;;  %v2119_v60 = vadd.f32 %v2118_v53, %v2117_v49  ;;  %2365 = vpow2.f32 %v1926_v57 }
 0x131   : > { %v2356_v61 = vpop.eup %2355  ;;  %v1633_v62 = vmul.f32 %v2354_v59, %v2714_v31 }
 0x132   : > { %1664 = vst [vmem:[%s2728_s19 + $0x20] sm:$0xff] %v1632_v54  ;;  %v1540_v63 = vadd.f32 1.0, %v2356_v61  ;;  %v1223_v0 = vadd.f32 %v2119_v60, %v2007_v52  ;;  %v2760_v3 = vadd.f32 %v2691_v45, %v1220_v58  ;;  %v2358_v5 = vpop.eup %2357 }
 0x133   : > { %v2008_v1 = vpop.f32.mrb[28].mxu0  ;;  %1665 = vst [vmem:[%s2728_s19 + $0x28] sm:$0xff] %v1633_v62  ;;  %v1541_v10 = vadd.f32 1.0, %v2358_v5 }
 0x134   : > { %v2120_v4 = vpop.f32.mrb[28].mxu1  ;;  %v2009_v23 = vpop.f32.mrb[29].mxu0  ;;  %2367 = vrcp.f32 %v1540_v63  ;;  %v1927_v11 = vmul.f32 -1.442695, %v2760_v3  ;;  %v2764_v15 = vadd.f32 %v2691_v45, %v1223_v0 }
 0x135   : > { %v2010_v6 = vadd.f32 %v2009_v23, %v2008_v1  ;;  %v2121_v7 = vpop.f32.mrb[29].mxu1  ;;  %v2011_v8 = vpop.f32.mrb[30].mxu0  ;;  %2369 = vrcp.f32 %v1541_v10 }
 0x136   : > { %v2122_v31 = vadd.f32 %v2121_v7, %v2120_v4  ;;  %v2123_v48 = vpop.f32.mrb[30].mxu1  ;;  %v2012_v13 = vpop.f32.mrb[31].mxu0  ;;  %2371 = vpow2.f32 %v1927_v11  ;;  %v1928_v21 = vmul.f32 -1.442695, %v2764_v15 }
 0x137   : > { %v2360_v14 = vpop.eup %2359  ;;  %v2013_v16 = vadd.f32 %v2012_v13, %v2011_v8  ;;  %v2124_v17 = vpop.f32.mrb[31].mxu1 }
 0x138   : > { %v1634_v18 = vmul.f32 %v2360_v14, %v2719_v46  ;;  %v1228_v55 = vadd.f32 %v2122_v31, %v2010_v6  ;;  %v2125_v19 = vadd.f32 %v2124_v17, %v2123_v48  ;;  %v2362_v20 = vpop.eup %2361  ;;  %2373 = vpow2.f32 %v1928_v21 }
 0x139   : > { %v2364_v24 = vpop.eup %2363  ;;  %v1635_v25 = vmul.f32 %v2362_v20, %v2723_v56 }
 0x13a   : > { %1666 = vst [vmem:[%s2728_s19 + $0x30] sm:$0xff] %v1634_v18  ;;  %v1231_v26 = vadd.f32 %v2125_v19, %v2013_v16  ;;  %v1542_v27 = vadd.f32 1.0, %v2364_v24  ;;  %v2366_v29 = vpop.eup %2365  ;;  %v2772_v30 = vadd.f32 %v2691_v45, %v1228_v55 }
 0x13b   : > { %v2014_v28 = vpop.f32.mrb[32].mxu0  ;;  %1667 = vst [vmem:[%s2728_s19 + $0x38] sm:$0xff] %v1635_v25  ;;  %v1543_v33 = vadd.f32 1.0, %v2366_v29 }
 0x13c   : > { %v2126_v46 = vpop.f32.mrb[32].mxu1  ;;  %v2015_v32 = vpop.f32.mrb[33].mxu0  ;;  %2375 = vrcp.f32 %v1542_v27  ;;  %v1929_v37 = vmul.f32 -1.442695, %v2772_v30  ;;  %v2776_v56 = vadd.f32 %v2691_v45, %v1231_v26 }
 0x13d   : > { %v2016_v34 = vadd.f32 %v2015_v32, %v2014_v28  ;;  %v2127_v35 = vpop.f32.mrb[33].mxu1  ;;  %v2017_v36 = vpop.f32.mrb[34].mxu0  ;;  %2377 = vrcp.f32 %v1543_v33 }
 0x13e   : > { %v2128_v2 = vadd.f32 %v2127_v35, %v2126_v46  ;;  %v2129_v39 = vpop.f32.mrb[34].mxu1  ;;  %v2018_v40 = vpop.f32.mrb[35].mxu0  ;;  %2379 = vpow2.f32 %v1929_v37  ;;  %v1930_v47 = vmul.f32 -1.442695, %v2776_v56 }
 0x13f   : > { %v2368_v41 = vpop.eup %2367  ;;  %v2019_v42 = vadd.f32 %v2018_v40, %v2017_v36  ;;  %v2130_v43 = vpop.f32.mrb[35].mxu1 }
 0x140   : > { %v1636_v44 = vmul.f32 %v2368_v41, %v2736_v12  ;;  %v1236_v49 = vadd.f32 %v2128_v2, %v2016_v34  ;;  %v2131_v50 = vadd.f32 %v2130_v43, %v2129_v39  ;;  %v2370_v51 = vpop.eup %2369  ;;  %2381 = vpow2.f32 %v1930_v47 }
 0x141   : > { %v2372_v52 = vpop.eup %2371  ;;  %v1637_v53 = vmul.f32 %v2370_v51, %v2740_v22 }
 0x142   : > { %1668 = vst [vmem:[%s2728_s19 + $0x40] sm:$0xff] %v1636_v44  ;;  %v1239_v54 = vadd.f32 %v2131_v50, %v2019_v42  ;;  %v1544_v58 = vadd.f32 1.0, %v2372_v52  ;;  %v2783_v59 = vadd.f32 %v2691_v45, %v1236_v49  ;;  %v2374_v61 = vpop.eup %2373 }
 0x143   : > { %v2020_v57 = vpop.f32.mrb[36].mxu0  ;;  %1669 = vst [vmem:[%s2728_s19 + $0x48] sm:$0xff] %v1637_v53  ;;  %v1545_v1 = vadd.f32 1.0, %v2374_v61 }
 0x144   : > { %v2132_v60 = vpop.f32.mrb[36].mxu1  ;;  %v2021_v12 = vpop.f32.mrb[37].mxu0  ;;  %2383 = vrcp.f32 %v1544_v58  ;;  %v1931_v4 = vmul.f32 -1.442695, %v2783_v59  ;;  %v2788_v7 = vadd.f32 %v2691_v45, %v1239_v54 }
 0x145   : > { %v2022_v62 = vadd.f32 %v2021_v12, %v2020_v57  ;;  %v2133_v63 = vpop.f32.mrb[37].mxu1  ;;  %v2023_v0 = vpop.f32.mrb[38].mxu0  ;;  %2385 = vrcp.f32 %v1545_v1 }
 0x146   : > { %v2134_v23 = vadd.f32 %v2133_v63, %v2132_v60  ;;  %v2135_v22 = vpop.f32.mrb[38].mxu1  ;;  %v2024_v5 = vpop.f32.mrb[39].mxu0  ;;  %2387 = vpow2.f32 %v1931_v4  ;;  %v1932_v14 = vmul.f32 -1.442695, %v2788_v7 }
 0x147   : > { %v2376_v6 = vpop.eup %2375  ;;  %v2025_v8 = vadd.f32 %v2024_v5, %v2023_v0  ;;  %v2136_v10 = vpop.f32.mrb[39].mxu1 }
 0x148   : > { %v1638_v11 = vmul.f32 %v2376_v6, %v2748_v38  ;;  %v1244_v31 = vadd.f32 %v2134_v23, %v2022_v62  ;;  %v2137_v48 = vadd.f32 %v2136_v10, %v2135_v22  ;;  %v2378_v13 = vpop.eup %2377  ;;  %2389 = vpow2.f32 %v1932_v14 }
 0x149   : > { %v2380_v16 = vpop.eup %2379  ;;  %v1639_v17 = vmul.f32 %v2378_v13, %v2752_v9 }
 0x14a   : > { %1670 = vst [vmem:[%s2728_s19 + $0x50] sm:$0xff] %v1638_v11  ;;  %v1247_v18 = vadd.f32 %v2137_v48, %v2025_v8  ;;  %v1546_v55 = vadd.f32 1.0, %v2380_v16  ;;  %v2382_v20 = vpop.eup %2381  ;;  %v2796_v21 = vadd.f32 %v2691_v45, %v1244_v31 }
 0x14b   : > { %v2026_v19 = vpop.f32.mrb[40].mxu0  ;;  %1671 = vst [vmem:[%s2728_s19 + $0x58] sm:$0xff] %v1639_v17  ;;  %v1547_v25 = vadd.f32 1.0, %v2382_v20 }
 0x14c   : > { %v2138_v38 = vpop.f32.mrb[40].mxu1  ;;  %v2027_v24 = vpop.f32.mrb[41].mxu0  ;;  %2391 = vrcp.f32 %v1546_v55  ;;  %v1933_v29 = vmul.f32 -1.442695, %v2796_v21  ;;  %v2800_v9 = vadd.f32 %v2691_v45, %v1247_v18 }
 0x14d   : > { %v2028_v26 = vadd.f32 %v2027_v24, %v2026_v19  ;;  %v2139_v27 = vpop.f32.mrb[41].mxu1  ;;  %v2029_v28 = vpop.f32.mrb[42].mxu0  ;;  %2393 = vrcp.f32 %v1547_v25 }
 0x14e   : > { %v2140_v46 = vadd.f32 %v2139_v27, %v2138_v38  ;;  %v2141_v32 = vpop.f32.mrb[42].mxu1  ;;  %v2030_v33 = vpop.f32.mrb[43].mxu0  ;;  %2395 = vpow2.f32 %v1933_v29  ;;  %v1934_v37 = vmul.f32 -1.442695, %v2800_v9 }
 0x14f   : > { %v2031_v34 = vadd.f32 %v2030_v33, %v2029_v28  ;;  %v2142_v35 = vpop.f32.mrb[43].mxu1  ;;  %v2384_v36 = vpop.eup %2383 }
 0x150   : > { %v1252_v2 = vadd.f32 %v2140_v46, %v2028_v26  ;;  %v2143_v39 = vadd.f32 %v2142_v35, %v2141_v32  ;;  %v1640_v40 = vmul.f32 %v2384_v36, %v2760_v3  ;;  %v2386_v41 = vpop.eup %2385  ;;  %2397 = vpow2.f32 %v1934_v37 }
 0x151   : > { %v2388_v43 = vpop.eup %2387  ;;  %v1641_v44 = vmul.f32 %v2386_v41, %v2764_v15 }
 0x152   : > { %v1255_v42 = vadd.f32 %v2143_v39, %v2031_v34  ;;  %1672 = vst [vmem:[%s2728_s19 + $0x60] sm:$0xff] %v1640_v40  ;;  %v1548_v49 = vadd.f32 1.0, %v2388_v43  ;;  %v2807_v50 = vadd.f32 %v2691_v45, %v1252_v2  ;;  %v2390_v53 = vpop.eup %2389 }
 0x153   : > { %v2032_v47 = vpop.f32.mrb[44].mxu0  ;;  %1673 = vst [vmem:[%s2728_s19 + $0x68] sm:$0xff] %v1641_v44  ;;  %v1549_v3 = vadd.f32 1.0, %v2390_v53 }
 0x154   : > { %v2144_v51 = vpop.f32.mrb[44].mxu1  ;;  %v2033_v52 = vpop.f32.mrb[45].mxu0  ;;  %2399 = vrcp.f32 %v1548_v49  ;;  %v1935_v60 = vmul.f32 -1.442695, %v2807_v50  ;;  %v2812_v12 = vadd.f32 %v2691_v45, %v1255_v42 }
 0x155   : > { %v2034_v54 = vadd.f32 %v2033_v52, %v2032_v47  ;;  %v2145_v57 = vpop.f32.mrb[45].mxu1  ;;  %v2035_v58 = vpop.f32.mrb[46].mxu0  ;;  %2401 = vrcp.f32 %v1549_v3 }
 0x156   : > { %v2147_v15 = vpop.f32.mrb[46].mxu1  ;;  %v2036_v61 = vpop.f32.mrb[47].mxu0  ;;  %v2146_v63 = vadd.f32 %v2145_v57, %v2144_v51  ;;  %v1936_v23 = vmul.f32 -1.442695, %v2812_v12  ;;  %2403 = vpow2.f32 %v1935_v60 }
 0x157   : > { %v2392_v62 = vpop.eup %2391  ;;  %v2037_v0 = vadd.f32 %v2036_v61, %v2035_v58  ;;  %v2148_v1 = vpop.f32.mrb[47].mxu1 }
 0x158   : > { %v1642_v4 = vmul.f32 %v2392_v62, %v2772_v30  ;;  %v2149_v22 = vadd.f32 %v2148_v1, %v2147_v15  ;;  %v2394_v5 = vpop.eup %2393  ;;  %v1260_v6 = vadd.f32 %v2146_v63, %v2034_v54  ;;  %2405 = vpow2.f32 %v1936_v23 }
 0x159   : > { %v2396_v8 = vpop.eup %2395  ;;  %v1643_v10 = vmul.f32 %v2394_v5, %v2776_v56 }
 0x15a   : > { %1674 = vst [vmem:[%s2728_s19 + $0x70] sm:$0xff] %v1642_v4  ;;  %v1263_v11 = vadd.f32 %v2149_v22, %v2037_v0  ;;  %v1550_v31 = vadd.f32 1.0, %v2396_v8  ;;  %v2398_v13 = vpop.eup %2397  ;;  %v2820_v17 = vadd.f32 %v2691_v45, %v1260_v6 }
 0x15b   : > { %v2038_v48 = vpop.f32.mrb[48].mxu0  ;;  %1675 = vst [vmem:[%s2728_s19 + $0x78] sm:$0xff] %v1643_v10  ;;  %v1551_v30 = vadd.f32 1.0, %v2398_v13 }
 0x15c   : > { %v2150_v14 = vpop.f32.mrb[48].mxu1  ;;  %v2039_v16 = vpop.f32.mrb[49].mxu0  ;;  %2407 = vrcp.f32 %v1550_v31  ;;  %v2823_v20 = vadd.f32 %v2691_v45, %v1263_v11  ;;  %v1937_v25 = vmul.f32 -1.442695, %v2820_v17 }
 0x15d   : > { %v2040_v18 = vadd.f32 %v2039_v16, %v2038_v48  ;;  %v2151_v55 = vpop.f32.mrb[49].mxu1  ;;  %v2041_v19 = vpop.f32.mrb[50].mxu0  ;;  %2409 = vrcp.f32 %v1551_v30 }
 0x15e   : > { %v2152_v56 = vadd.f32 %v2151_v55, %v2150_v14  ;;  %v2153_v38 = vpop.f32.mrb[50].mxu1  ;;  %v2042_v24 = vpop.f32.mrb[51].mxu0  ;;  %v1938_v29 = vmul.f32 -1.442695, %v2823_v20  ;;  %2411 = vpow2.f32 %v1937_v25 }
 0x15f   : > { %v2043_v26 = vadd.f32 %v2042_v24, %v2041_v19  ;;  %v2154_v27 = vpop.f32.mrb[51].mxu1  ;;  %v2400_v28 = vpop.eup %2399 }
 0x160   : > { %v1268_v46 = vadd.f32 %v2152_v56, %v2040_v18  ;;  %v2155_v32 = vadd.f32 %v2154_v27, %v2153_v38  ;;  %v1644_v33 = vmul.f32 %v2400_v28, %v2783_v59  ;;  %v2402_v34 = vpop.eup %2401  ;;  %2413 = vpow2.f32 %v1938_v29 }
 0x161   : > { %v2404_v36 = vpop.eup %2403  ;;  %v1645_v37 = vmul.f32 %v2402_v34, %v2788_v7 }
 0x162   : > { %v1271_v35 = vadd.f32 %v2155_v32, %v2043_v26  ;;  %1676 = vst [vmem:[%s2728_s19 + $0x80] sm:$0xff] %v1644_v33  ;;  %v2406_v39 = vpop.eup %2405  ;;  %v1552_v40 = vadd.f32 1.0, %v2404_v36  ;;  %v2831_v41 = vadd.f32 %v2691_v45, %v1268_v46 }
 0x163   : > { %v2044_v2 = vpop.f32.mrb[52].mxu0  ;;  %1677 = vst [vmem:[%s2728_s19 + $0x88] sm:$0xff] %v1645_v37  ;;  %v1553_v44 = vadd.f32 1.0, %v2406_v39 }
 0x164   : > { %v2156_v42 = vpop.f32.mrb[52].mxu1  ;;  %v2045_v43 = vpop.f32.mrb[53].mxu0  ;;  %2415 = vrcp.f32 %v1552_v40  ;;  %v1939_v51 = vmul.f32 -1.442695, %v2831_v41  ;;  %v2836_v52 = vadd.f32 %v2691_v45, %v1271_v35 }
 0x165   : > { %v2046_v47 = vadd.f32 %v2045_v43, %v2044_v2  ;;  %v2157_v59 = vpop.f32.mrb[53].mxu1  ;;  %v2047_v49 = vpop.f32.mrb[54].mxu0  ;;  %2417 = vrcp.f32 %v1553_v44 }
 0x166   : > { %v2158_v7 = vadd.f32 %v2157_v59, %v2156_v42  ;;  %v2159_v53 = vpop.f32.mrb[54].mxu1  ;;  %v2048_v54 = vpop.f32.mrb[55].mxu0  ;;  %2419 = vpow2.f32 %v1939_v51  ;;  %v1940_v15 = vmul.f32 -1.442695, %v2836_v52 }
 0x167   : > { %v2408_v57 = vpop.eup %2407  ;;  %v2049_v58 = vadd.f32 %v2048_v54, %v2047_v49  ;;  %v2160_v3 = vpop.f32.mrb[55].mxu1 }
 0x168   : > { %v1646_v60 = vmul.f32 %v2408_v57, %v2796_v21  ;;  %v1276_v61 = vadd.f32 %v2158_v7, %v2046_v47  ;;  %v2410_v62 = vpop.eup %2409  ;;  %v2161_v63 = vadd.f32 %v2160_v3, %v2159_v53  ;;  %2421 = vpow2.f32 %v1940_v15 }
 0x169   : > { %v1647_v0 = vmul.f32 %v2410_v62, %v2800_v9  ;;  %v2412_v1 = vpop.eup %2411 }
 0x16a   : > { %1678 = vst [vmem:[%s2728_s19 + $0x90] sm:$0xff] %v1646_v60  ;;  %v1279_v4 = vadd.f32 %v2161_v63, %v2049_v58  ;;  %v2414_v22 = vpop.eup %2413  ;;  %v1554_v5 = vadd.f32 1.0, %v2412_v1  ;;  %v2844_v6 = vadd.f32 %v2691_v45, %v1276_v61 }
 0x16b   : > { %v2050_v23 = vpop.f32.mrb[56].mxu0  ;;  %1679 = vst [vmem:[%s2728_s19 + $0x98] sm:$0xff] %v1647_v0  ;;  %v1555_v10 = vadd.f32 1.0, %v2414_v22 }
 0x16c   : > { %v2162_v21 = vpop.f32.mrb[56].mxu1  ;;  %v2051_v8 = vpop.f32.mrb[57].mxu0  ;;  %2423 = vrcp.f32 %v1554_v5  ;;  %v1941_v13 = vmul.f32 -1.442695, %v2844_v6  ;;  %v2848_v30 = vadd.f32 %v2691_v45, %v1279_v4 }
 0x16d   : > { %v2052_v11 = vadd.f32 %v2051_v8, %v2050_v23  ;;  %v2163_v31 = vpop.f32.mrb[57].mxu1  ;;  %v2053_v48 = vpop.f32.mrb[58].mxu0  ;;  %2425 = vrcp.f32 %v1555_v10 }
 0x16e   : > { %v2164_v9 = vadd.f32 %v2163_v31, %v2162_v21  ;;  %v2165_v14 = vpop.f32.mrb[58].mxu1  ;;  %v2054_v16 = vpop.f32.mrb[59].mxu0  ;;  %2427 = vpow2.f32 %v1941_v13  ;;  %v1942_v26 = vmul.f32 -1.442695, %v2848_v30 }
 0x16f   : > { %v2055_v18 = vadd.f32 %v2054_v16, %v2053_v48  ;;  %v2166_v55 = vpop.f32.mrb[59].mxu1  ;;  %v2416_v19 = vpop.eup %2415 }
 0x170   : > { %v1284_v56 = vadd.f32 %v2164_v9, %v2052_v11  ;;  %v2167_v38 = vadd.f32 %v2166_v55, %v2165_v14  ;;  %v2418_v24 = vpop.eup %2417  ;;  %v1648_v25 = vmul.f32 %v2416_v19, %v2807_v50  ;;  %2429 = vpow2.f32 %v1942_v26 }
 0x171   : > { %v2420_v27 = vpop.eup %2419  ;;  %v1649_v28 = vmul.f32 %v2418_v24, %v2812_v12 }
 0x172   : > { %v1287_v29 = vadd.f32 %v2167_v38, %v2055_v18  ;;  %1680 = vst [vmem:[%s2728_s19 + $0xa0] sm:$0xff] %v1648_v25  ;;  %v1556_v46 = vadd.f32 1.0, %v2420_v27  ;;  %v2422_v33 = vpop.eup %2421  ;;  %v2856_v34 = vadd.f32 %v2691_v45, %v1284_v56 }
 0x173   : > { %v2056_v32 = vpop.f32.mrb[60].mxu0  ;;  %1681 = vst [vmem:[%s2728_s19 + $0xa8] sm:$0xff] %v1649_v28  ;;  %v1557_v37 = vadd.f32 1.0, %v2422_v33 }
 0x174   : > { %v2168_v35 = vpop.f32.mrb[60].mxu1  ;;  %v2057_v36 = vpop.f32.mrb[61].mxu0  ;;  %2431 = vrcp.f32 %v1556_v46  ;;  %v1943_v40 = vmul.f32 -1.442695, %v2856_v34  ;;  %v1433_v12 = vadd.f32 %v2691_v45, %v1287_v29 }
 0x175   : > { %v2058_v50 = vadd.f32 %v2057_v36, %v2056_v32  ;;  %v2169_v2 = vpop.f32.mrb[61].mxu1  ;;  %v2059_v39 = vpop.f32.mrb[62].mxu0  ;;  %2433 = vrcp.f32 %v1557_v37 }
 0x176   : > { %v2170_v42 = vadd.f32 %v2169_v2, %v2168_v35  ;;  %v2171_v43 = vpop.f32.mrb[62].mxu1  ;;  %v2060_v44 = vpop.f32.mrb[63].mxu0  ;;  %2435 = vpow2.f32 %v1943_v40  ;;  %v1944_v51 = vmul.f32 -1.442695, %v1433_v12 }
 0x177   : > { %v2061_v47 = vadd.f32 %v2060_v44, %v2059_v39  ;;  %v2172_v59 = vpop.f32.mrb[63].mxu1  ;;  %v2424_v49 = vpop.eup %2423 }
 0x178   : > { %v1292_v7 = vadd.f32 %v2170_v42, %v2058_v50  ;;  %v2173_v53 = vadd.f32 %v2172_v59, %v2171_v43  ;;  %v2426_v54 = vpop.eup %2425  ;;  %v1650_v57 = vmul.f32 %v2424_v49, %v2820_v17  ;;  %2437 = vpow2.f32 %v1944_v51 }
 0x179   : > { %v2428_v58 = vpop.eup %2427  ;;  %v1651_v3 = vmul.f32 %v2426_v54, %v2823_v20 }
 0x17a   : > { %v1295_v60 = vadd.f32 %v2173_v53, %v2061_v47  ;;  %1682 = vst [vmem:[%s2728_s19 + $0xb0] sm:$0xff] %v1650_v57  ;;  %v1558_v15 = vadd.f32 1.0, %v2428_v58  ;;  %v1434_v61 = vadd.f32 %v2691_v45, %v1292_v7  ;;  %v2430_v62 = vpop.eup %2429 }
 0x17b   : > { %1683 = vst [vmem:[%s2728_s19 + $0xb8] sm:$0xff] %v1651_v3  ;;  %v1559_v63 = vadd.f32 1.0, %v2430_v62 }
 0x17c   : > { %2439 = vrcp.f32 %v1558_v15  ;;  %v1945_v0 = vmul.f32 -1.442695, %v1434_v61  ;;  %v1435_v1 = vadd.f32 %v2691_v45, %v1295_v60 }
 0x17d   : > { %2441 = vrcp.f32 %v1559_v63 }
 0x17e   : > { %v2432_v4 = vpop.eup %2431  ;;  %v1946_v20 = vmul.f32 -1.442695, %v1435_v1  ;;  %2443 = vpow2.f32 %v1945_v0 }
 0x17f   : > { %v1652_v17 = vmul.f32 %v2432_v4, %v2831_v41  ;;  %v2434_v23 = vpop.eup %2433 }
 0x180   : > { %v2436_v22 = vpop.eup %2435  ;;  %v1653_v5 = vmul.f32 %v2434_v23, %v2836_v52  ;;  %2445 = vpow2.f32 %v1946_v20 }
 0x181   : > { %1684 = vst [vmem:[%s2728_s19 + $0xc0] sm:$0xff] %v1652_v17  ;;  %v1560_v21 = vadd.f32 1.0, %v2436_v22 }
 0x182   : > { %v2438_v8 = vpop.eup %2437  ;;  %1685 = vst [vmem:[%s2728_s19 + $0xc8] sm:$0xff] %v1653_v5 }
 0x183   : > { %2447 = vrcp.f32 %v1560_v21  ;;  %v1561_v10 = vadd.f32 1.0, %v2438_v8 }
 0x185   : > { %2449 = vrcp.f32 %v1561_v10 }
 0x186   : > { %v2440_v45 = vpop.eup %2439 }
 0x187   : > { %v1654_v41 = vmul.f32 %v2440_v45, %v2844_v6  ;;  %v2442_v11 = vpop.eup %2441 }
 0x188   : > { %v2444_v31 = vpop.eup %2443  ;;  %v1655_v48 = vmul.f32 %v2442_v11, %v2848_v30 }
 0x189   : > { %1686 = vst [vmem:[%s2728_s19 + $0xd0] sm:$0xff] %v1654_v41  ;;  %v1562_v52 = vadd.f32 1.0, %v2444_v31 }
 0x18a   : > { %v2446_v13 = vpop.eup %2445  ;;  %1687 = vst [vmem:[%s2728_s19 + $0xd8] sm:$0xff] %v1655_v48 }
 0x18b   : > { %v1563_v9 = vadd.f32 1.0, %v2446_v13  ;;  %2451 = vrcp.f32 %v1562_v52 }
 0x18d   : > { %v2448_v14 = vpop.eup %2447  ;;  %2453 = vrcp.f32 %v1563_v9 }
 0x18e   : > { %v1656_v16 = vmul.f32 %v2448_v14, %v2856_v34 }
 0x18f   : > { %v2450_v18 = vpop.eup %2449 }
 0x190   : > { %1688 = vst [vmem:[%s2728_s19 + $0xe0] sm:$0xff] %v1656_v16  ;;  %v1657_v6 = vmul.f32 %v2450_v18, %v1433_v12 }
 0x192   : > { %1689 = vst [vmem:[%s2728_s19 + $0xe8] sm:$0xff] %v1657_v6 }
 0x195   : > { %v2452_v55 = vpop.eup %2451 }
 0x196   : > { %v1658_v56 = vmul.f32 %v2452_v55, %v1434_v61 }
 0x197   : > { %v2454_v19 = vpop.eup %2453 }
 0x198   : > { %v1659_v38 = vmul.f32 %v2454_v19, %v1435_v1  ;;  %1690 = vst [vmem:[%s2728_s19 + $0xf0] sm:$0xff] %v1658_v56 }
 0x19a   : > { %1691 = vst [vmem:[%s2728_s19 + $0xf8] sm:$0xff] %v1659_v38 }
 0x19b PF: > { %s13_s14 = sadd.s32 1, %s2477_s14   ;;  %s2892_s12 = smov %s2473_s13 }
 0x19c   : > { %p10_p5 = scmp.ge.s32.totalorder %s13_s14, 4   ;;  %s2893_s13 = smov %s2895_s15 }
 0x19e   :  { %12 = sbr.rel (!%p10_p5) target bundleno = 2 (0x2), region = 76 }

// kernel: image_encoder_forward.7
= control target key start
LH: loop header
LB: loop body
LE: loop exit
PB: predicated region body
PF: predicated region fallthrough
CT: control target
= control target key end

     0   :  { %s1801_s12 = smov 0   ;;  %s1803_s13 = smov 0   ;;  %s2329_s0 = inlined_call_operand.vmem [shape: bf16[128,1024], index: 0, kind: input, shape index: {}]   ;;  %s2330_s1 = inlined_call_operand.vmem [shape: bf16[1024,128], index: 1, kind: input, shape index: {}]   ;;  %s2331_s2 = inlined_call_operand.vmem [shape: f32[1,128], index: 2, kind: input, shape index: {}]   ;;  %s2332_s3 = inlined_call_operand.vmem [shape: f32[128,128], index: 3, kind: output, shape index: {}]  }
   0x1   :  { %s1805_s14 = smov 0   ;;  %s1807_s15 = smov 0  }
   0x2   :  { %s1809_s16 = smov 0  }
   0x3 LB: > { %s25_s17 = sadd.s32 1, %s1774_s15  ;;  %p48_p1 = scmp.ne.s32.totalorder %s1766_s13, %s1762_s12  ;;  %s1778_s16 = sphi %s1809_s16, %s13_s16   ;;  %s1774_s15 = sphi %s1807_s15, %s2336_s15   ;;  %s1770_s14 = sphi %s1805_s14, %s2335_s14   ;;  %s1766_s13 = sphi %s1803_s13, %s2334_s13   ;;  %s1762_s12 = sphi %s1801_s12, %s2333_s12  }
   0x4   : > { %p26_p0 = scmp.ge.s32.totalorder %s25_s17, 2  ;;  %p49_p2 = scmp.eq.s32.totalorder %s1778_s16, 0 }
   0x5   : > { %s41_s19 = sadd.s32 1, %s1766_s13  ;;  %p1331_p5 = scmp.ge.s32.totalorder %s1778_s16, 2 }
   0x6   : > { %s2338_s17 = smov (%p26_p0, %s25_s17), 0  ;;  %p50_p3 = por %p49_p2, %p48_p1 }
   0x7   : > { %s37_s18 = ssub.s32 %s1774_s15, %s2338_s17  ;;  %162 = sbr.rel (%p1331_p5) target bundleno = 34 (0x22), region = 20 }
   0x8   : > { %p39_p4 = scmp.eq.s32.totalorder %s37_s18, 0 }
   0xa   : > { %s1836_s20 = scalar_select %p39_p4, %s1766_s13, %s41_s19  }
   0xe   : > { %165 = sbr.rel (!%p50_p3) target bundleno = 34 (0x22), region = 24  ;;  %s167_s21 = sand.u32 (%p50_p3), 1, %s1766_s13  }
   0xf   : > { %s1426_s22 = sshll.u32 (%p50_p3), %s1774_s15, 4  ;;  %s1332_s23 = sshll.u32 (%p50_p3), %s167_s21, 8 }
  0x10   : > { %s1844_s26 = scalar_lea.vmem (%p50_p3), %s2329_s0, %s1426_s22  ;;  %s1849_s27 = scalar_lea.vmem (%p50_p3), [#allocation2], %s1332_s23 }
  0x11   : > { %v188_v0 = vld [vmem:[%s1844_s26] sm:$0xff] (%p50_p3)  ;;  %v190_v1 = vld [vmem:[%s1844_s26 + $0x8] sm:$0xff] (%p50_p3) }
  0x12   : > { %v192_v2 = vld [vmem:[%s1844_s26 + $0x20] sm:$0xff] (%p50_p3)  ;;  %189 = vst [vmem:[%s1849_s27] sm:$0xff] (%p50_p3), %v188_v0  ;;  %191 = vst [vmem:[%s1849_s27 + $0x8] sm:$0xff] (%p50_p3), %v190_v1  ;;  %v194_v3 = vld [vmem:[%s1844_s26 + $0x28] sm:$0xff] (%p50_p3) }
  0x13   : > { %193 = vst [vmem:[%s1849_s27 + $0x10] sm:$0xff] (%p50_p3), %v192_v2  ;;  %v196_v4 = vld [vmem:[%s1844_s26 + $0x40] sm:$0xff] (%p50_p3)  ;;  %v198_v5 = vld [vmem:[%s1844_s26 + $0x48] sm:$0xff] (%p50_p3)  ;;  %195 = vst [vmem:[%s1849_s27 + $0x18] sm:$0xff] (%p50_p3), %v194_v3 }
  0x14   : > { %197 = vst [vmem:[%s1849_s27 + $0x20] sm:$0xff] (%p50_p3), %v196_v4  ;;  %199 = vst [vmem:[%s1849_s27 + $0x28] sm:$0xff] (%p50_p3), %v198_v5  ;;  %v200_v6 = vld [vmem:[%s1844_s26 + $0x60] sm:$0xff] (%p50_p3)  ;;  %v202_v7 = vld [vmem:[%s1844_s26 + $0x68] sm:$0xff] (%p50_p3) }
  0x15   : > { %v204_v8 = vld [vmem:[%s1844_s26 + $0x80] sm:$0xff]  ;;  %201 = vst [vmem:[%s1849_s27 + $0x30] sm:$0xff] %v200_v6  ;;  %203 = vst [vmem:[%s1849_s27 + $0x38] sm:$0xff] %v202_v7  ;;  %v206_v9 = vld [vmem:[%s1844_s26 + $0x88] sm:$0xff] }
  0x16   : > { %205 = vst [vmem:[%s1849_s27 + $0x40] sm:$0xff] %v204_v8  ;;  %v208_v10 = vld [vmem:[%s1844_s26 + $0xa0] sm:$0xff]  ;;  %v210_v11 = vld [vmem:[%s1844_s26 + $0xa8] sm:$0xff]  ;;  %207 = vst [vmem:[%s1849_s27 + $0x48] sm:$0xff] %v206_v9 }
  0x17   : > { %209 = vst [vmem:[%s1849_s27 + $0x50] sm:$0xff] %v208_v10  ;;  %211 = vst [vmem:[%s1849_s27 + $0x58] sm:$0xff] %v210_v11  ;;  %v212_v12 = vld [vmem:[%s1844_s26 + $0xc0] sm:$0xff]  ;;  %v214_v13 = vld [vmem:[%s1844_s26 + $0xc8] sm:$0xff] }
  0x18   : > { %v216_v14 = vld [vmem:[%s1844_s26 + $0xe0] sm:$0xff]  ;;  %213 = vst [vmem:[%s1849_s27 + $0x60] sm:$0xff] %v212_v12  ;;  %215 = vst [vmem:[%s1849_s27 + $0x68] sm:$0xff] %v214_v13  ;;  %v218_v15 = vld [vmem:[%s1844_s26 + $0xe8] sm:$0xff] }
  0x19   : > { %217 = vst [vmem:[%s1849_s27 + $0x70] sm:$0xff] %v216_v14  ;;  %v220_v16 = vld [vmem:[%s1844_s26 + $0x100] sm:$0xff]  ;;  %v222_v17 = vld [vmem:[%s1844_s26 + $0x108] sm:$0xff]  ;;  %219 = vst [vmem:[%s1849_s27 + $0x78] sm:$0xff] %v218_v15 }
  0x1a   : > { %221 = vst [vmem:[%s1849_s27 + $0x80] sm:$0xff] %v220_v16  ;;  %223 = vst [vmem:[%s1849_s27 + $0x88] sm:$0xff] %v222_v17  ;;  %v224_v18 = vld [vmem:[%s1844_s26 + $0x120] sm:$0xff]  ;;  %v226_v19 = vld [vmem:[%s1844_s26 + $0x128] sm:$0xff] }
  0x1b   : > { %v228_v20 = vld [vmem:[%s1844_s26 + $0x140] sm:$0xff]  ;;  %225 = vst [vmem:[%s1849_s27 + $0x90] sm:$0xff] %v224_v18  ;;  %227 = vst [vmem:[%s1849_s27 + $0x98] sm:$0xff] %v226_v19  ;;  %v230_v21 = vld [vmem:[%s1844_s26 + $0x148] sm:$0xff] }
  0x1c   : > { %229 = vst [vmem:[%s1849_s27 + $0xa0] sm:$0xff] %v228_v20  ;;  %v232_v22 = vld [vmem:[%s1844_s26 + $0x160] sm:$0xff]  ;;  %v234_v23 = vld [vmem:[%s1844_s26 + $0x168] sm:$0xff]  ;;  %231 = vst [vmem:[%s1849_s27 + $0xa8] sm:$0xff] %v230_v21 }
  0x1d   : > { %233 = vst [vmem:[%s1849_s27 + $0xb0] sm:$0xff] %v232_v22  ;;  %235 = vst [vmem:[%s1849_s27 + $0xb8] sm:$0xff] %v234_v23  ;;  %v236_v24 = vld [vmem:[%s1844_s26 + $0x180] sm:$0xff]  ;;  %v238_v25 = vld [vmem:[%s1844_s26 + $0x188] sm:$0xff] }
  0x1e   : > { %v240_v26 = vld [vmem:[%s1844_s26 + $0x1a0] sm:$0xff]  ;;  %237 = vst [vmem:[%s1849_s27 + $0xc0] sm:$0xff] %v236_v24  ;;  %239 = vst [vmem:[%s1849_s27 + $0xc8] sm:$0xff] %v238_v25  ;;  %v242_v27 = vld [vmem:[%s1844_s26 + $0x1a8] sm:$0xff] }
  0x1f   : > { %241 = vst [vmem:[%s1849_s27 + $0xd0] sm:$0xff] %v240_v26  ;;  %v244_v28 = vld [vmem:[%s1844_s26 + $0x1c0] sm:$0xff]  ;;  %v246_v29 = vld [vmem:[%s1844_s26 + $0x1c8] sm:$0xff]  ;;  %243 = vst [vmem:[%s1849_s27 + $0xd8] sm:$0xff] %v242_v27 }
  0x20   : > { %245 = vst [vmem:[%s1849_s27 + $0xe0] sm:$0xff] %v244_v28  ;;  %247 = vst [vmem:[%s1849_s27 + $0xe8] sm:$0xff] %v246_v29  ;;  %v248_v30 = vld [vmem:[%s1844_s26 + $0x1e0] sm:$0xff]  ;;  %v250_v31 = vld [vmem:[%s1844_s26 + $0x1e8] sm:$0xff] }
  0x21   : > { %249 = vst [vmem:[%s1849_s27 + $0xf0] sm:$0xff] %v248_v30  ;;  %251 = vst [vmem:[%s1849_s27 + $0xf8] sm:$0xff] %v250_v31 }
  0x22 PF: > { %p1335_p6 = scmp.ge.s32.totalorder %s1778_s16, 1  ;;  %p268_p7 = scmp.lt.s32.totalorder %s1778_s16, 3 }
  0x24   : > { %p269_p8 = pnand %p1335_p6, %p268_p7 }
  0x25   : > { %s275_s28 = sand.u32 (!%p269_p8), 1, %s1762_s12   ;;  %s1337_s29 = sshll.u32 (!%p269_p8), %s1770_s14, 6 }
  0x26   : > { %272 = sbr.rel (%p269_p8) target bundleno = 412 (0x19c), region = 51  ;;  %s1336_s30 = sshll.u32 (!%p269_p8), %s275_s28, 8 }
  0x27   : > { %p315_p9 = scmp.lt.s32.totalorder (!%p269_p8), %s1337_s29, 127  ;;  %s1921_s8 = scalar_lea.vmem (!%p269_p8), [#allocation2], %s1336_s30 }
  0x28   : > { %p1339_p10 = scmp.ne.s32.totalorder (!%p269_p8), %s1770_s14, 0 }
  0x2d   : > { %s2340_s29 = smov (!%p315_p9, %s1337_s29), 127  ;;  %339 = sbr.rel (%p1339_p10) target bundleno = 55 (0x37), region = 59 }
  0x2e   : > { %s1338_s4 = sshll.u32 %s2340_s29, 2  ;;  %v1780_v32 = vmov (!%p1339_p10), 0.0  }
  0x2f   : > { %s1919_s7 = scalar_lea.vmem %s2330_s1, %s1338_s4  ;;  %340 = vst [vmem:[%s2332_s3] sm:$0xff] (!%p1339_p10), %v1780_v32  ;;  %341 = vst [vmem:[%s2332_s3 + $0x8] sm:$0xff] (!%p1339_p10), %v1780_v32 }
  0x30   : > { %342 = vst [vmem:[%s2332_s3 + $0x10] sm:$0xff] (!%p1339_p10), %v1780_v32  ;;  %343 = vst [vmem:[%s2332_s3 + $0x18] sm:$0xff] (!%p1339_p10), %v1780_v32 }
  0x31   : > { %344 = vst [vmem:[%s2332_s3 + $0x20] sm:$0xff] (!%p1339_p10), %v1780_v32  ;;  %345 = vst [vmem:[%s2332_s3 + $0x28] sm:$0xff] (!%p1339_p10), %v1780_v32 }
  0x32   : > { %346 = vst [vmem:[%s2332_s3 + $0x30] sm:$0xff] (!%p1339_p10), %v1780_v32  ;;  %347 = vst [vmem:[%s2332_s3 + $0x38] sm:$0xff] (!%p1339_p10), %v1780_v32 }
  0x33   : > { %348 = vst [vmem:[%s2332_s3 + $0x40] sm:$0xff] (!%p1339_p10), %v1780_v32  ;;  %349 = vst [vmem:[%s2332_s3 + $0x48] sm:$0xff] (!%p1339_p10), %v1780_v32 }
  0x34   : > { %350 = vst [vmem:[%s2332_s3 + $0x50] sm:$0xff] %v1780_v32  ;;  %351 = vst [vmem:[%s2332_s3 + $0x58] sm:$0xff] %v1780_v32 }
  0x35   : > { %352 = vst [vmem:[%s2332_s3 + $0x60] sm:$0xff] %v1780_v32  ;;  %353 = vst [vmem:[%s2332_s3 + $0x68] sm:$0xff] %v1780_v32 }
  0x36   : > { %354 = vst [vmem:[%s2332_s3 + $0x70] sm:$0xff] %v1780_v32  ;;  %355 = vst [vmem:[%s2332_s3 + $0x78] sm:$0xff] %v1780_v32 }
  0x37 PF: > { %v1596_v33 = vld [vmem:[%s1919_s7 + $0x40] sm:$0xff]   ;;  %v1600_v37 = vld [vmem:[%s1919_s7 + $0x48] sm:$0xff]   ;;  %v1604_v41 = vld [vmem:[%s1919_s7 + $0x50] sm:$0xff]   ;;  %p1404_p11 = scmp.ne.s32.totalorder %s1770_s14, 1 }
  0x38   : > { %v1597_v34 = vld [vmem:[%s1919_s7 + $0xc0] sm:$0xff]   ;;  %1427 = vmatprep.subr.bf16.mxu0 %v1596_v33  ;;  %v1601_v38 = vld [vmem:[%s1919_s7 + $0xc8] sm:$0xff]   ;;  %v1605_v42 = vld [vmem:[%s1919_s7 + $0xd0] sm:$0xff]  }
  0x39   : > { %v1598_v35 = vld [vmem:[%s1919_s7] sm:$0xff]   ;;  %1491 = vmatprep.subr.bf16.mxu1 %v1597_v34  ;;  %v1602_v39 = vld [vmem:[%s1919_s7 + $0x8] sm:$0xff]   ;;  %v1606_v43 = vld [vmem:[%s1919_s7 + $0x10] sm:$0xff]  }
  0x3a   : > { %v1599_v36 = vld [vmem:[%s1919_s7 + $0x80] sm:$0xff]   ;;  %1428 = vmatpush3.bf16.msra.mxu0 %v1598_v35  ;;  %v1603_v40 = vld [vmem:[%s1919_s7 + $0x88] sm:$0xff]   ;;  %v1607_v44 = vld [vmem:[%s1919_s7 + $0x90] sm:$0xff]  }
  0x3b   : > { %1492 = vmatpush3.bf16.msra.mxu1 %v1599_v36  ;;  %1429 = vmatprep.subr.bf16.mxu0 %v1600_v37  ;;  %v1608_v45 = vld [vmem:[%s1919_s7 + $0x58] sm:$0xff]   ;;  %v1612_v49 = vld [vmem:[%s1919_s7 + $0x60] sm:$0xff]   ;;  %v1616_v53 = vld [vmem:[%s1919_s7 + $0x68] sm:$0xff]  }
  0x3c   : > { %1493 = vmatprep.subr.bf16.mxu1 %v1601_v38  ;;  %v1609_v46 = vld [vmem:[%s1919_s7 + $0xd8] sm:$0xff]   ;;  %v1613_v50 = vld [vmem:[%s1919_s7 + $0xe0] sm:$0xff]   ;;  %v1617_v54 = vld [vmem:[%s1919_s7 + $0xe8] sm:$0xff]  }
  0x3d   : > { %v1610_v47 = vld [vmem:[%s1919_s7 + $0x18] sm:$0xff]   ;;  %v1614_v51 = vld [vmem:[%s1919_s7 + $0x20] sm:$0xff]   ;;  %v1618_v55 = vld [vmem:[%s1919_s7 + $0x28] sm:$0xff]  }
  0x3e   : > { %1430 = vmatpush3.bf16.msra.mxu0 %v1602_v39  ;;  %v1611_v48 = vld [vmem:[%s1919_s7 + $0x98] sm:$0xff]   ;;  %v1615_v52 = vld [vmem:[%s1919_s7 + $0xa0] sm:$0xff]   ;;  %v1619_v56 = vld [vmem:[%s1919_s7 + $0xa8] sm:$0xff]  }
  0x3f   : > { %1494 = vmatpush3.bf16.msra.mxu1 %v1603_v40  ;;  %1431 = vmatprep.subr.bf16.mxu0 %v1604_v41  ;;  %v1620_v57 = vld [vmem:[%s1919_s7 + $0x70] sm:$0xff]   ;;  %v1624_v61 = vld [vmem:[%s1919_s7 + $0x78] sm:$0xff]  }
  0x40   : > { %1495 = vmatprep.subr.bf16.mxu1 %v1605_v42  ;;  %v1621_v58 = vld [vmem:[%s1919_s7 + $0xf0] sm:$0xff]   ;;  %v1625_v62 = vld [vmem:[%s1919_s7 + $0xf8] sm:$0xff]   ;;  %v356_v42 = vld [vmem:[%s2332_s3] sm:$0xff] }
  0x41   : > { %v1622_v59 = vld [vmem:[%s1919_s7 + $0x30] sm:$0xff]   ;;  %v1626_v63 = vld [vmem:[%s1919_s7 + $0x38] sm:$0xff]  }
  0x42   : > { %1432 = vmatpush3.bf16.msra.mxu0 %v1606_v43  ;;  %v1623_v60 = vld [vmem:[%s1919_s7 + $0xb0] sm:$0xff]   ;;  %v1627_v0 = vld [vmem:[%s1919_s7 + $0xb8] sm:$0xff]  }
  0x43   : > { %1496 = vmatpush3.bf16.msra.mxu1 %v1607_v44  ;;  %1433 = vmatprep.subr.bf16.mxu0 %v1608_v45  ;;  %v1628_v1 = vld [vmem:[%s1921_s8] ss:$16 sps:$4 sm:$0xff]   ;;  %v1630_v2 = vld [vmem:[%s1921_s8 + $0x4] ss:$16 sps:$4 sm:$0xff]   ;;  %v1631_v3 = vld [vmem:[%s1921_s8 + $0x8] ss:$16 sps:$4 sm:$0xff]  }
  0x44   : > { %1497 = vmatprep.subr.bf16.mxu1 %v1609_v46  ;;  %v1633_v4 = vld [vmem:[%s1921_s8 + $0xc] ss:$16 sps:$4 sm:$0xff]   ;;  %852 = vmatprep.mubr.bf16.mxu0 %v1630_v2  ;;  %v1634_v5 = vld [vmem:[%s1921_s8 + $0x24] ss:$16 sps:$4 sm:$0xff]   ;;  %v1638_v7 = vld [vmem:[%s1921_s8 + $0x20] ss:$16 sps:$4 sm:$0xff]  }
  0x45   : > { %949 = vmatprep.mubr.bf16.mxu1 %v1633_v4  ;;  %v1636_v6 = vld [vmem:[%s1921_s8 + $0x2c] ss:$16 sps:$4 sm:$0xff]   ;;  %v1639_v8 = vld [vmem:[%s1921_s8 + $0x28] ss:$16 sps:$4 sm:$0xff]   ;;  %v1640_v9 = vld [vmem:[%s1921_s8 + $0x44] ss:$16 sps:$4 sm:$0xff]  }
  0x46   : > { %1434 = vmatpush3.bf16.msra.mxu0 %v1610_v47  ;;  %v1642_v10 = vld [vmem:[%s1921_s8 + $0x4c] ss:$16 sps:$4 sm:$0xff]   ;;  %v1644_v11 = vld [vmem:[%s1921_s8 + $0x40] ss:$16 sps:$4 sm:$0xff]   ;;  %v1645_v12 = vld [vmem:[%s1921_s8 + $0x48] ss:$16 sps:$4 sm:$0xff]  }
  0x47   : > { %1498 = vmatpush3.bf16.msra.mxu1 %v1611_v48  ;;  %1435 = vmatprep.subr.bf16.mxu0 %v1612_v49  ;;  %v1646_v13 = vld [vmem:[%s1921_s8 + $0x64] ss:$16 sps:$4 sm:$0xff]   ;;  %v1648_v14 = vld [vmem:[%s1921_s8 + $0x6c] ss:$16 sps:$4 sm:$0xff]   ;;  %v1650_v15 = vld [vmem:[%s1921_s8 + $0x60] ss:$16 sps:$4 sm:$0xff]  }
  0x48   : > { %1499 = vmatprep.subr.bf16.mxu1 %v1613_v50  ;;  %v1651_v16 = vld [vmem:[%s1921_s8 + $0x68] ss:$16 sps:$4 sm:$0xff]   ;;  %v1652_v17 = vld [vmem:[%s1921_s8 + $0x84] ss:$16 sps:$4 sm:$0xff]   ;;  %v1654_v18 = vld [vmem:[%s1921_s8 + $0x8c] ss:$16 sps:$4 sm:$0xff]  }
  0x49   : > { %v1656_v19 = vld [vmem:[%s1921_s8 + $0x80] ss:$16 sps:$4 sm:$0xff]   ;;  %v1657_v20 = vld [vmem:[%s1921_s8 + $0x88] ss:$16 sps:$4 sm:$0xff]   ;;  %v1658_v21 = vld [vmem:[%s1921_s8 + $0xa4] ss:$16 sps:$4 sm:$0xff]  }
  0x4a   : > { %1436 = vmatpush3.bf16.msra.mxu0 %v1614_v51  ;;  %v1660_v22 = vld [vmem:[%s1921_s8 + $0xac] ss:$16 sps:$4 sm:$0xff]   ;;  %v1662_v23 = vld [vmem:[%s1921_s8 + $0xa0] ss:$16 sps:$4 sm:$0xff]   ;;  %v1663_v24 = vld [vmem:[%s1921_s8 + $0xa8] ss:$16 sps:$4 sm:$0xff]  }
  0x4b   : > { %1500 = vmatpush3.bf16.msra.mxu1 %v1615_v52  ;;  %1437 = vmatprep.subr.bf16.mxu0 %v1616_v53  ;;  %v1664_v25 = vld [vmem:[%s1921_s8 + $0xc4] ss:$16 sps:$4 sm:$0xff]   ;;  %v1666_v26 = vld [vmem:[%s1921_s8 + $0xcc] ss:$16 sps:$4 sm:$0xff]   ;;  %v1668_v27 = vld [vmem:[%s1921_s8 + $0xc0] ss:$16 sps:$4 sm:$0xff]  }
  0x4c   : > { %1501 = vmatprep.subr.bf16.mxu1 %v1617_v54  ;;  %v1669_v28 = vld [vmem:[%s1921_s8 + $0xc8] ss:$16 sps:$4 sm:$0xff]   ;;  %v1670_v29 = vld [vmem:[%s1921_s8 + $0xe4] ss:$16 sps:$4 sm:$0xff]   ;;  %v1672_v30 = vld [vmem:[%s1921_s8 + $0xec] ss:$16 sps:$4 sm:$0xff]  }
  0x4d   : > { %v1674_v31 = vld [vmem:[%s1921_s8 + $0xe0] ss:$16 sps:$4 sm:$0xff]   ;;  %v1675_v32 = vld [vmem:[%s1921_s8 + $0xe8] ss:$16 sps:$4 sm:$0xff]  }
  0x4e   : > { %1438 = vmatpush3.bf16.msra.mxu0 %v1618_v55  ;;  %v357_v47 = vld [vmem:[%s2332_s3 + $0x8] sm:$0xff] }
  0x4f   : > { %1502 = vmatpush3.bf16.msra.mxu1 %v1619_v56  ;;  %1439 = vmatprep.subr.bf16.mxu0 %v1620_v57 }
  0x50   : > { %1503 = vmatprep.subr.bf16.mxu1 %v1621_v58 }
  0x52   : > { %1440 = vmatpush3.bf16.msra.mxu0 %v1622_v59 }
  0x53   : > { %1504 = vmatpush3.bf16.msra.mxu1 %v1623_v60  ;;  %1441 = vmatprep.subr.bf16.mxu0 %v1624_v61  ;;  %v358_v60 = vld [vmem:[%s2332_s3 + $0x10] sm:$0xff] }
  0x54   : > { %1505 = vmatprep.subr.bf16.mxu1 %v1625_v62 }
  0x56   : > { %1442 = vmatpush3.bf16.msra.mxu0 %v1626_v63 }
  0x57   : > { %1506 = vmatpush3.bf16.msra.mxu1 %v1627_v0 }
  0x59   : > { %853 = vmatmul.mubr.bf16.vlgmr.msra.gmra.mrb[0].mxu0 %v1628_v1  ;;  %v359_v1 = vld [vmem:[%s2332_s3 + $0x18] sm:$0xff] }
  0x5a   : > { %950 = vmatmul.mubr.bf16.vlgmr.msra.gmra.mrb[0].mxu1 %v1631_v3  ;;  %860 = vmatprep.mubr.bf16.mxu0 %v1634_v5 }
  0x5b   : > { %957 = vmatprep.mubr.bf16.mxu1 %v1636_v6 }
  0x61   : > { %861 = vmatmul.mubr.bf16.gmra.mrb[4].mxu0 %v1638_v7 }
  0x62   : > { %958 = vmatmul.mubr.bf16.gmra.mrb[4].mxu1 %v1639_v8  ;;  %868 = vmatprep.mubr.bf16.mxu0 %v1640_v9 }
  0x63   : > { %965 = vmatprep.mubr.bf16.mxu1 %v1642_v10 }
  0x69   : > { %869 = vmatmul.mubr.bf16.gmra.mrb[8].mxu0 %v1644_v11 }
  0x6a   : > { %966 = vmatmul.mubr.bf16.gmra.mrb[8].mxu1 %v1645_v12  ;;  %876 = vmatprep.mubr.bf16.mxu0 %v1646_v13 }
  0x6b   : > { %973 = vmatprep.mubr.bf16.mxu1 %v1648_v14  ;;  %v360_v14 = vld [vmem:[%s2332_s3 + $0x20] sm:$0xff] }
  0x71   : > { %877 = vmatmul.mubr.bf16.gmra.mrb[12].mxu0 %v1650_v15 }
  0x72   : > { %974 = vmatmul.mubr.bf16.gmra.mrb[12].mxu1 %v1651_v16  ;;  %884 = vmatprep.mubr.bf16.mxu0 %v1652_v17 }
  0x73   : > { %981 = vmatprep.mubr.bf16.mxu1 %v1654_v18 }
  0x79   : > { %885 = vmatmul.mubr.bf16.gmra.mrb[16].mxu0 %v1656_v19  ;;  %v361_v19 = vld [vmem:[%s2332_s3 + $0x28] sm:$0xff] }
  0x7a   : > { %982 = vmatmul.mubr.bf16.gmra.mrb[16].mxu1 %v1657_v20  ;;  %892 = vmatprep.mubr.bf16.mxu0 %v1658_v21 }
  0x7b   : > { %989 = vmatprep.mubr.bf16.mxu1 %v1660_v22 }
  0x81   : > { %893 = vmatmul.mubr.bf16.gmra.mrb[20].mxu0 %v1662_v23 }
  0x82   : > { %990 = vmatmul.mubr.bf16.gmra.mrb[20].mxu1 %v1663_v24  ;;  %900 = vmatprep.mubr.bf16.mxu0 %v1664_v25 }
  0x83   : > { %997 = vmatprep.mubr.bf16.mxu1 %v1666_v26 }
  0x89   : > { %901 = vmatmul.mubr.bf16.gmra.mrb[24].mxu0 %v1668_v27 }
  0x8a   : > { %998 = vmatmul.mubr.bf16.gmra.mrb[24].mxu1 %v1669_v28  ;;  %908 = vmatprep.mubr.bf16.mxu0 %v1670_v29 }
  0x8b   : > { %1005 = vmatprep.mubr.bf16.mxu1 %v1672_v30 }
  0x91   : > { %909 = vmatmul.mubr.bf16.gmra.mrb[28].mxu0 %v1674_v31 }
  0x92   : > { %1006 = vmatmul.mubr.bf16.gmra.mrb[28].mxu1 %v1675_v32  ;;  %v362_v32 = vld [vmem:[%s2332_s3 + $0x30] sm:$0xff] }
 0x12c   : > { %v1443_v33 = vpop.f32.mrb[0].mxu0 }
 0x12d   : > { %v1507_v34 = vpop.f32.mrb[0].mxu1  ;;  %v1444_v35 = vpop.f32.mrb[1].mxu0 }
 0x12e   : > { %v1445_v36 = vadd.f32 %v1444_v35, %v1443_v33  ;;  %v1508_v37 = vpop.f32.mrb[1].mxu1  ;;  %v1446_v38 = vpop.f32.mrb[2].mxu0 }
 0x12f   : > { %v1509_v39 = vadd.f32 %v1508_v37, %v1507_v34  ;;  %v1510_v40 = vpop.f32.mrb[2].mxu1  ;;  %v1447_v41 = vpop.f32.mrb[3].mxu0  ;;  %v363_v37 = vld [vmem:[%s2332_s3 + $0x38] sm:$0xff] }
 0x130   : > { %v1448_v43 = vadd.f32 %v1447_v41, %v1446_v38  ;;  %v1511_v44 = vpop.f32.mrb[3].mxu1 }
 0x131   : > { %v952_v45 = vadd.f32 %v1509_v39, %v1445_v36  ;;  %v1512_v46 = vadd.f32 %v1511_v44, %v1510_v40 }
 0x133   : > { %v1014_v48 = vadd.f32 %v952_v45, %v356_v42  ;;  %v955_v49 = vadd.f32 %v1512_v46, %v1448_v43 }
 0x134   : > { %v1449_v50 = vpop.f32.mrb[4].mxu0 }
 0x135   : > { %1030 = vst [vmem:[%s2332_s3] sm:$0xff] %v1014_v48  ;;  %v1015_v51 = vadd.f32 %v955_v49, %v357_v47  ;;  %v1513_v52 = vpop.f32.mrb[4].mxu1  ;;  %v1450_v53 = vpop.f32.mrb[5].mxu0 }
 0x136   : > { %v1451_v54 = vadd.f32 %v1450_v53, %v1449_v50  ;;  %v1514_v55 = vpop.f32.mrb[5].mxu1  ;;  %v1452_v56 = vpop.f32.mrb[6].mxu0  ;;  %v364_v50 = vld [vmem:[%s2332_s3 + $0x40] sm:$0xff] }
 0x137   : > { %1031 = vst [vmem:[%s2332_s3 + $0x8] sm:$0xff] %v1015_v51  ;;  %v1515_v57 = vadd.f32 %v1514_v55, %v1513_v52  ;;  %v1516_v58 = vpop.f32.mrb[6].mxu1  ;;  %v1453_v59 = vpop.f32.mrb[7].mxu0  ;;  %v365_v55 = vld [vmem:[%s2332_s3 + $0x48] sm:$0xff] }
 0x138   : > { %v1454_v61 = vadd.f32 %v1453_v59, %v1452_v56  ;;  %v1517_v62 = vpop.f32.mrb[7].mxu1 }
 0x139   : > { %v960_v63 = vadd.f32 %v1515_v57, %v1451_v54  ;;  %v1518_v0 = vadd.f32 %v1517_v62, %v1516_v58 }
 0x13b   : > { %v1016_v2 = vadd.f32 %v960_v63, %v358_v60  ;;  %v963_v3 = vadd.f32 %v1518_v0, %v1454_v61 }
 0x13c   : > { %v1455_v4 = vpop.f32.mrb[8].mxu0 }
 0x13d   : > { %1032 = vst [vmem:[%s2332_s3 + $0x10] sm:$0xff] %v1016_v2  ;;  %v1017_v5 = vadd.f32 %v963_v3, %v359_v1  ;;  %v1519_v6 = vpop.f32.mrb[8].mxu1  ;;  %v1456_v7 = vpop.f32.mrb[9].mxu0 }
 0x13e   : > { %v1457_v8 = vadd.f32 %v1456_v7, %v1455_v4  ;;  %v1520_v9 = vpop.f32.mrb[9].mxu1  ;;  %v1458_v10 = vpop.f32.mrb[10].mxu0  ;;  %v366_v4 = vld [vmem:[%s2332_s3 + $0x50] sm:$0xff] }
 0x13f   : > { %1033 = vst [vmem:[%s2332_s3 + $0x18] sm:$0xff] %v1017_v5  ;;  %v1521_v11 = vadd.f32 %v1520_v9, %v1519_v6  ;;  %v1522_v12 = vpop.f32.mrb[10].mxu1  ;;  %v1459_v13 = vpop.f32.mrb[11].mxu0  ;;  %v367_v9 = vld [vmem:[%s2332_s3 + $0x58] sm:$0xff] }
 0x140   : > { %v1460_v15 = vadd.f32 %v1459_v13, %v1458_v10  ;;  %v1523_v16 = vpop.f32.mrb[11].mxu1 }
 0x141   : > { %v968_v17 = vadd.f32 %v1521_v11, %v1457_v8  ;;  %v1524_v18 = vadd.f32 %v1523_v16, %v1522_v12 }
 0x143   : > { %v1018_v20 = vadd.f32 %v968_v17, %v360_v14  ;;  %v971_v21 = vadd.f32 %v1524_v18, %v1460_v15 }
 0x144   : > { %v1461_v22 = vpop.f32.mrb[12].mxu0 }
 0x145   : > { %1034 = vst [vmem:[%s2332_s3 + $0x20] sm:$0xff] %v1018_v20  ;;  %v1019_v23 = vadd.f32 %v971_v21, %v361_v19  ;;  %v1525_v24 = vpop.f32.mrb[12].mxu1  ;;  %v1462_v25 = vpop.f32.mrb[13].mxu0 }
 0x146   : > { %v1463_v26 = vadd.f32 %v1462_v25, %v1461_v22  ;;  %v1526_v27 = vpop.f32.mrb[13].mxu1  ;;  %v1464_v28 = vpop.f32.mrb[14].mxu0  ;;  %v368_v22 = vld [vmem:[%s2332_s3 + $0x60] sm:$0xff] }
 0x147   : > { %1035 = vst [vmem:[%s2332_s3 + $0x28] sm:$0xff] %v1019_v23  ;;  %v1527_v29 = vadd.f32 %v1526_v27, %v1525_v24  ;;  %v1528_v30 = vpop.f32.mrb[14].mxu1  ;;  %v1465_v31 = vpop.f32.mrb[15].mxu0  ;;  %v369_v27 = vld [vmem:[%s2332_s3 + $0x68] sm:$0xff] }
 0x148   : > { %v1466_v33 = vadd.f32 %v1465_v31, %v1464_v28  ;;  %v1529_v34 = vpop.f32.mrb[15].mxu1 }
 0x149   : > { %v976_v35 = vadd.f32 %v1527_v29, %v1463_v26  ;;  %v1530_v36 = vadd.f32 %v1529_v34, %v1528_v30 }
 0x14b   : > { %v1020_v38 = vadd.f32 %v976_v35, %v362_v32  ;;  %v979_v39 = vadd.f32 %v1530_v36, %v1466_v33 }
 0x14c   : > { %v1467_v40 = vpop.f32.mrb[16].mxu0 }
 0x14d   : > { %1036 = vst [vmem:[%s2332_s3 + $0x30] sm:$0xff] %v1020_v38  ;;  %v1021_v41 = vadd.f32 %v979_v39, %v363_v37  ;;  %v1531_v42 = vpop.f32.mrb[16].mxu1  ;;  %v1468_v43 = vpop.f32.mrb[17].mxu0 }
 0x14e   : > { %v1469_v44 = vadd.f32 %v1468_v43, %v1467_v40  ;;  %v1532_v45 = vpop.f32.mrb[17].mxu1  ;;  %v1470_v46 = vpop.f32.mrb[18].mxu0  ;;  %v370_v40 = vld [vmem:[%s2332_s3 + $0x70] sm:$0xff] }
 0x14f   : > { %1037 = vst [vmem:[%s2332_s3 + $0x38] sm:$0xff] %v1021_v41  ;;  %v1533_v47 = vadd.f32 %v1532_v45, %v1531_v42  ;;  %v1534_v48 = vpop.f32.mrb[18].mxu1  ;;  %v1471_v49 = vpop.f32.mrb[19].mxu0  ;;  %v371_v45 = vld [vmem:[%s2332_s3 + $0x78] sm:$0xff] }
 0x150   : > { %v1472_v51 = vadd.f32 %v1471_v49, %v1470_v46  ;;  %v1535_v52 = vpop.f32.mrb[19].mxu1  ;;  %v1050_v49 = vld [vmem:[%s2332_s3] sm:$0xff] (!%p1404_p11) }
 0x151   : > { %v984_v53 = vadd.f32 %v1533_v47, %v1469_v44  ;;  %v1536_v54 = vadd.f32 %v1535_v52, %v1534_v48 }
 0x153   : > { %v1022_v56 = vadd.f32 %v984_v53, %v364_v50  ;;  %v987_v57 = vadd.f32 %v1536_v54, %v1472_v51  ;;  %v2139_v50 = vld [vmem:[%s2331_s2] ss:$0 sm:$0xff] (!%p1404_p11)  ;;  %v1051_v51 = vld [vmem:[%s2332_s3 + $0x8] sm:$0xff] (!%p1404_p11)  ;;  %v1052_v54 = vld [vmem:[%s2332_s3 + $0x10] sm:$0xff] (!%p1404_p11) }
 0x154   : > { %v1473_v58 = vpop.f32.mrb[20].mxu0  ;;  %v2145_v52 = vadd.f32 (!%p1404_p11), %v2139_v50, %v1050_v49  ;;  %v2148_v53 = vadd.f32 (!%p1404_p11), %v2139_v50, %v1051_v51 }
 0x155   : > { %1038 = vst [vmem:[%s2332_s3 + $0x40] sm:$0xff] %v1022_v56  ;;  %v1023_v59 = vadd.f32 %v987_v57, %v365_v55  ;;  %v1537_v60 = vpop.f32.mrb[20].mxu1  ;;  %v1474_v61 = vpop.f32.mrb[21].mxu0  ;;  %v1053_v55 = vld [vmem:[%s2332_s3 + $0x18] sm:$0xff] (!%p1404_p11)  ;;  %v1054_v56 = vld [vmem:[%s2332_s3 + $0x20] sm:$0xff] (!%p1404_p11)  ;;  %v2160_v57 = vadd.f32 (!%p1404_p11), %v2139_v50, %v1052_v54 }
 0x156   : > { %v1475_v62 = vadd.f32 %v1474_v61, %v1473_v58  ;;  %v1538_v63 = vpop.f32.mrb[21].mxu1  ;;  %v1476_v0 = vpop.f32.mrb[22].mxu0  ;;  %v2163_v58 = vadd.f32 (!%p1404_p11), %v2139_v50, %v1053_v55  ;;  %v1056_v61 = vld [vmem:[%s2332_s3 + $0x30] sm:$0xff] (!%p1404_p11) }
 0x157   : > { %1039 = vst [vmem:[%s2332_s3 + $0x48] sm:$0xff] %v1023_v59  ;;  %v1539_v1 = vadd.f32 %v1538_v63, %v1537_v60  ;;  %v1540_v2 = vpop.f32.mrb[22].mxu1  ;;  %v1477_v3 = vpop.f32.mrb[23].mxu0  ;;  %v2166_v59 = vadd.f32 (!%p1404_p11), %v2139_v50, %v1054_v56  ;;  %v1055_v60 = vld [vmem:[%s2332_s3 + $0x28] sm:$0xff] (!%p1404_p11)  ;;  %v1406_v63 = vmul.f32 (!%p1404_p11), -1.442695, %v2145_v52 }
 0x158   : > { %v1478_v5 = vadd.f32 %v1477_v3, %v1476_v0  ;;  %v1541_v6 = vpop.f32.mrb[23].mxu1  ;;  %v1407_v0 = vmul.f32 (!%p1404_p11), -1.442695, %v2148_v53 }
 0x159   : > { %v992_v7 = vadd.f32 %v1539_v1, %v1475_v62  ;;  %v1542_v8 = vadd.f32 %v1541_v6, %v1540_v2  ;;  %v1057_v62 = vld [vmem:[%s2332_s3 + $0x38] sm:$0xff] (!%p1404_p11)  ;;  %v2180_v1 = vadd.f32 (!%p1404_p11), %v2139_v50, %v1055_v60  ;;  %v2183_v2 = vadd.f32 (!%p1404_p11), %v2139_v50, %v1056_v61 }
 0x15a   : > { %v1409_v6 = vmul.f32 (!%p1404_p11), -1.442695, %v2163_v58  ;;  %1676 = vpow2.f32 (!%p1404_p11), %v1406_v63 }
 0x15b   : > { %v1024_v10 = vadd.f32 %v992_v7, %v366_v4  ;;  %v995_v11 = vadd.f32 %v1542_v8, %v1478_v5  ;;  %v1408_v5 = vmul.f32 (!%p1404_p11), -1.442695, %v2160_v57  ;;  %v2194_v7 = vadd.f32 (!%p1404_p11), %v2139_v50, %v1057_v62 }
 0x15c   : > { %v1479_v12 = vpop.f32.mrb[24].mxu0  ;;  %v1058_v3 = vld [vmem:[%s2332_s3 + $0x40] sm:$0xff] (!%p1404_p11)  ;;  %v1410_v8 = vmul.f32 (!%p1404_p11), -1.442695, %v2166_v59  ;;  %1678 = vpow2.f32 (!%p1404_p11), %v1407_v0 }
 0x15d   : > { %1040 = vst [vmem:[%s2332_s3 + $0x50] sm:$0xff] %v1024_v10  ;;  %v1025_v13 = vadd.f32 %v995_v11, %v367_v9  ;;  %v1543_v14 = vpop.f32.mrb[24].mxu1  ;;  %v1480_v15 = vpop.f32.mrb[25].mxu0  ;;  %v2198_v9 = vadd.f32 (!%p1404_p11), %v2139_v50, %v1058_v3  ;;  %1680 = vpow2.f32 (!%p1404_p11), %v1408_v5 }
 0x15e   : > { %v1481_v16 = vadd.f32 %v1480_v15, %v1479_v12  ;;  %v1544_v17 = vpop.f32.mrb[25].mxu1  ;;  %v1482_v18 = vpop.f32.mrb[26].mxu0  ;;  %v1059_v4 = vld [vmem:[%s2332_s3 + $0x48] sm:$0xff] (!%p1404_p11)  ;;  %v1411_v12 = vmul.f32 (!%p1404_p11), -1.442695, %v2180_v1  ;;  %1682 = vpow2.f32 (!%p1404_p11), %v1409_v6 }
 0x15f   : > { %1041 = vst [vmem:[%s2332_s3 + $0x58] sm:$0xff] %v1025_v13  ;;  %v1545_v19 = vadd.f32 %v1544_v17, %v1543_v14  ;;  %v1546_v20 = vpop.f32.mrb[26].mxu1  ;;  %v1483_v21 = vpop.f32.mrb[27].mxu0  ;;  %v2208_v13 = vadd.f32 (!%p1404_p11), %v2139_v50, %v1059_v4  ;;  %v1412_v15 = vmul.f32 (!%p1404_p11), -1.442695, %v2183_v2  ;;  %1684 = vpow2.f32 (!%p1404_p11), %v1410_v8 }
 0x160   : > { %v1484_v23 = vadd.f32 %v1483_v21, %v1482_v18  ;;  %v1547_v24 = vpop.f32.mrb[27].mxu1  ;;  %v1413_v17 = vmul.f32 (!%p1404_p11), -1.442695, %v2194_v7  ;;  %1686 = vpow2.f32 (!%p1404_p11), %v1411_v12 }
 0x161   : > { %v1000_v25 = vadd.f32 %v1545_v19, %v1481_v16  ;;  %v1548_v26 = vadd.f32 %v1547_v24, %v1546_v20  ;;  %v1414_v19 = vmul.f32 (!%p1404_p11), -1.442695, %v2198_v9  ;;  %v1415_v21 = vmul.f32 (!%p1404_p11), -1.442695, %v2208_v13 }
 0x162   : > { %1688 = vpow2.f32 (!%p1404_p11), %v1412_v15 }
 0x163   : > { %v1026_v28 = vadd.f32 %v1000_v25, %v368_v22  ;;  %v1003_v29 = vadd.f32 %v1548_v26, %v1484_v23  ;;  %1690 = vpow2.f32 (!%p1404_p11), %v1413_v17 }
 0x164   : > { %v1485_v30 = vpop.f32.mrb[28].mxu0  ;;  %v1060_v10 = vld [vmem:[%s2332_s3 + $0x50] sm:$0xff] (!%p1404_p11)  ;;  %1692 = vpow2.f32 (!%p1404_p11), %v1414_v19  ;;  %v1677_v25 = vpop.eup (!%p1404_p11), %1676 }
 0x165   : > { %1042 = vst [vmem:[%s2332_s3 + $0x60] sm:$0xff] %v1026_v28  ;;  %v1027_v31 = vadd.f32 %v1003_v29, %v369_v27  ;;  %v1549_v32 = vpop.f32.mrb[28].mxu1  ;;  %v1486_v33 = vpop.f32.mrb[29].mxu0  ;;  %v2215_v16 = vadd.f32 (!%p1404_p11), %v2139_v50, %v1060_v10  ;;  %1694 = vpow2.f32 (!%p1404_p11), %v1415_v21  ;;  %v1137_v27 = vadd.f32 (!%p1404_p11), 1.0, %v1677_v25 }
 0x166   : > { %v1487_v34 = vadd.f32 %v1486_v33, %v1485_v30  ;;  %v1550_v35 = vpop.f32.mrb[29].mxu1  ;;  %v1488_v36 = vpop.f32.mrb[30].mxu0  ;;  %v1061_v11 = vld [vmem:[%s2332_s3 + $0x58] sm:$0xff] (!%p1404_p11) }
 0x167   : > { %1043 = vst [vmem:[%s2332_s3 + $0x68] sm:$0xff] %v1027_v31  ;;  %v1551_v37 = vadd.f32 %v1550_v35, %v1549_v32  ;;  %v1552_v38 = vpop.f32.mrb[30].mxu1  ;;  %v1489_v39 = vpop.f32.mrb[31].mxu0  ;;  %v2219_v18 = vadd.f32 (!%p1404_p11), %v2139_v50, %v1061_v11  ;;  %v1416_v22 = vmul.f32 (!%p1404_p11), -1.442695, %v2215_v16 }
 0x168   : > { %v1490_v41 = vadd.f32 %v1489_v39, %v1488_v36  ;;  %v1553_v42 = vpop.f32.mrb[31].mxu1  ;;  %v1679_v26 = vpop.eup (!%p1404_p11), %1678 }
 0x169   : > { %v1008_v43 = vadd.f32 %v1551_v37, %v1487_v34  ;;  %v1554_v44 = vadd.f32 %v1553_v42, %v1552_v38  ;;  %1049 = sbr.rel (%p1404_p11) target bundleno = 412 (0x19c), region = 63  ;;  %v1417_v23 = vmul.f32 (!%p1404_p11), -1.442695, %v2219_v18  ;;  %1696 = vpow2.f32 (!%p1404_p11), %v1416_v22  ;;  %v1681_v28 = vpop.eup (!%p1404_p11), %1680 }
 0x16a   : > { %v1138_v29 = vadd.f32 (!%p1404_p11), 1.0, %v1679_v26  ;;  %v1683_v30 = vpop.eup (!%p1404_p11), %1682  ;;  %v1139_v31 = vadd.f32 (!%p1404_p11), 1.0, %v1681_v28 }
 0x16b   : > { %v1028_v46 = vadd.f32 %v1008_v43, %v370_v40  ;;  %v1011_v47 = vadd.f32 %v1554_v44, %v1490_v41  ;;  %1698 = vpow2.f32 (!%p1404_p11), %v1417_v23  ;;  %v1685_v32 = vpop.eup (!%p1404_p11), %1684  ;;  %v1140_v33 = vadd.f32 (!%p1404_p11), 1.0, %v1683_v30 }
 0x16c   : > { %v1062_v14 = vld [vmem:[%s2332_s3 + $0x60] sm:$0xff] (!%p1404_p11)  ;;  %v1687_v34 = vpop.eup (!%p1404_p11), %1686  ;;  %v1141_v35 = vadd.f32 (!%p1404_p11), 1.0, %v1685_v32 }
 0x16d   : > { %1044 = vst [vmem:[%s2332_s3 + $0x70] sm:$0xff] %v1028_v46  ;;  %v1029_v48 = vadd.f32 %v1011_v47, %v371_v45  ;;  %v2223_v20 = vadd.f32 (!%p1404_p11), %v2139_v50, %v1062_v14  ;;  %v1689_v37 = vpop.eup (!%p1404_p11), %1688  ;;  %v1142_v38 = vadd.f32 (!%p1404_p11), 1.0, %v1687_v34 }
 0x16e   : > { %v1063_v36 = vld [vmem:[%s2332_s3 + $0x68] sm:$0xff] (!%p1404_p11)  ;;  %v1691_v40 = vpop.eup (!%p1404_p11), %1690  ;;  %v1143_v41 = vadd.f32 (!%p1404_p11), 1.0, %v1689_v37 }
 0x16f   : > { %1045 = vst [vmem:[%s2332_s3 + $0x78] sm:$0xff] %v1029_v48  ;;  %v1418_v24 = vmul.f32 (!%p1404_p11), -1.442695, %v2223_v20  ;;  %v1693_v43 = vpop.eup (!%p1404_p11), %1692  ;;  %v1144_v44 = vadd.f32 (!%p1404_p11), 1.0, %v1691_v40  ;;  %v2239_v45 = vadd.f32 (!%p1404_p11), %v2139_v50, %v1063_v36 }
 0x170   : > { %v1695_v46 = vpop.eup %1694  ;;  %v1145_v47 = vadd.f32 1.0, %v1693_v43 }
 0x171   : > { %1700 = vpow2.f32 %v1418_v24  ;;  %v1146_v51 = vadd.f32 1.0, %v1695_v46  ;;  %v1419_v62 = vmul.f32 -1.442695, %v2239_v45 }
 0x172   : > { %1702 = vrcp.f32 %v1137_v27 }
 0x173   : > { %1704 = vrcp.f32 %v1138_v29  ;;  %v1697_v49 = vpop.eup %1696 }
 0x174   : > { %1706 = vrcp.f32 %v1139_v31  ;;  %v1064_v39 = vld [vmem:[%s2332_s3 + $0x70] sm:$0xff]  ;;  %v1147_v56 = vadd.f32 1.0, %v1697_v49 }
 0x175   : > { %1708 = vrcp.f32 %v1140_v33  ;;  %v2242_v48 = vadd.f32 %v2139_v50, %v1064_v39  ;;  %v1699_v55 = vpop.eup %1698 }
 0x176   : > { %1710 = vrcp.f32 %v1141_v35  ;;  %v1065_v42 = vld [vmem:[%s2332_s3 + $0x78] sm:$0xff]  ;;  %v1148_v61 = vadd.f32 1.0, %v1699_v55 }
 0x177   : > { %1712 = vrcp.f32 %v1142_v38  ;;  %v2245_v54 = vadd.f32 %v2139_v50, %v1065_v42  ;;  %v1420_v3 = vmul.f32 -1.442695, %v2242_v48 }
 0x178   : > { %1714 = vrcp.f32 %v1143_v41 }
 0x179   : > { %1716 = vrcp.f32 %v1144_v44  ;;  %v1421_v50 = vmul.f32 -1.442695, %v2245_v54 }
 0x17a   : > { %1718 = vrcp.f32 %v1145_v47 }
 0x17b   : > { %v1701_v60 = vpop.eup %1700  ;;  %1720 = vrcp.f32 %v1146_v51 }
 0x17c   : > { %v1703_v63 = vpop.eup %1702  ;;  %1722 = vrcp.f32 %v1147_v56  ;;  %v1149_v0 = vadd.f32 1.0, %v1701_v60 }
 0x17d   : > { %v1705_v4 = vpop.eup %1704  ;;  %v1185_v5 = vmul.f32 %v1703_v63, %v2145_v52  ;;  %1724 = vrcp.f32 %v1148_v61 }
 0x17e   : > { %v1707_v6 = vpop.eup %1706  ;;  %v1186_v8 = vmul.f32 %v1705_v4, %v2148_v53  ;;  %1726 = vrcp.f32 %v1149_v0 }
 0x17f   : > { %v1709_v10 = vpop.eup %1708  ;;  %1201 = vst [vmem:[%s2332_s3] sm:$0xff] %v1185_v5  ;;  %v1187_v11 = vmul.f32 %v1707_v6, %v2160_v57  ;;  %1728 = vpow2.f32 %v1419_v62 }
 0x180   : > { %v1711_v12 = vpop.eup %1710  ;;  %1202 = vst [vmem:[%s2332_s3 + $0x8] sm:$0xff] %v1186_v8  ;;  %v1188_v52 = vmul.f32 %v1709_v10, %v2163_v58  ;;  %1730 = vpow2.f32 %v1420_v3 }
 0x181   : > { %v1713_v14 = vpop.eup %1712  ;;  %1203 = vst [vmem:[%s2332_s3 + $0x10] sm:$0xff] %v1187_v11  ;;  %v1189_v53 = vmul.f32 %v1711_v12, %v2166_v59  ;;  %1732 = vpow2.f32 %v1421_v50 }
 0x182   : > { %v1715_v15 = vpop.eup %1714  ;;  %1204 = vst [vmem:[%s2332_s3 + $0x18] sm:$0xff] %v1188_v52  ;;  %v1190_v57 = vmul.f32 %v1713_v14, %v2180_v1 }
 0x183   : > { %v1717_v17 = vpop.eup %1716  ;;  %1205 = vst [vmem:[%s2332_s3 + $0x20] sm:$0xff] %v1189_v53  ;;  %v1191_v58 = vmul.f32 %v1715_v15, %v2183_v2 }
 0x184   : > { %v1719_v19 = vpop.eup %1718  ;;  %1206 = vst [vmem:[%s2332_s3 + $0x28] sm:$0xff] %v1190_v57  ;;  %v1192_v59 = vmul.f32 %v1717_v17, %v2194_v7 }
 0x185   : > { %v1721_v21 = vpop.eup %1720  ;;  %1207 = vst [vmem:[%s2332_s3 + $0x30] sm:$0xff] %v1191_v58  ;;  %v1193_v1 = vmul.f32 %v1719_v19, %v2198_v9 }
 0x186   : > { %v1723_v22 = vpop.eup %1722  ;;  %1208 = vst [vmem:[%s2332_s3 + $0x38] sm:$0xff] %v1192_v59  ;;  %v1194_v2 = vmul.f32 %v1721_v21, %v2208_v13 }
 0x187   : > { %v1725_v23 = vpop.eup %1724  ;;  %1209 = vst [vmem:[%s2332_s3 + $0x40] sm:$0xff] %v1193_v1  ;;  %v1195_v7 = vmul.f32 %v1723_v22, %v2215_v16 }
 0x188   : > { %v1727_v24 = vpop.eup %1726  ;;  %1210 = vst [vmem:[%s2332_s3 + $0x48] sm:$0xff] %v1194_v2  ;;  %v1196_v9 = vmul.f32 %v1725_v23, %v2219_v18 }
 0x189   : > { %v1729_v25 = vpop.eup %1728  ;;  %1211 = vst [vmem:[%s2332_s3 + $0x50] sm:$0xff] %v1195_v7  ;;  %v1197_v13 = vmul.f32 %v1727_v24, %v2223_v20 }
 0x18a   : > { %v1731_v26 = vpop.eup %1730  ;;  %1212 = vst [vmem:[%s2332_s3 + $0x58] sm:$0xff] %v1196_v9  ;;  %v1150_v16 = vadd.f32 1.0, %v1729_v25 }
 0x18b   : > { %v1733_v27 = vpop.eup %1732  ;;  %1213 = vst [vmem:[%s2332_s3 + $0x60] sm:$0xff] %v1197_v13  ;;  %v1151_v28 = vadd.f32 1.0, %v1731_v26 }
 0x18c   : > { %1734 = vrcp.f32 %v1150_v16  ;;  %v1152_v18 = vadd.f32 1.0, %v1733_v27 }
 0x18d   : > { %1736 = vrcp.f32 %v1151_v28 }
 0x18e   : > { %1738 = vrcp.f32 %v1152_v18 }
 0x196   : > { %v1735_v29 = vpop.eup %1734 }
 0x197   : > { %v1737_v30 = vpop.eup %1736  ;;  %v1198_v20 = vmul.f32 %v1735_v29, %v2239_v45 }
 0x198   : > { %v1739_v31 = vpop.eup %1738  ;;  %v1199_v32 = vmul.f32 %v1737_v30, %v2242_v48 }
 0x199   : > { %1214 = vst [vmem:[%s2332_s3 + $0x68] sm:$0xff] %v1198_v20  ;;  %v1200_v33 = vmul.f32 %v1739_v31, %v2245_v54 }
 0x19a   : > { %1215 = vst [vmem:[%s2332_s3 + $0x70] sm:$0xff] %v1199_v32 }
 0x19b   : > { %1216 = vst [vmem:[%s2332_s3 + $0x78] sm:$0xff] %v1200_v33 }
 0x19c PF: > { %s13_s16 = sadd.s32 1, %s1778_s16   ;;  %s2333_s12 = smov %s1766_s13 }
 0x19d   : > { %p10_p12 = scmp.ge.s32.totalorder %s13_s16, 4   ;;  %s2334_s13 = smov %s1836_s20 }
 0x19e   : > { %s2335_s14 = smov %s1774_s15  ;;  %s2336_s15 = smov %s2338_s17 }
 0x19f   :  { %12 = sbr.rel (!%p10_p12) target bundleno = 3 (0x3), region = 104 }

// kernel: image_encoder_forward.8
= control target key start
LH: loop header
LB: loop body
LE: loop exit
PB: predicated region body
PF: predicated region fallthrough
CT: control target
= control target key end

     0   :  { %s2235_s0 = inlined_call_operand.vmem [shape: bf16[64,2048], index: 0, kind: input, shape index: {}]   ;;  %s2236_s1 = inlined_call_operand.vmem [shape: bf16[2048,256], index: 1, kind: input, shape index: {}]   ;;  %s2237_s2 = inlined_call_operand.vmem [shape: f32[1,256], index: 2, kind: input, shape index: {}]   ;;  %s2238_s3 = inlined_call_operand.vmem [shape: f32[64,256], index: 3, kind: output, shape index: {}]  }
   0x1   :  { %2240 = sst [smem:[#allocation6_spill]] %s2235_s0 }
   0x2   :  { %2241 = sst [smem:[#allocation7_spill]] %s2236_s1 }
   0x3   :  { %s1810_s12 = smov 0   ;;  %s1812_s13 = smov 0  }
   0x4   :  { %s1814_s14 = smov 0   ;;  %s1816_s15 = smov 0  }
   0x5   :  { %s1818_s16 = smov 0   ;;  %s1820_s17 = smov 0  }
   0x6   :  { %s1822_s18 = smov 0   ;;  %s1824_s19 = smov 0  }
   0x7   :  { %s1826_s20 = smov 0   ;;  %s1828_s21 = smov 0  }
   0x8   :  { %s1830_s22 = smov 0  }
   0x9 LB: > { %s1364_s23 = sadd.s32 4294967295, %s1787_s22   ;;  %s25_s24 = sadd.s32 1, %s1779_s20  ;;  %s1787_s22 = sphi %s1830_s22, %s13_s22   ;;  %s1783_s21 = sphi %s1828_s21, %s2258_s21   ;;  %s1779_s20 = sphi %s1826_s20, %s2257_s20   ;;  %s1775_s19 = sphi %s1824_s19, %s2256_s19   ;;  %s1771_s18 = sphi %s1822_s18, %s2255_s18   ;;  %s1767_s17 = sphi %s1820_s17, %s2254_s17   ;;  %s1763_s16 = sphi %s1818_s16, %s2253_s16   ;;  %s1759_s15 = sphi %s1816_s15, %s2252_s15   ;;  %s1755_s14 = sphi %s1814_s14, %s2251_s14   ;;  %s1751_s13 = sphi %s1812_s13, %s2250_s13   ;;  %s1747_s12 = sphi %s1810_s12, %s2249_s12  }
   0xa   : > { %p26_p0 = scmp.ge.s32.totalorder %s25_s24, 4  ;;  %s28_s25 = sadd.s32 1, %s1783_s21 }
   0xb   : > { %s41_s26 = sadd.s32 1, %s1767_s17  ;;  %p48_p1 = scmp.ne.s32.totalorder %s1767_s17, %s1763_s16 }
   0xc   : > { %s2260_s24 = smov (%p26_p0, %s25_s24), 0  ;;  %s2262_s25 = smov (!%p26_p0, %s28_s25), %s1783_s21 }
   0xd   : > { %s37_s27 = ssub.s32 %s1779_s20, %s2260_s24  ;;  %p49_p2 = scmp.eq.s32.totalorder %s1787_s22, 0 }
   0xe   : > { %p30_p3 = scmp.ge.s32.totalorder %s2262_s25, 2  ;;  %p39_p4 = scmp.eq.s32.totalorder %s37_s27, 0 }
   0xf   : > { %p1877_p5 = por %p49_p2, %p48_p1  ;;  %s69_s29 = sadd.s32 1, %s1759_s15 }
  0x10   : > { %s2264_s25 = smov (%p30_p3, %s2262_s25), 0  ;;  %p76_p6 = scmp.ne.s32.totalorder %s1759_s15, %s1755_s14 }
  0x11   : > { %2243 = sst [smem:[#allocation5_spill]] %s2264_s25  ;;  %s65_s4 = ssub.s32 %s1783_s21, %s2264_s25 }
  0x12   : > { %s1885_s30 = scalar_select %p39_p4, %s1767_s17, %s41_s26  }
  0x13   : > { %s66_s5 = sor.u32 %s65_s4, %s37_s27  ;;  %p121_p7 = scmp.eq.s32.totalorder %s65_s4, 0 }
  0x14   : > { %p67_p8 = scmp.eq.s32.totalorder %s66_s5, 0  ;;  %p1891_p9 = por %p76_p6, %p49_p2 }
  0x15   : > { %s123_s7 = sadd.s32 1, %s1751_s13  ;;  %p133_p10 = scmp.ne.s32.totalorder %s1751_s13, %s1747_s12 }
  0x16   : > { %s1899_s8 = scalar_select %p67_p8, %s1759_s15, %s69_s29  }
  0x17   : > { %s1902_s9 = scalar_select %p121_p7, %s1751_s13, %s123_s7  }
  0x18   : > { %p134_p11 = scmp.eq.s32.totalorder %s1364_s23, 7  ;;  %p1367_p13 = scmp.ge.s32.totalorder %s1787_s22, 8 }
  0x1a   : > { %p1904_p12 = por %p134_p11, %p133_p10  ;;  %156 = sbr.rel (%p1367_p13) target bundleno = 103 (0x67), region = 16 }
  0x21   : > { %159 = sbr.rel (!%p1877_p5) target bundleno = 51 (0x33), region = 20  ;;  %s161_s11 = sand.u32 (%p1877_p5), 1, %s1767_s17  }
  0x22   : > { %s1442_s26 = sshll.u32 (%p1877_p5), %s1779_s20, 4  ;;  %s1368_s27 = sshll.u32 (%p1877_p5), %s161_s11, 7 }
  0x23   : > { %s2246_s0 = sld [smem:[#allocation6_spill]] (%p1877_p5)  ;;  %s163_s23 = scalar_lea.vmem (%p1877_p5), [#allocation2], %s1368_s27 }
  0x29   : > { %s1916_s5 = scalar_lea.vmem %s2246_s0, %s1442_s26 }
  0x2a   : > { %v182_v0 = vld [vmem:[%s1916_s5] sm:$0xff]  ;;  %v184_v1 = vld [vmem:[%s1916_s5 + $0x8] sm:$0xff] }
  0x2b   : > { %v186_v2 = vld [vmem:[%s1916_s5 + $0x40] sm:$0xff]  ;;  %183 = vst [vmem:[%s163_s23] sm:$0xff] %v182_v0  ;;  %185 = vst [vmem:[%s163_s23 + $0x8] sm:$0xff] %v184_v1  ;;  %v188_v3 = vld [vmem:[%s1916_s5 + $0x48] sm:$0xff] }
  0x2c   : > { %187 = vst [vmem:[%s163_s23 + $0x10] sm:$0xff] %v186_v2  ;;  %v190_v4 = vld [vmem:[%s1916_s5 + $0x80] sm:$0xff]  ;;  %v192_v5 = vld [vmem:[%s1916_s5 + $0x88] sm:$0xff]  ;;  %189 = vst [vmem:[%s163_s23 + $0x18] sm:$0xff] %v188_v3 }
  0x2d   : > { %191 = vst [vmem:[%s163_s23 + $0x20] sm:$0xff] %v190_v4  ;;  %193 = vst [vmem:[%s163_s23 + $0x28] sm:$0xff] %v192_v5  ;;  %v194_v6 = vld [vmem:[%s1916_s5 + $0xc0] sm:$0xff]  ;;  %v196_v7 = vld [vmem:[%s1916_s5 + $0xc8] sm:$0xff] }
  0x2e   : > { %v198_v8 = vld [vmem:[%s1916_s5 + $0x100] sm:$0xff]  ;;  %195 = vst [vmem:[%s163_s23 + $0x30] sm:$0xff] %v194_v6  ;;  %197 = vst [vmem:[%s163_s23 + $0x38] sm:$0xff] %v196_v7  ;;  %v200_v9 = vld [vmem:[%s1916_s5 + $0x108] sm:$0xff] }
  0x2f   : > { %199 = vst [vmem:[%s163_s23 + $0x40] sm:$0xff] %v198_v8  ;;  %v202_v10 = vld [vmem:[%s1916_s5 + $0x140] sm:$0xff]  ;;  %v204_v11 = vld [vmem:[%s1916_s5 + $0x148] sm:$0xff]  ;;  %201 = vst [vmem:[%s163_s23 + $0x48] sm:$0xff] %v200_v9 }
  0x30   : > { %203 = vst [vmem:[%s163_s23 + $0x50] sm:$0xff] %v202_v10  ;;  %205 = vst [vmem:[%s163_s23 + $0x58] sm:$0xff] %v204_v11  ;;  %v206_v12 = vld [vmem:[%s1916_s5 + $0x180] sm:$0xff]  ;;  %v208_v13 = vld [vmem:[%s1916_s5 + $0x188] sm:$0xff] }
  0x31   : > { %v210_v14 = vld [vmem:[%s1916_s5 + $0x1c0] sm:$0xff]  ;;  %207 = vst [vmem:[%s163_s23 + $0x60] sm:$0xff] %v206_v12  ;;  %209 = vst [vmem:[%s163_s23 + $0x68] sm:$0xff] %v208_v13  ;;  %v212_v15 = vld [vmem:[%s1916_s5 + $0x1c8] sm:$0xff] }
  0x32   : > { %211 = vst [vmem:[%s163_s23 + $0x70] sm:$0xff] %v210_v14  ;;  %213 = vst [vmem:[%s163_s23 + $0x78] sm:$0xff] %v212_v15 }
  0x33 PF: > { %219 = sbr.rel (!%p1891_p9) target bundleno = 103 (0x67), region = 43  ;;  %s221_s28 = sand.u32 (%p1891_p9), 1, %s1759_s15  }
  0x34   : > { %s1443_s7 = sshll.u32 (%p1891_p9), %s1779_s20, 7  ;;  %s1371_s11 = sshll.u32 (%p1891_p9), %s221_s28, 8 }
  0x35   : > { %s226_s26 = sadd.s32 (%p1891_p9), %s1783_s21, %s1443_s7  ;;  %s2247_s1 = sld [smem:[#allocation7_spill]] (%p1891_p9) }
  0x36   : > { %s1374_s27 = sshll.u32 (%p1891_p9), %s226_s26, 2  ;;  %s1947_s6 = scalar_lea.vmem (%p1891_p9), [#allocation3], %s1371_s11 }
  0x3b   : > { %s1942_s0 = scalar_lea.vmem %s2247_s1, %s1374_s27 }
  0x3c   : > { %v244_v16 = vld [vmem:[%s1942_s0] sm:$0xf]  ;;  %v246_v17 = vld [vmem:[%s1942_s0 + $0x8] sm:$0xf]  ;;  %v248_v18 = vld [vmem:[%s1942_s0 + $0x10] sm:$0xf] }
  0x3d   : > { %245 = vst [vmem:[%s1947_s6] sm:$0xf] %v244_v16  ;;  %247 = vst [vmem:[%s1947_s6 + $0x4] sm:$0xf] %v246_v17  ;;  %v250_v19 = vld [vmem:[%s1942_s0 + $0x18] sm:$0xf] }
  0x3e   : > { %249 = vst [vmem:[%s1947_s6 + $0x8] sm:$0xf] %v248_v18  ;;  %v252_v20 = vld [vmem:[%s1942_s0 + $0x20] sm:$0xf]  ;;  %v254_v21 = vld [vmem:[%s1942_s0 + $0x28] sm:$0xf] }
  0x3f   : > { %251 = vst [vmem:[%s1947_s6 + $0xc] sm:$0xf] %v250_v19  ;;  %253 = vst [vmem:[%s1947_s6 + $0x10] sm:$0xf] %v252_v20  ;;  %v256_v22 = vld [vmem:[%s1942_s0 + $0x30] sm:$0xf] }
  0x40   : > { %255 = vst [vmem:[%s1947_s6 + $0x14] sm:$0xf] %v254_v21  ;;  %v258_v23 = vld [vmem:[%s1942_s0 + $0x38] sm:$0xf]  ;;  %v260_v24 = vld [vmem:[%s1942_s0 + $0x40] sm:$0xf] }
  0x41   : > { %257 = vst [vmem:[%s1947_s6 + $0x18] sm:$0xf] %v256_v22  ;;  %259 = vst [vmem:[%s1947_s6 + $0x1c] sm:$0xf] %v258_v23  ;;  %v262_v25 = vld [vmem:[%s1942_s0 + $0x48] sm:$0xf] }
  0x42   : > { %261 = vst [vmem:[%s1947_s6 + $0x20] sm:$0xf] %v260_v24  ;;  %v264_v26 = vld [vmem:[%s1942_s0 + $0x50] sm:$0xf]  ;;  %v266_v27 = vld [vmem:[%s1942_s0 + $0x58] sm:$0xf] }
  0x43   : > { %263 = vst [vmem:[%s1947_s6 + $0x24] sm:$0xf] %v262_v25  ;;  %265 = vst [vmem:[%s1947_s6 + $0x28] sm:$0xf] %v264_v26  ;;  %v268_v28 = vld [vmem:[%s1942_s0 + $0x60] sm:$0xf] }
  0x44   : > { %267 = vst [vmem:[%s1947_s6 + $0x2c] sm:$0xf] %v266_v27  ;;  %v270_v29 = vld [vmem:[%s1942_s0 + $0x68] sm:$0xf]  ;;  %v272_v30 = vld [vmem:[%s1942_s0 + $0x70] sm:$0xf] }
  0x45   : > { %269 = vst [vmem:[%s1947_s6 + $0x30] sm:$0xf] %v268_v28  ;;  %271 = vst [vmem:[%s1947_s6 + $0x34] sm:$0xf] %v270_v29  ;;  %v274_v31 = vld [vmem:[%s1942_s0 + $0x78] sm:$0xf] }
  0x46   : > { %273 = vst [vmem:[%s1947_s6 + $0x38] sm:$0xf] %v272_v30  ;;  %v276_v32 = vld [vmem:[%s1942_s0 + $0x80] sm:$0xf]  ;;  %v278_v33 = vld [vmem:[%s1942_s0 + $0x88] sm:$0xf] }
  0x47   : > { %275 = vst [vmem:[%s1947_s6 + $0x3c] sm:$0xf] %v274_v31  ;;  %277 = vst [vmem:[%s1947_s6 + $0x40] sm:$0xf] %v276_v32  ;;  %v280_v34 = vld [vmem:[%s1942_s0 + $0x90] sm:$0xf] }
  0x48   : > { %279 = vst [vmem:[%s1947_s6 + $0x44] sm:$0xf] %v278_v33  ;;  %v282_v35 = vld [vmem:[%s1942_s0 + $0x98] sm:$0xf]  ;;  %v284_v36 = vld [vmem:[%s1942_s0 + $0xa0] sm:$0xf] }
  0x49   : > { %281 = vst [vmem:[%s1947_s6 + $0x48] sm:$0xf] %v280_v34  ;;  %283 = vst [vmem:[%s1947_s6 + $0x4c] sm:$0xf] %v282_v35  ;;  %v286_v37 = vld [vmem:[%s1942_s0 + $0xa8] sm:$0xf] }
  0x4a   : > { %285 = vst [vmem:[%s1947_s6 + $0x50] sm:$0xf] %v284_v36  ;;  %v288_v38 = vld [vmem:[%s1942_s0 + $0xb0] sm:$0xf]  ;;  %v290_v39 = vld [vmem:[%s1942_s0 + $0xb8] sm:$0xf] }
  0x4b   : > { %287 = vst [vmem:[%s1947_s6 + $0x54] sm:$0xf] %v286_v37  ;;  %289 = vst [vmem:[%s1947_s6 + $0x58] sm:$0xf] %v288_v38  ;;  %v292_v40 = vld [vmem:[%s1942_s0 + $0xc0] sm:$0xf] }
  0x4c   : > { %291 = vst [vmem:[%s1947_s6 + $0x5c] sm:$0xf] %v290_v39  ;;  %v294_v41 = vld [vmem:[%s1942_s0 + $0xc8] sm:$0xf]  ;;  %v296_v42 = vld [vmem:[%s1942_s0 + $0xd0] sm:$0xf] }
  0x4d   : > { %293 = vst [vmem:[%s1947_s6 + $0x60] sm:$0xf] %v292_v40  ;;  %295 = vst [vmem:[%s1947_s6 + $0x64] sm:$0xf] %v294_v41  ;;  %v298_v43 = vld [vmem:[%s1942_s0 + $0xd8] sm:$0xf] }
  0x4e   : > { %297 = vst [vmem:[%s1947_s6 + $0x68] sm:$0xf] %v296_v42  ;;  %v300_v44 = vld [vmem:[%s1942_s0 + $0xe0] sm:$0xf]  ;;  %v302_v45 = vld [vmem:[%s1942_s0 + $0xe8] sm:$0xf] }
  0x4f   : > { %299 = vst [vmem:[%s1947_s6 + $0x6c] sm:$0xf] %v298_v43  ;;  %301 = vst [vmem:[%s1947_s6 + $0x70] sm:$0xf] %v300_v44  ;;  %v304_v46 = vld [vmem:[%s1942_s0 + $0xf0] sm:$0xf] }
  0x50   : > { %303 = vst [vmem:[%s1947_s6 + $0x74] sm:$0xf] %v302_v45  ;;  %v306_v47 = vld [vmem:[%s1942_s0 + $0xf8] sm:$0xf]  ;;  %v308_v48 = vld [vmem:[%s1942_s0 + $0x100] sm:$0xf] }
  0x51   : > { %305 = vst [vmem:[%s1947_s6 + $0x78] sm:$0xf] %v304_v46  ;;  %307 = vst [vmem:[%s1947_s6 + $0x7c] sm:$0xf] %v306_v47  ;;  %v310_v49 = vld [vmem:[%s1942_s0 + $0x108] sm:$0xf] }
  0x52   : > { %309 = vst [vmem:[%s1947_s6 + $0x80] sm:$0xf] %v308_v48  ;;  %v312_v50 = vld [vmem:[%s1942_s0 + $0x110] sm:$0xf]  ;;  %v314_v51 = vld [vmem:[%s1942_s0 + $0x118] sm:$0xf] }
  0x53   : > { %311 = vst [vmem:[%s1947_s6 + $0x84] sm:$0xf] %v310_v49  ;;  %313 = vst [vmem:[%s1947_s6 + $0x88] sm:$0xf] %v312_v50  ;;  %v316_v52 = vld [vmem:[%s1942_s0 + $0x120] sm:$0xf] }
  0x54   : > { %315 = vst [vmem:[%s1947_s6 + $0x8c] sm:$0xf] %v314_v51  ;;  %v318_v53 = vld [vmem:[%s1942_s0 + $0x128] sm:$0xf]  ;;  %v320_v54 = vld [vmem:[%s1942_s0 + $0x130] sm:$0xf] }
  0x55   : > { %317 = vst [vmem:[%s1947_s6 + $0x90] sm:$0xf] %v316_v52  ;;  %319 = vst [vmem:[%s1947_s6 + $0x94] sm:$0xf] %v318_v53  ;;  %v322_v55 = vld [vmem:[%s1942_s0 + $0x138] sm:$0xf] }
  0x56   : > { %321 = vst [vmem:[%s1947_s6 + $0x98] sm:$0xf] %v320_v54  ;;  %v324_v56 = vld [vmem:[%s1942_s0 + $0x140] sm:$0xf]  ;;  %v326_v57 = vld [vmem:[%s1942_s0 + $0x148] sm:$0xf] }
  0x57   : > { %323 = vst [vmem:[%s1947_s6 + $0x9c] sm:$0xf] %v322_v55  ;;  %325 = vst [vmem:[%s1947_s6 + $0xa0] sm:$0xf] %v324_v56  ;;  %v328_v58 = vld [vmem:[%s1942_s0 + $0x150] sm:$0xf] }
  0x58   : > { %327 = vst [vmem:[%s1947_s6 + $0xa4] sm:$0xf] %v326_v57  ;;  %v330_v59 = vld [vmem:[%s1942_s0 + $0x158] sm:$0xf]  ;;  %v332_v60 = vld [vmem:[%s1942_s0 + $0x160] sm:$0xf] }
  0x59   : > { %329 = vst [vmem:[%s1947_s6 + $0xa8] sm:$0xf] %v328_v58  ;;  %331 = vst [vmem:[%s1947_s6 + $0xac] sm:$0xf] %v330_v59  ;;  %v334_v61 = vld [vmem:[%s1942_s0 + $0x168] sm:$0xf] }
  0x5a   : > { %333 = vst [vmem:[%s1947_s6 + $0xb0] sm:$0xf] %v332_v60  ;;  %v336_v62 = vld [vmem:[%s1942_s0 + $0x170] sm:$0xf]  ;;  %v338_v63 = vld [vmem:[%s1942_s0 + $0x178] sm:$0xf] }
  0x5b   : > { %335 = vst [vmem:[%s1947_s6 + $0xb4] sm:$0xf] %v334_v61  ;;  %337 = vst [vmem:[%s1947_s6 + $0xb8] sm:$0xf] %v336_v62  ;;  %v340_v0 = vld [vmem:[%s1942_s0 + $0x180] sm:$0xf] }
  0x5c   : > { %339 = vst [vmem:[%s1947_s6 + $0xbc] sm:$0xf] %v338_v63  ;;  %v342_v1 = vld [vmem:[%s1942_s0 + $0x188] sm:$0xf]  ;;  %v344_v2 = vld [vmem:[%s1942_s0 + $0x190] sm:$0xf] }
  0x5d   : > { %341 = vst [vmem:[%s1947_s6 + $0xc0] sm:$0xf] %v340_v0  ;;  %343 = vst [vmem:[%s1947_s6 + $0xc4] sm:$0xf] %v342_v1  ;;  %v346_v3 = vld [vmem:[%s1942_s0 + $0x198] sm:$0xf] }
  0x5e   : > { %345 = vst [vmem:[%s1947_s6 + $0xc8] sm:$0xf] %v344_v2  ;;  %v348_v4 = vld [vmem:[%s1942_s0 + $0x1a0] sm:$0xf]  ;;  %v350_v5 = vld [vmem:[%s1942_s0 + $0x1a8] sm:$0xf] }
  0x5f   : > { %347 = vst [vmem:[%s1947_s6 + $0xcc] sm:$0xf] %v346_v3  ;;  %349 = vst [vmem:[%s1947_s6 + $0xd0] sm:$0xf] %v348_v4  ;;  %v352_v6 = vld [vmem:[%s1942_s0 + $0x1b0] sm:$0xf] }
  0x60   : > { %351 = vst [vmem:[%s1947_s6 + $0xd4] sm:$0xf] %v350_v5  ;;  %v354_v7 = vld [vmem:[%s1942_s0 + $0x1b8] sm:$0xf]  ;;  %v356_v8 = vld [vmem:[%s1942_s0 + $0x1c0] sm:$0xf] }
  0x61   : > { %353 = vst [vmem:[%s1947_s6 + $0xd8] sm:$0xf] %v352_v6  ;;  %355 = vst [vmem:[%s1947_s6 + $0xdc] sm:$0xf] %v354_v7  ;;  %v358_v9 = vld [vmem:[%s1942_s0 + $0x1c8] sm:$0xf] }
  0x62   : > { %357 = vst [vmem:[%s1947_s6 + $0xe0] sm:$0xf] %v356_v8  ;;  %v360_v10 = vld [vmem:[%s1942_s0 + $0x1d0] sm:$0xf]  ;;  %v362_v11 = vld [vmem:[%s1942_s0 + $0x1d8] sm:$0xf] }
  0x63   : > { %359 = vst [vmem:[%s1947_s6 + $0xe4] sm:$0xf] %v358_v9  ;;  %361 = vst [vmem:[%s1947_s6 + $0xe8] sm:$0xf] %v360_v10  ;;  %v364_v12 = vld [vmem:[%s1942_s0 + $0x1e0] sm:$0xf] }
  0x64   : > { %363 = vst [vmem:[%s1947_s6 + $0xec] sm:$0xf] %v362_v11  ;;  %v366_v13 = vld [vmem:[%s1942_s0 + $0x1e8] sm:$0xf]  ;;  %v368_v14 = vld [vmem:[%s1942_s0 + $0x1f0] sm:$0xf] }
  0x65   : > { %365 = vst [vmem:[%s1947_s6 + $0xf0] sm:$0xf] %v364_v12  ;;  %367 = vst [vmem:[%s1947_s6 + $0xf4] sm:$0xf] %v366_v13  ;;  %v370_v15 = vld [vmem:[%s1942_s0 + $0x1f8] sm:$0xf] }
  0x66   : > { %369 = vst [vmem:[%s1947_s6 + $0xf8] sm:$0xf] %v368_v14  ;;  %371 = vst [vmem:[%s1947_s6 + $0xfc] sm:$0xf] %v370_v15 }
  0x67 PF: > { %p1375_p0 = scmp.ge.s32.totalorder %s1787_s22, 1  ;;  %p527_p1 = scmp.lt.s32.totalorder %s1787_s22, 9 }
  0x69   : > { %p528_p2 = pnand %p1375_p0, %p527_p1 }
  0x6a   : > { %s534_s5 = sand.u32 (!%p528_p2), 1, %s1763_s16   ;;  %s541_s23 = sand.u32 (!%p528_p2), 1, %s1755_s14  }
  0x6b   : > { %531 = sbr.rel (%p528_p2) target bundleno = 449 (0x1c1), region = 88  ;;  %s1376_s28 = sshll.u32 (!%p528_p2), %s534_s5, 7 }
  0x6c   : > { %s1377_s7 = sshll.u32 (!%p528_p2), %s541_s23, 8  ;;  %s567_s11 = sand.u32 (!%p528_p2), 1, %s1747_s12  }
  0x6d   : > { %p573_p3 = scmp.lt.s32.totalorder (!%p528_p2), %s1775_s19, 1  ;;  %s1378_s0 = sshll.u32 (!%p528_p2), %s567_s11, 6 }
  0x6e   : > { %s2087_s6 = scalar_lea.vmem (!%p528_p2), [#allocation2], %s1376_s28  ;;  %s2089_s1 = scalar_lea.vmem (!%p528_p2), [#allocation3], %s1377_s7 }
  0x6f   : > { %s2091_s25 = scalar_lea.vmem (!%p528_p2), [#allocation4], %s1378_s0  ;;  %p1379_p4 = scmp.ne.s32.totalorder (!%p528_p2), %s1771_s18, 0 }
  0x72   : > { %s2081_s26 = scalar_select %p573_p3, %s1775_s19, 1 }
  0x73   : > { %581 = sbr.rel (%p1379_p4) target bundleno = 122 (0x7a), region = 100  ;;  %v1789_v16 = vmov (!%p1379_p4), 0.0  }
  0x74   : > { %s575_s4 = scalar_lea.vmem %s2237_s2, %s2081_s26  ;;  %582 = vst [vmem:[%s2091_s25] sm:$0xff] (!%p1379_p4), %v1789_v16  ;;  %583 = vst [vmem:[%s2091_s25 + $0x8] sm:$0xff] (!%p1379_p4), %v1789_v16 }
  0x75   : > { %584 = vst [vmem:[%s2091_s25 + $0x10] sm:$0xff] (!%p1379_p4), %v1789_v16  ;;  %585 = vst [vmem:[%s2091_s25 + $0x18] sm:$0xff] (!%p1379_p4), %v1789_v16 }
  0x76   : > { %586 = vst [vmem:[%s2091_s25 + $0x20] sm:$0xff] (!%p1379_p4), %v1789_v16  ;;  %587 = vst [vmem:[%s2091_s25 + $0x28] sm:$0xff] (!%p1379_p4), %v1789_v16 }
  0x77   : > { %588 = vst [vmem:[%s2091_s25 + $0x30] sm:$0xff] (!%p1379_p4), %v1789_v16  ;;  %589 = vst [vmem:[%s2091_s25 + $0x38] sm:$0xff] (!%p1379_p4), %v1789_v16 }
  0x7a PF: > { %v1613_v17 = vld [vmem:[%s2089_s1 + $0x40] sm:$0xff]   ;;  %v1617_v21 = vld [vmem:[%s2089_s1 + $0x48] sm:$0xff]   ;;  %v1621_v25 = vld [vmem:[%s2089_s1 + $0x50] sm:$0xff]   ;;  %p1428_p5 = scmp.ne.s32.totalorder %s1771_s18, 3 }
  0x7b   : > { %v1614_v18 = vld [vmem:[%s2089_s1 + $0xc0] sm:$0xff]   ;;  %1444 = vmatprep.subr.bf16.mxu0 %v1613_v17  ;;  %v1618_v22 = vld [vmem:[%s2089_s1 + $0xc8] sm:$0xff]   ;;  %v1622_v26 = vld [vmem:[%s2089_s1 + $0xd0] sm:$0xff]  }
  0x7c   : > { %v1615_v19 = vld [vmem:[%s2089_s1] sm:$0xff]   ;;  %1484 = vmatprep.subr.bf16.mxu1 %v1614_v18  ;;  %v1619_v23 = vld [vmem:[%s2089_s1 + $0x8] sm:$0xff]   ;;  %v1623_v27 = vld [vmem:[%s2089_s1 + $0x10] sm:$0xff]  }
  0x7d   : > { %v1616_v20 = vld [vmem:[%s2089_s1 + $0x80] sm:$0xff]   ;;  %1445 = vmatpush3.bf16.msra.mxu0 %v1615_v19  ;;  %v1620_v24 = vld [vmem:[%s2089_s1 + $0x88] sm:$0xff]   ;;  %v1624_v28 = vld [vmem:[%s2089_s1 + $0x90] sm:$0xff]  }
  0x7e   : > { %1485 = vmatpush3.bf16.msra.mxu1 %v1616_v20  ;;  %1446 = vmatprep.subr.bf16.mxu0 %v1617_v21  ;;  %v1625_v29 = vld [vmem:[%s2089_s1 + $0x58] sm:$0xff]   ;;  %v1629_v33 = vld [vmem:[%s2089_s1 + $0x60] sm:$0xff]   ;;  %v1633_v37 = vld [vmem:[%s2089_s1 + $0x68] sm:$0xff]  }
  0x7f   : > { %1486 = vmatprep.subr.bf16.mxu1 %v1618_v22  ;;  %v1626_v30 = vld [vmem:[%s2089_s1 + $0xd8] sm:$0xff]   ;;  %v1630_v34 = vld [vmem:[%s2089_s1 + $0xe0] sm:$0xff]   ;;  %v1634_v38 = vld [vmem:[%s2089_s1 + $0xe8] sm:$0xff]  }
  0x80   : > { %v1627_v31 = vld [vmem:[%s2089_s1 + $0x18] sm:$0xff]   ;;  %v1631_v35 = vld [vmem:[%s2089_s1 + $0x20] sm:$0xff]   ;;  %v1635_v39 = vld [vmem:[%s2089_s1 + $0x28] sm:$0xff]  }
  0x81   : > { %1447 = vmatpush3.bf16.msra.mxu0 %v1619_v23  ;;  %v1628_v32 = vld [vmem:[%s2089_s1 + $0x98] sm:$0xff]   ;;  %v1632_v36 = vld [vmem:[%s2089_s1 + $0xa0] sm:$0xff]   ;;  %v1636_v40 = vld [vmem:[%s2089_s1 + $0xa8] sm:$0xff]  }
  0x82   : > { %1487 = vmatpush3.bf16.msra.mxu1 %v1620_v24  ;;  %1448 = vmatprep.subr.bf16.mxu0 %v1621_v25  ;;  %v1637_v41 = vld [vmem:[%s2089_s1 + $0x70] sm:$0xff]   ;;  %v1641_v45 = vld [vmem:[%s2089_s1 + $0x78] sm:$0xff]   ;;  %v590_v10 = vld [vmem:[%s2091_s25] sm:$0xff] }
  0x83   : > { %1488 = vmatprep.subr.bf16.mxu1 %v1622_v26  ;;  %v1638_v42 = vld [vmem:[%s2089_s1 + $0xf0] sm:$0xff]   ;;  %v1642_v46 = vld [vmem:[%s2089_s1 + $0xf8] sm:$0xff]   ;;  %v591_v15 = vld [vmem:[%s2091_s25 + $0x8] sm:$0xff] }
  0x84   : > { %v1639_v43 = vld [vmem:[%s2089_s1 + $0x30] sm:$0xff]   ;;  %v1643_v47 = vld [vmem:[%s2089_s1 + $0x38] sm:$0xff]  }
  0x85   : > { %1449 = vmatpush3.bf16.msra.mxu0 %v1623_v27  ;;  %v1640_v44 = vld [vmem:[%s2089_s1 + $0xb0] sm:$0xff]   ;;  %v1644_v48 = vld [vmem:[%s2089_s1 + $0xb8] sm:$0xff]  }
  0x86   : > { %1489 = vmatpush3.bf16.msra.mxu1 %v1624_v28  ;;  %1450 = vmatprep.subr.bf16.mxu0 %v1625_v29  ;;  %v1645_v49 = vld [vmem:[%s2087_s6] ss:$16 sps:$4 sm:$0xff]   ;;  %v1647_v50 = vld [vmem:[%s2087_s6 + $0x4] ss:$16 sps:$4 sm:$0xff]   ;;  %v1648_v51 = vld [vmem:[%s2087_s6 + $0x8] ss:$16 sps:$4 sm:$0xff]  }
  0x87   : > { %1490 = vmatprep.subr.bf16.mxu1 %v1626_v30  ;;  %v1650_v52 = vld [vmem:[%s2087_s6 + $0xc] ss:$16 sps:$4 sm:$0xff]   ;;  %982 = vmatprep.mubr.bf16.mxu0 %v1647_v50  ;;  %v1651_v53 = vld [vmem:[%s2087_s6 + $0x24] ss:$16 sps:$4 sm:$0xff]   ;;  %v1655_v55 = vld [vmem:[%s2087_s6 + $0x20] ss:$16 sps:$4 sm:$0xff]  }
  0x88   : > { %1047 = vmatprep.mubr.bf16.mxu1 %v1650_v52  ;;  %v1653_v54 = vld [vmem:[%s2087_s6 + $0x2c] ss:$16 sps:$4 sm:$0xff]   ;;  %v1656_v56 = vld [vmem:[%s2087_s6 + $0x28] ss:$16 sps:$4 sm:$0xff]   ;;  %v1657_v57 = vld [vmem:[%s2087_s6 + $0x44] ss:$16 sps:$4 sm:$0xff]  }
  0x89   : > { %1451 = vmatpush3.bf16.msra.mxu0 %v1627_v31  ;;  %v1659_v58 = vld [vmem:[%s2087_s6 + $0x4c] ss:$16 sps:$4 sm:$0xff]   ;;  %v1661_v59 = vld [vmem:[%s2087_s6 + $0x40] ss:$16 sps:$4 sm:$0xff]   ;;  %v1662_v60 = vld [vmem:[%s2087_s6 + $0x48] ss:$16 sps:$4 sm:$0xff]  }
  0x8a   : > { %1491 = vmatpush3.bf16.msra.mxu1 %v1628_v32  ;;  %1452 = vmatprep.subr.bf16.mxu0 %v1629_v33  ;;  %v1663_v61 = vld [vmem:[%s2087_s6 + $0x64] ss:$16 sps:$4 sm:$0xff]   ;;  %v1665_v62 = vld [vmem:[%s2087_s6 + $0x6c] ss:$16 sps:$4 sm:$0xff]   ;;  %v1667_v63 = vld [vmem:[%s2087_s6 + $0x60] ss:$16 sps:$4 sm:$0xff]  }
  0x8b   : > { %1492 = vmatprep.subr.bf16.mxu1 %v1630_v34  ;;  %v1668_v0 = vld [vmem:[%s2087_s6 + $0x68] ss:$16 sps:$4 sm:$0xff]   ;;  %v592_v28 = vld [vmem:[%s2091_s25 + $0x10] sm:$0xff] }
  0x8c   : > { %v593_v33 = vld [vmem:[%s2091_s25 + $0x18] sm:$0xff] }
  0x8d   : > { %1453 = vmatpush3.bf16.msra.mxu0 %v1631_v35 }
  0x8e   : > { %1493 = vmatpush3.bf16.msra.mxu1 %v1632_v36  ;;  %1454 = vmatprep.subr.bf16.mxu0 %v1633_v37 }
  0x8f   : > { %1494 = vmatprep.subr.bf16.mxu1 %v1634_v38 }
  0x91   : > { %1455 = vmatpush3.bf16.msra.mxu0 %v1635_v39 }
  0x92   : > { %1495 = vmatpush3.bf16.msra.mxu1 %v1636_v40  ;;  %1456 = vmatprep.subr.bf16.mxu0 %v1637_v41 }
  0x93   : > { %1496 = vmatprep.subr.bf16.mxu1 %v1638_v42 }
  0x95   : > { %1457 = vmatpush3.bf16.msra.mxu0 %v1639_v43 }
  0x96   : > { %1497 = vmatpush3.bf16.msra.mxu1 %v1640_v44  ;;  %1458 = vmatprep.subr.bf16.mxu0 %v1641_v45 }
  0x97   : > { %1498 = vmatprep.subr.bf16.mxu1 %v1642_v46  ;;  %v594_v46 = vld [vmem:[%s2091_s25 + $0x20] sm:$0xff] }
  0x99   : > { %1459 = vmatpush3.bf16.msra.mxu0 %v1643_v47 }
  0x9a   : > { %1499 = vmatpush3.bf16.msra.mxu1 %v1644_v48 }
  0x9c   : > { %983 = vmatmul.mubr.bf16.vlgmr.msra.gmra.mrb[0].mxu0 %v1645_v49 }
  0x9d   : > { %1048 = vmatmul.mubr.bf16.vlgmr.msra.gmra.mrb[0].mxu1 %v1648_v51  ;;  %990 = vmatprep.mubr.bf16.mxu0 %v1651_v53  ;;  %v595_v51 = vld [vmem:[%s2091_s25 + $0x28] sm:$0xff] }
  0x9e   : > { %1055 = vmatprep.mubr.bf16.mxu1 %v1653_v54 }
  0xa4   : > { %991 = vmatmul.mubr.bf16.gmra.mrb[4].mxu0 %v1655_v55 }
  0xa5   : > { %1056 = vmatmul.mubr.bf16.gmra.mrb[4].mxu1 %v1656_v56  ;;  %998 = vmatprep.mubr.bf16.mxu0 %v1657_v57 }
  0xa6   : > { %1063 = vmatprep.mubr.bf16.mxu1 %v1659_v58 }
  0xac   : > { %999 = vmatmul.mubr.bf16.gmra.mrb[8].mxu0 %v1661_v59 }
  0xad   : > { %1064 = vmatmul.mubr.bf16.gmra.mrb[8].mxu1 %v1662_v60  ;;  %1006 = vmatprep.mubr.bf16.mxu0 %v1663_v61 }
  0xae   : > { %1071 = vmatprep.mubr.bf16.mxu1 %v1665_v62 }
  0xb4   : > { %1007 = vmatmul.mubr.bf16.gmra.mrb[12].mxu0 %v1667_v63 }
  0xb5   : > { %1072 = vmatmul.mubr.bf16.gmra.mrb[12].mxu1 %v1668_v0  ;;  %v596_v0 = vld [vmem:[%s2091_s25 + $0x30] sm:$0xff] }
 0x16f   : > { %v1460_v1 = vpop.f32.mrb[0].mxu0 }
 0x170   : > { %v1500_v2 = vpop.f32.mrb[0].mxu1  ;;  %v1461_v3 = vpop.f32.mrb[1].mxu0 }
 0x171   : > { %v1462_v4 = vadd.f32 %v1461_v3, %v1460_v1  ;;  %v1501_v5 = vpop.f32.mrb[1].mxu1  ;;  %v1463_v6 = vpop.f32.mrb[2].mxu0 }
 0x172   : > { %v1502_v7 = vadd.f32 %v1501_v5, %v1500_v2  ;;  %v1503_v8 = vpop.f32.mrb[2].mxu1  ;;  %v1464_v9 = vpop.f32.mrb[3].mxu0  ;;  %v597_v5 = vld [vmem:[%s2091_s25 + $0x38] sm:$0xff] }
 0x173   : > { %v1465_v11 = vadd.f32 %v1464_v9, %v1463_v6  ;;  %v1504_v12 = vpop.f32.mrb[3].mxu1 }
 0x174   : > { %v1050_v13 = vadd.f32 %v1502_v7, %v1462_v4  ;;  %v1505_v14 = vadd.f32 %v1504_v12, %v1503_v8 }
 0x176   : > { %v1080_v16 = vadd.f32 %v1050_v13, %v590_v10  ;;  %v1053_v17 = vadd.f32 %v1505_v14, %v1465_v11  ;;  %v1429_v10 = vld [vmem:[%s575_s4] ss:$0 sm:$0xff] (!%p1428_p5) }
 0x177   : > { %v1466_v18 = vpop.f32.mrb[4].mxu0 }
 0x178   : > { %1088 = vst [vmem:[%s2091_s25] sm:$0xff] %v1080_v16  ;;  %v1081_v19 = vadd.f32 %v1053_v17, %v591_v15  ;;  %v1506_v20 = vpop.f32.mrb[4].mxu1  ;;  %v1467_v21 = vpop.f32.mrb[5].mxu0 }
 0x179   : > { %v1468_v22 = vadd.f32 %v1467_v21, %v1466_v18  ;;  %v1507_v23 = vpop.f32.mrb[5].mxu1  ;;  %v1469_v24 = vpop.f32.mrb[6].mxu0 }
 0x17a   : > { %1089 = vst [vmem:[%s2091_s25 + $0x8] sm:$0xff] %v1081_v19  ;;  %v1508_v25 = vadd.f32 %v1507_v23, %v1506_v20  ;;  %v1509_v26 = vpop.f32.mrb[6].mxu1  ;;  %v1470_v27 = vpop.f32.mrb[7].mxu0 }
 0x17b   : > { %v1471_v29 = vadd.f32 %v1470_v27, %v1469_v24  ;;  %v1510_v30 = vpop.f32.mrb[7].mxu1 }
 0x17c   : > { %v1058_v31 = vadd.f32 %v1508_v25, %v1468_v22  ;;  %v1511_v32 = vadd.f32 %v1510_v30, %v1509_v26 }
 0x17e   : > { %v1082_v34 = vadd.f32 %v1058_v31, %v592_v28  ;;  %v1061_v35 = vadd.f32 %v1511_v32, %v1471_v29 }
 0x17f   : > { %v1472_v36 = vpop.f32.mrb[8].mxu0  ;;  %v1100_v9 = vld [vmem:[%s2091_s25] sm:$0xff] (!%p1428_p5) }
 0x180   : > { %1090 = vst [vmem:[%s2091_s25 + $0x10] sm:$0xff] %v1082_v34  ;;  %v1083_v37 = vadd.f32 %v1061_v35, %v593_v33  ;;  %v1512_v38 = vpop.f32.mrb[8].mxu1  ;;  %v1473_v39 = vpop.f32.mrb[9].mxu0  ;;  %v1115_v12 = vadd.f32 (!%p1428_p5), %v1429_v10, %v1100_v9 }
 0x181   : > { %v1474_v40 = vadd.f32 %v1473_v39, %v1472_v36  ;;  %v1513_v41 = vpop.f32.mrb[9].mxu1  ;;  %v1475_v42 = vpop.f32.mrb[10].mxu0  ;;  %v1101_v11 = vld [vmem:[%s2091_s25 + $0x8] sm:$0xff] (!%p1428_p5) }
 0x182   : > { %1091 = vst [vmem:[%s2091_s25 + $0x18] sm:$0xff] %v1083_v37  ;;  %v1514_v43 = vadd.f32 %v1513_v41, %v1512_v38  ;;  %v1515_v44 = vpop.f32.mrb[10].mxu1  ;;  %v1476_v45 = vpop.f32.mrb[11].mxu0  ;;  %v1116_v13 = vadd.f32 (!%p1428_p5), %v1429_v10, %v1101_v11  ;;  %v1430_v23 = vmul.f32 (!%p1428_p5), -1.442695, %v1115_v12 }
 0x183   : > { %v1477_v47 = vadd.f32 %v1476_v45, %v1475_v42  ;;  %v1516_v48 = vpop.f32.mrb[11].mxu1 }
 0x184   : > { %v1066_v49 = vadd.f32 %v1514_v43, %v1474_v40  ;;  %v1517_v50 = vadd.f32 %v1516_v48, %v1515_v44  ;;  %v1431_v24 = vmul.f32 (!%p1428_p5), -1.442695, %v1116_v13  ;;  %1669 = vpow2.f32 (!%p1428_p5), %v1430_v23 }
 0x186   : > { %v1084_v52 = vadd.f32 %v1066_v49, %v594_v46  ;;  %v1069_v53 = vadd.f32 %v1517_v50, %v1477_v47  ;;  %1671 = vpow2.f32 (!%p1428_p5), %v1431_v24 }
 0x187   : > { %v1478_v54 = vpop.f32.mrb[12].mxu0  ;;  %v1102_v14 = vld [vmem:[%s2091_s25 + $0x10] sm:$0xff] (!%p1428_p5) }
 0x188   : > { %1092 = vst [vmem:[%s2091_s25 + $0x20] sm:$0xff] %v1084_v52  ;;  %v1085_v55 = vadd.f32 %v1069_v53, %v595_v51  ;;  %v1518_v56 = vpop.f32.mrb[12].mxu1  ;;  %v1479_v57 = vpop.f32.mrb[13].mxu0  ;;  %v1117_v17 = vadd.f32 (!%p1428_p5), %v1429_v10, %v1102_v14 }
 0x189   : > { %v1480_v58 = vadd.f32 %v1479_v57, %v1478_v54  ;;  %v1519_v59 = vpop.f32.mrb[13].mxu1  ;;  %v1481_v60 = vpop.f32.mrb[14].mxu0  ;;  %v1103_v15 = vld [vmem:[%s2091_s25 + $0x18] sm:$0xff] (!%p1428_p5) }
 0x18a   : > { %1093 = vst [vmem:[%s2091_s25 + $0x28] sm:$0xff] %v1085_v55  ;;  %v1520_v61 = vadd.f32 %v1519_v59, %v1518_v56  ;;  %v1521_v62 = vpop.f32.mrb[14].mxu1  ;;  %v1482_v63 = vpop.f32.mrb[15].mxu0  ;;  %v1118_v18 = vadd.f32 (!%p1428_p5), %v1429_v10, %v1103_v15  ;;  %v1432_v27 = vmul.f32 (!%p1428_p5), -1.442695, %v1117_v17 }
 0x18b   : > { %v1483_v1 = vadd.f32 %v1482_v63, %v1481_v60  ;;  %v1522_v2 = vpop.f32.mrb[15].mxu1 }
 0x18c   : > { %v1074_v3 = vadd.f32 %v1520_v61, %v1480_v58  ;;  %v1523_v4 = vadd.f32 %v1522_v2, %v1521_v62  ;;  %1099 = sbr.rel (%p1428_p5) target bundleno = 441 (0x1b9), region = 104  ;;  %v1433_v28 = vmul.f32 (!%p1428_p5), -1.442695, %v1118_v18  ;;  %1673 = vpow2.f32 (!%p1428_p5), %v1432_v27 }
 0x18e   : > { %v1086_v6 = vadd.f32 %v1074_v3, %v596_v0  ;;  %v1077_v7 = vadd.f32 %v1523_v4, %v1483_v1  ;;  %1675 = vpow2.f32 (!%p1428_p5), %v1433_v28  ;;  %v1670_v34 = vpop.eup (!%p1428_p5), %1669 }
 0x18f   : > { %v1104_v16 = vld [vmem:[%s2091_s25 + $0x20] sm:$0xff] (!%p1428_p5)  ;;  %v1147_v36 = vadd.f32 (!%p1428_p5), 1.0, %v1670_v34 }
 0x190   : > { %1094 = vst [vmem:[%s2091_s25 + $0x30] sm:$0xff] %v1086_v6  ;;  %v1087_v8 = vadd.f32 %v1077_v7, %v597_v5  ;;  %v1119_v19 = vadd.f32 (!%p1428_p5), %v1429_v10, %v1104_v16  ;;  %v1672_v35 = vpop.eup (!%p1428_p5), %1671 }
 0x191   : > { %v1105_v20 = vld [vmem:[%s2091_s25 + $0x28] sm:$0xff] (!%p1428_p5)  ;;  %v1148_v38 = vadd.f32 (!%p1428_p5), 1.0, %v1672_v35 }
 0x192   : > { %1095 = vst [vmem:[%s2091_s25 + $0x38] sm:$0xff] %v1087_v8  ;;  %v1120_v25 = vadd.f32 (!%p1428_p5), %v1429_v10, %v1105_v20  ;;  %v1434_v30 = vmul.f32 (!%p1428_p5), -1.442695, %v1119_v19 }
 0x194   : > { %v1435_v31 = vmul.f32 -1.442695, %v1120_v25  ;;  %1677 = vpow2.f32 %v1434_v30 }
 0x196   : > { %1679 = vpow2.f32 %v1435_v31  ;;  %v1674_v37 = vpop.eup %1673 }
 0x197   : > { %v1106_v21 = vld [vmem:[%s2091_s25 + $0x30] sm:$0xff]  ;;  %v1149_v40 = vadd.f32 1.0, %v1674_v37 }
 0x198   : > { %v1121_v26 = vadd.f32 %v1429_v10, %v1106_v21  ;;  %v1676_v39 = vpop.eup %1675 }
 0x199   : > { %v1107_v22 = vld [vmem:[%s2091_s25 + $0x38] sm:$0xff]  ;;  %v1150_v42 = vadd.f32 1.0, %v1676_v39 }
 0x19a   : > { %v1122_v29 = vadd.f32 %v1429_v10, %v1107_v22  ;;  %v1436_v32 = vmul.f32 -1.442695, %v1121_v26 }
 0x19c   : > { %v1437_v33 = vmul.f32 -1.442695, %v1122_v29  ;;  %1681 = vpow2.f32 %v1436_v32 }
 0x19e   : > { %1683 = vpow2.f32 %v1437_v33  ;;  %v1678_v41 = vpop.eup %1677 }
 0x19f   : > { %1685 = vrcp.f32 %v1147_v36  ;;  %v1151_v44 = vadd.f32 1.0, %v1678_v41 }
 0x1a0   : > { %1687 = vrcp.f32 %v1148_v38  ;;  %v1680_v43 = vpop.eup %1679 }
 0x1a1   : > { %1689 = vrcp.f32 %v1149_v40  ;;  %v1152_v46 = vadd.f32 1.0, %v1680_v43 }
 0x1a2   : > { %1691 = vrcp.f32 %v1150_v42 }
 0x1a3   : > { %1693 = vrcp.f32 %v1151_v44 }
 0x1a4   : > { %1695 = vrcp.f32 %v1152_v46 }
 0x1a6   : > { %v1682_v45 = vpop.eup %1681 }
 0x1a7   : > { %v1153_v48 = vadd.f32 1.0, %v1682_v45 }
 0x1a8   : > { %v1684_v47 = vpop.eup %1683 }
 0x1a9   : > { %v1154_v49 = vadd.f32 1.0, %v1684_v47  ;;  %1697 = vrcp.f32 %v1153_v48  ;;  %v1686_v50 = vpop.eup %1685 }
 0x1aa   : > { %v1688_v51 = vpop.eup %1687  ;;  %v1171_v52 = vmul.f32 %v1686_v50, %v1115_v12 }
 0x1ab   : > { %1699 = vrcp.f32 %v1154_v49  ;;  %v1690_v53 = vpop.eup %1689  ;;  %v1172_v54 = vmul.f32 %v1688_v51, %v1116_v13 }
 0x1ac   : > { %v1692_v55 = vpop.eup %1691  ;;  %1179 = vst [vmem:[%s2091_s25] sm:$0xff] %v1171_v52  ;;  %v1173_v56 = vmul.f32 %v1690_v53, %v1117_v17 }
 0x1ad   : > { %v1694_v57 = vpop.eup %1693  ;;  %1180 = vst [vmem:[%s2091_s25 + $0x8] sm:$0xff] %v1172_v54  ;;  %v1174_v58 = vmul.f32 %v1692_v55, %v1118_v18 }
 0x1ae   : > { %v1696_v59 = vpop.eup %1695  ;;  %1181 = vst [vmem:[%s2091_s25 + $0x10] sm:$0xff] %v1173_v56  ;;  %v1175_v60 = vmul.f32 %v1694_v57, %v1119_v19 }
 0x1af   : > { %1182 = vst [vmem:[%s2091_s25 + $0x18] sm:$0xff] %v1174_v58  ;;  %v1176_v62 = vmul.f32 %v1696_v59, %v1120_v25 }
 0x1b0   : > { %1183 = vst [vmem:[%s2091_s25 + $0x20] sm:$0xff] %v1175_v60 }
 0x1b1   : > { %1184 = vst [vmem:[%s2091_s25 + $0x28] sm:$0xff] %v1176_v62 }
 0x1b3   : > { %v1698_v61 = vpop.eup %1697 }
 0x1b4   : > { %v1177_v0 = vmul.f32 %v1698_v61, %v1121_v26 }
 0x1b5   : > { %v1700_v63 = vpop.eup %1699 }
 0x1b6   : > { %v1178_v1 = vmul.f32 %v1700_v63, %v1122_v29  ;;  %1185 = vst [vmem:[%s2091_s25 + $0x30] sm:$0xff] %v1177_v0 }
 0x1b8   : > { %1186 = vst [vmem:[%s2091_s25 + $0x38] sm:$0xff] %v1178_v1 }
 0x1b9 PF: > { %1193 = sbr.rel (!%p1904_p12) target bundleno = 449 (0x1c1), region = 108  ;;  %s1439_s14 = sshll.u32 (%p1904_p12), %s1775_s19, 3  ;;  %v1240_v2 = vld [vmem:[%s2091_s25] sm:$0xff] (%p1904_p12)  ;;  %v1242_v3 = vld [vmem:[%s2091_s25 + $0x8] sm:$0xff] (%p1904_p12)  ;;  %v1244_v4 = vld [vmem:[%s2091_s25 + $0x10] sm:$0xff] (%p1904_p12) }
 0x1ba   : > { %s1198_s5 = scalar_lea.vmem (%p1904_p12), %s2238_s3, %s1439_s14  ;;  %v1246_v5 = vld [vmem:[%s2091_s25 + $0x18] sm:$0xff] (%p1904_p12)  ;;  %v1248_v6 = vld [vmem:[%s2091_s25 + $0x20] sm:$0xff] (%p1904_p12)  ;;  %v1250_v7 = vld [vmem:[%s2091_s25 + $0x28] sm:$0xff] (%p1904_p12) }
 0x1bb   : > { %1241 = vst [vmem:[%s1198_s5] sm:$0xff] (%p1904_p12), %v1240_v2  ;;  %1243 = vst [vmem:[%s1198_s5 + $0x10] sm:$0xff] (%p1904_p12), %v1242_v3 }
 0x1bc   : > { %1245 = vst [vmem:[%s1198_s5 + $0x20] sm:$0xff] (%p1904_p12), %v1244_v4  ;;  %1247 = vst [vmem:[%s1198_s5 + $0x30] sm:$0xff] (%p1904_p12), %v1246_v5 }
 0x1bd   : > { %1249 = vst [vmem:[%s1198_s5 + $0x40] sm:$0xff] (%p1904_p12), %v1248_v6  ;;  %1251 = vst [vmem:[%s1198_s5 + $0x50] sm:$0xff] (%p1904_p12), %v1250_v7  ;;  %v1252_v8 = vld [vmem:[%s2091_s25 + $0x30] sm:$0xff] (%p1904_p12) }
 0x1be   : > { %1253 = vst [vmem:[%s1198_s5 + $0x60] sm:$0xff] (%p1904_p12), %v1252_v8 }
 0x1bf   : > { %v1254_v9 = vld [vmem:[%s2091_s25 + $0x38] sm:$0xff] (%p1904_p12) }
 0x1c0   : > { %1255 = vst [vmem:[%s1198_s5 + $0x70] sm:$0xff] %v1254_v9 }
 0x1c1 PF: > { %s13_s22 = sadd.s32 1, %s1787_s22   ;;  %s2248_s10 = sld [smem:[#allocation5_spill]] }
 0x1c2   : > { %p10_p6 = scmp.ge.s32.totalorder %s13_s22, 10   ;;  %s2249_s12 = smov %s1751_s13 }
 0x1c3   : > { %s2250_s13 = smov %s1902_s9  ;;  %s2251_s14 = smov %s1759_s15 }
 0x1c4   : > { %s2252_s15 = smov %s1899_s8  ;;  %s2253_s16 = smov %s1767_s17 }
 0x1c5   : > { %s2254_s17 = smov %s1885_s30  ;;  %s2255_s18 = smov %s1779_s20 }
 0x1c6   : > { %s2256_s19 = smov %s1783_s21  ;;  %s2257_s20 = smov %s2260_s24 }
 0x1c7   : > { %s2258_s21 = smov %s2248_s10  ;;  %12 = sbr.rel (!%p10_p6) target bundleno = 9 (0x9), region = 188 }

// kernel: image_encoder_forward.9
= control target key start
LH: loop header
LB: loop body
LE: loop exit
PB: predicated region body
PF: predicated region fallthrough
CT: control target
= control target key end

     0   :  { %s2752_s18 = smov 0   ;;  %s2754_s19 = smov 0   ;;  %s3218_s0 = inlined_call_operand.vmem [shape: bf16[16,6400], index: 0, kind: input, shape index: {}]   ;;  %s3219_s1 = inlined_call_operand.vmem [shape: bf16[6400,1024], index: 1, kind: input, shape index: {}]   ;;  %s3220_s2 = inlined_call_operand.vmem [shape: f32[1,1024], index: 2, kind: input, shape index: {}]   ;;  %s3221_s3 = inlined_call_operand.vmem [shape: bf16[1024,128], index: 3, kind: input, shape index: {}]   ;;  %s3222_s4 = inlined_call_operand.vmem [shape: f32[1,128], index: 4, kind: input, shape index: {}]   ;;  %s3223_s5 = inlined_call_operand.vmem [shape: f32[16,128], index: 5, kind: output, shape index: {}]  }
   0x1   :  { %s2756_s20 = smov 0  }
   0x2 LB: > { %s2765_s21 = sadd.s32 4294967295, %s2719_s20   ;;  %s2767_s22 = sadd.s32 1, %s2719_s20   ;;  %s2719_s20 = sphi %s2756_s20, %s3226_s20   ;;  %s2715_s19 = sphi %s2754_s19, %s3225_s19   ;;  %s2711_s18 = sphi %s2752_s18, %s3224_s18  }
   0x3   : > { %s19_s23 = ssub.s32 %s2719_s20, %s2767_s22  ;;  %s22_s24 = sadd.s32 1, %s2715_s19 }
   0x4   : > { %p20_p0 = scmp.eq.s32.totalorder %s19_s23, 0  ;;  %p29_p1 = scmp.ne.s32.totalorder %s2715_s19, %s2711_s18 }
   0x5   : > { %p30_p2 = scmp.eq.s32.totalorder %s2719_s20, 0  ;;  %p2227_p4 = scmp.ge.s32.totalorder %s2719_s20, 25 }
   0x6   : > { %s2774_s25 = scalar_select %p20_p0, %s2715_s19, %s22_s24  }
   0x7   : > { %p31_p3 = por %p30_p2, %p29_p1  ;;  %174 = sbr.rel (%p2227_p4) target bundleno = 21 (0x15), region = 28 }
   0xe   : > { %177 = sbr.rel (!%p31_p3) target bundleno = 21 (0x15), region = 32  ;;  %s179_s26 = sand.u32 (%p31_p3), 1, %s2715_s19  }
   0xf   : > { %s2451_s27 = sshll.u32 (%p31_p3), %s2719_s20, 3  ;;  %s2228_s28 = sshll.u32 (%p31_p3), %s179_s26, 4 }
  0x10   : > { %s184_s6 = scalar_lea.vmem (%p31_p3), %s3218_s0, %s2451_s27  ;;  %s181_s7 = scalar_lea.vmem (%p31_p3), [#allocation3], %s2228_s28 }
  0x11   : > { %v214_v0 = vld [vmem:[%s184_s6] sm:$0xff] (%p31_p3)  ;;  %v216_v1 = vld [vmem:[%s184_s6 + $0xc8] sm:$0xff] (%p31_p3) }
  0x12   : > { %215 = vst [vmem:[%s181_s7] sm:$0xff] (%p31_p3), %v214_v0  ;;  %217 = vst [vmem:[%s181_s7 + $0x8] sm:$0xff] (%p31_p3), %v216_v1 }
  0x15 PF: > { %p2231_p5 = scmp.ge.s32.totalorder %s2719_s20, 1  ;;  %p232_p6 = scmp.lt.s32.totalorder %s2719_s20, 26 }
  0x17   : > { %p233_p7 = pnand %p2231_p5, %p232_p6 }
  0x18   : > { %s239_s8 = sand.u32 (!%p233_p7), 1, %s2711_s18   ;;  %s2233_s9 = sshll.u32 (!%p233_p7), %s2765_s21, 5 }
  0x19   : > { %236 = sbr.rel (%p233_p7) target bundleno = 681 (0x2a9), region = 74  ;;  %s2782_s10 = sshll.u32 (!%p233_p7), %s239_s8, 4 }
  0x1a   : > { %p269_p8 = scmp.lt.s32.totalorder (!%p233_p7), %s2233_s9, 799  ;;  %s241_s15 = scalar_lea.vmem (!%p233_p7), [#allocation3], %s2782_s10 }
  0x1b   : > { %p2236_p9 = scmp.ne.s32.totalorder (!%p233_p7), %s2765_s21, 0 }
  0x20   : > { %s3228_s9 = smov (!%p269_p8, %s2233_s9), 799  ;;  %279 = sbr.rel (%p2236_p9) target bundleno = 42 (0x2a), region = 82 }
  0x21   : > { %s2452_s11 = sshll.u32 %s3228_s9, 5  ;;  %v2721_v2 = vmov (!%p2236_p9), 0.0  }
  0x22   : > { %s2787_s14 = scalar_lea.vmem %s3219_s1, %s2452_s11  ;;  %280 = vst [vmem:[#allocation2] sm:$0xff] (!%p2236_p9), %v2721_v2  ;;  %281 = vst [vmem:[#allocation2 + $0x8] sm:$0xff] (!%p2236_p9), %v2721_v2 }
  0x23   : > { %282 = vst [vmem:[#allocation2 + $0x10] sm:$0xff] (!%p2236_p9), %v2721_v2  ;;  %283 = vst [vmem:[#allocation2 + $0x18] sm:$0xff] (!%p2236_p9), %v2721_v2 }
  0x24   : > { %284 = vst [vmem:[#allocation2 + $0x20] sm:$0xff] (!%p2236_p9), %v2721_v2  ;;  %285 = vst [vmem:[#allocation2 + $0x28] sm:$0xff] (!%p2236_p9), %v2721_v2 }
  0x25   : > { %286 = vst [vmem:[#allocation2 + $0x30] sm:$0xff] (!%p2236_p9), %v2721_v2  ;;  %287 = vst [vmem:[#allocation2 + $0x38] sm:$0xff] (!%p2236_p9), %v2721_v2 }
  0x26   : > { %288 = vst [vmem:[#allocation2 + $0x40] sm:$0xff] (!%p2236_p9), %v2721_v2  ;;  %289 = vst [vmem:[#allocation2 + $0x48] sm:$0xff] (!%p2236_p9), %v2721_v2 }
  0x27   : > { %290 = vst [vmem:[#allocation2 + $0x50] sm:$0xff] %v2721_v2  ;;  %291 = vst [vmem:[#allocation2 + $0x58] sm:$0xff] %v2721_v2 }
  0x28   : > { %292 = vst [vmem:[#allocation2 + $0x60] sm:$0xff] %v2721_v2  ;;  %293 = vst [vmem:[#allocation2 + $0x68] sm:$0xff] %v2721_v2 }
  0x29   : > { %294 = vst [vmem:[#allocation2 + $0x70] sm:$0xff] %v2721_v2  ;;  %295 = vst [vmem:[#allocation2 + $0x78] sm:$0xff] %v2721_v2 }
  0x2a PF: > { %v314_v3 = vld [vmem:[%s2787_s14] sm:$0xff]  ;;  %v315_v5 = vld [vmem:[%s2787_s14 + $0x8] sm:$0xff]  ;;  %p2367_p10 = scmp.ne.s32.totalorder %s2765_s21, 24 }
  0x2b   : > { %v318_v4 = vld [vmem:[%s2787_s14 + $0x20] sm:$0xff]  ;;  %v319_v7 = vld [vmem:[%s2787_s14 + $0x28] sm:$0xff] }
  0x2c   : > { %v2240_v6 = vcombine.high %v314_v3, %v318_v4  ;;  %v2239_v8 = vcombine.low %v314_v3, %v318_v4  ;;  %v322_v9 = vld [vmem:[%s2787_s14 + $0x40] sm:$0xff]  ;;  %v2242_v11 = vcombine.high %v315_v5, %v319_v7  ;;  %v2241_v12 = vcombine.low %v315_v5, %v319_v7  ;;  %v323_v14 = vld [vmem:[%s2787_s14 + $0x48] sm:$0xff] }
  0x2d   : > { %v326_v10 = vld [vmem:[%s2787_s14 + $0x60] sm:$0xff]  ;;  %v327_v15 = vld [vmem:[%s2787_s14 + $0x68] sm:$0xff] }
  0x2e   : > { %v2248_v13 = vcombine.high %v322_v9, %v326_v10  ;;  %v330_v16 = vld [vmem:[%s2787_s14 + $0x80] sm:$0xff]  ;;  %1092 = vmatprep.subr.bf16.mxu0 %v2240_v6  ;;  %v2250_v17 = vcombine.high %v323_v14, %v327_v15  ;;  %v331_v19 = vld [vmem:[%s2787_s14 + $0x88] sm:$0xff]  ;;  %1135 = vmatprep.subr.bf16.mxu1 %v2242_v11  ;;  %v2247_v21 = vcombine.low %v322_v9, %v326_v10 }
  0x2f   : > { %v334_v18 = vld [vmem:[%s2787_s14 + $0xa0] sm:$0xff]  ;;  %v335_v20 = vld [vmem:[%s2787_s14 + $0xa8] sm:$0xff]  ;;  %1093 = vmatpush1.bf16.msra.mxu0 %v2239_v8  ;;  %1136 = vmatpush1.bf16.msra.mxu1 %v2241_v12  ;;  %v2249_v22 = vcombine.low %v323_v14, %v327_v15 }
  0x30   : > { %1094 = vmatprep.subr.bf16.mxu0 %v2248_v13  ;;  %v2256_v23 = vcombine.high %v330_v16, %v334_v18  ;;  %1137 = vmatprep.subr.bf16.mxu1 %v2250_v17  ;;  %v2258_v24 = vcombine.high %v331_v19, %v335_v20  ;;  %v338_v25 = vld [vmem:[%s2787_s14 + $0xc0] sm:$0xff]  ;;  %v339_v27 = vld [vmem:[%s2787_s14 + $0xc8] sm:$0xff]  ;;  %v2255_v29 = vcombine.low %v330_v16, %v334_v18 }
  0x31   : > { %v342_v26 = vld [vmem:[%s2787_s14 + $0xe0] sm:$0xff]  ;;  %v343_v28 = vld [vmem:[%s2787_s14 + $0xe8] sm:$0xff]  ;;  %v2257_v30 = vcombine.low %v331_v19, %v335_v20 }
  0x32   : > { %v2264_v31 = vcombine.high %v338_v25, %v342_v26  ;;  %v2266_v32 = vcombine.high %v339_v27, %v343_v28  ;;  %v346_v33 = vld [vmem:[%s2787_s14 + $0x100] sm:$0xff]  ;;  %v347_v35 = vld [vmem:[%s2787_s14 + $0x108] sm:$0xff]  ;;  %v2263_v37 = vcombine.low %v338_v25, %v342_v26  ;;  %v2265_v38 = vcombine.low %v339_v27, %v343_v28 }
  0x33   : > { %1095 = vmatpush1.bf16.msra.mxu0 %v2247_v21  ;;  %1138 = vmatpush1.bf16.msra.mxu1 %v2249_v22  ;;  %v350_v34 = vld [vmem:[%s2787_s14 + $0x120] sm:$0xff]  ;;  %v351_v36 = vld [vmem:[%s2787_s14 + $0x128] sm:$0xff] }
  0x34   : > { %1096 = vmatprep.subr.bf16.mxu0 %v2256_v23  ;;  %1139 = vmatprep.subr.bf16.mxu1 %v2258_v24  ;;  %v2272_v39 = vcombine.high %v346_v33, %v350_v34  ;;  %v2274_v40 = vcombine.high %v347_v35, %v351_v36  ;;  %v354_v41 = vld [vmem:[%s2787_s14 + $0x140] sm:$0xff]  ;;  %v355_v43 = vld [vmem:[%s2787_s14 + $0x148] sm:$0xff]  ;;  %v2271_v45 = vcombine.low %v346_v33, %v350_v34 }
  0x35   : > { %v358_v42 = vld [vmem:[%s2787_s14 + $0x160] sm:$0xff]  ;;  %v359_v44 = vld [vmem:[%s2787_s14 + $0x168] sm:$0xff]  ;;  %v2273_v46 = vcombine.low %v347_v35, %v351_v36 }
  0x36   : > { %v2280_v47 = vcombine.high %v354_v41, %v358_v42  ;;  %v2282_v48 = vcombine.high %v355_v43, %v359_v44  ;;  %v362_v49 = vld [vmem:[%s2787_s14 + $0x180] sm:$0xff]  ;;  %v363_v51 = vld [vmem:[%s2787_s14 + $0x188] sm:$0xff]  ;;  %v2279_v53 = vcombine.low %v354_v41, %v358_v42  ;;  %v2281_v54 = vcombine.low %v355_v43, %v359_v44 }
  0x37   : > { %1097 = vmatpush1.bf16.msra.mxu0 %v2255_v29  ;;  %1140 = vmatpush1.bf16.msra.mxu1 %v2257_v30  ;;  %v366_v50 = vld [vmem:[%s2787_s14 + $0x1a0] sm:$0xff]  ;;  %v367_v52 = vld [vmem:[%s2787_s14 + $0x1a8] sm:$0xff] }
  0x38   : > { %1098 = vmatprep.subr.bf16.mxu0 %v2264_v31  ;;  %1141 = vmatprep.subr.bf16.mxu1 %v2266_v32  ;;  %v2288_v55 = vcombine.high %v362_v49, %v366_v50  ;;  %v2290_v56 = vcombine.high %v363_v51, %v367_v52  ;;  %v370_v57 = vld [vmem:[%s2787_s14 + $0x1c0] sm:$0xff]  ;;  %v371_v60 = vld [vmem:[%s2787_s14 + $0x1c8] sm:$0xff]  ;;  %v2287_v62 = vcombine.low %v362_v49, %v366_v50 }
  0x39   : > { %v374_v58 = vld [vmem:[%s2787_s14 + $0x1e0] sm:$0xff]  ;;  %v375_v61 = vld [vmem:[%s2787_s14 + $0x1e8] sm:$0xff]  ;;  %v2289_v63 = vcombine.low %v363_v51, %v367_v52 }
  0x3a   : > { %v2823_v59 = vld [vmem:[%s241_s15 + $0x4] ss:$8 sps:$4 sm:$0xff]   ;;  %v2296_v0 = vcombine.high %v370_v57, %v374_v58  ;;  %v2298_v1 = vcombine.high %v371_v60, %v375_v61  ;;  %v2295_v6 = vcombine.low %v370_v57, %v374_v58  ;;  %v2297_v7 = vcombine.low %v371_v60, %v375_v61 }
  0x3b   : > { %1099 = vmatpush1.bf16.msra.mxu0 %v2263_v37  ;;  %1142 = vmatpush1.bf16.msra.mxu1 %v2265_v38  ;;  %v378_v2 = vld [vmem:[%s2787_s14 + $0x200] sm:$0xff]  ;;  %v379_v4 = vld [vmem:[%s2787_s14 + $0x208] sm:$0xff] }
  0x3c   : > { %1100 = vmatprep.subr.bf16.mxu0 %v2272_v39  ;;  %1143 = vmatprep.subr.bf16.mxu1 %v2274_v40  ;;  %v382_v3 = vld [vmem:[%s2787_s14 + $0x220] sm:$0xff]  ;;  %v383_v5 = vld [vmem:[%s2787_s14 + $0x228] sm:$0xff] }
  0x3d   : > { %1124 = vmatprep.mubr.bf16.mxu0 %v2823_v59  ;;  %1167 = vmatprep.mubr.bf16.mxu1 %v2823_v59  ;;  %v2304_v8 = vcombine.high %v378_v2, %v382_v3  ;;  %v2306_v9 = vcombine.high %v379_v4, %v383_v5  ;;  %v386_v10 = vld [vmem:[%s2787_s14 + $0x240] sm:$0xff]  ;;  %v387_v12 = vld [vmem:[%s2787_s14 + $0x248] sm:$0xff]  ;;  %v2303_v14 = vcombine.low %v378_v2, %v382_v3  ;;  %v316_v3 = vld [vmem:[%s2787_s14 + $0x10] sm:$0xff] }
  0x3e   : > { %v390_v11 = vld [vmem:[%s2787_s14 + $0x260] sm:$0xff]  ;;  %v391_v13 = vld [vmem:[%s2787_s14 + $0x268] sm:$0xff]  ;;  %v2305_v15 = vcombine.low %v379_v4, %v383_v5  ;;  %v320_v4 = vld [vmem:[%s2787_s14 + $0x30] sm:$0xff] }
  0x3f   : > { %1101 = vmatpush1.bf16.msra.mxu0 %v2271_v45  ;;  %1144 = vmatpush1.bf16.msra.mxu1 %v2273_v46  ;;  %v2312_v16 = vcombine.high %v386_v10, %v390_v11  ;;  %v2314_v17 = vcombine.high %v387_v12, %v391_v13  ;;  %v394_v18 = vld [vmem:[%s2787_s14 + $0x280] sm:$0xff]  ;;  %v395_v20 = vld [vmem:[%s2787_s14 + $0x288] sm:$0xff]  ;;  %v2311_v22 = vcombine.low %v386_v10, %v390_v11  ;;  %v317_v5 = vld [vmem:[%s2787_s14 + $0x18] sm:$0xff] }
  0x40   : > { %1102 = vmatprep.subr.bf16.mxu0 %v2280_v47  ;;  %1145 = vmatprep.subr.bf16.mxu1 %v2282_v48  ;;  %v398_v19 = vld [vmem:[%s2787_s14 + $0x2a0] sm:$0xff]  ;;  %v399_v21 = vld [vmem:[%s2787_s14 + $0x2a8] sm:$0xff]  ;;  %v2313_v23 = vcombine.low %v387_v12, %v391_v13  ;;  %v324_v11 = vld [vmem:[%s2787_s14 + $0x50] sm:$0xff] }
  0x41   : > { %v2320_v24 = vcombine.high %v394_v18, %v398_v19  ;;  %v2322_v25 = vcombine.high %v395_v20, %v399_v21  ;;  %v402_v26 = vld [vmem:[%s2787_s14 + $0x2c0] sm:$0xff]  ;;  %v403_v28 = vld [vmem:[%s2787_s14 + $0x2c8] sm:$0xff]  ;;  %v2319_v30 = vcombine.low %v394_v18, %v398_v19  ;;  %v2321_v31 = vcombine.low %v395_v20, %v399_v21  ;;  %v328_v12 = vld [vmem:[%s2787_s14 + $0x70] sm:$0xff] }
  0x42   : > { %v406_v27 = vld [vmem:[%s2787_s14 + $0x2e0] sm:$0xff]  ;;  %v407_v29 = vld [vmem:[%s2787_s14 + $0x2e8] sm:$0xff]  ;;  %v2252_v18 = vcombine.high %v324_v11, %v328_v12  ;;  %v332_v20 = vld [vmem:[%s2787_s14 + $0x90] sm:$0xff] }
  0x43   : > { %1103 = vmatpush1.bf16.msra.mxu0 %v2279_v53  ;;  %1146 = vmatpush1.bf16.msra.mxu1 %v2281_v54  ;;  %v2328_v32 = vcombine.high %v402_v26, %v406_v27  ;;  %v2330_v33 = vcombine.high %v403_v28, %v407_v29  ;;  %v410_v34 = vld [vmem:[%s2787_s14 + $0x300] sm:$0xff]  ;;  %v411_v36 = vld [vmem:[%s2787_s14 + $0x308] sm:$0xff]  ;;  %v2327_v38 = vcombine.low %v402_v26, %v406_v27  ;;  %v336_v21 = vld [vmem:[%s2787_s14 + $0xb0] sm:$0xff] }
  0x44   : > { %1104 = vmatprep.subr.bf16.mxu0 %v2288_v55  ;;  %1147 = vmatprep.subr.bf16.mxu1 %v2290_v56  ;;  %v414_v35 = vld [vmem:[%s2787_s14 + $0x320] sm:$0xff]  ;;  %v415_v37 = vld [vmem:[%s2787_s14 + $0x328] sm:$0xff]  ;;  %v2329_v39 = vcombine.low %v403_v28, %v407_v29  ;;  %v2260_v26 = vcombine.high %v332_v20, %v336_v21  ;;  %v340_v28 = vld [vmem:[%s2787_s14 + $0xd0] sm:$0xff] }
  0x45   : > { %v2336_v40 = vcombine.high %v410_v34, %v414_v35  ;;  %v2338_v41 = vcombine.high %v411_v36, %v415_v37  ;;  %v418_v42 = vld [vmem:[%s2787_s14 + $0x340] sm:$0xff]  ;;  %v419_v44 = vld [vmem:[%s2787_s14 + $0x348] sm:$0xff]  ;;  %v2335_v46 = vcombine.low %v410_v34, %v414_v35  ;;  %v2337_v47 = vcombine.low %v411_v36, %v415_v37  ;;  %v344_v29 = vld [vmem:[%s2787_s14 + $0xf0] sm:$0xff] }
  0x46   : > { %v422_v43 = vld [vmem:[%s2787_s14 + $0x360] sm:$0xff]  ;;  %v423_v45 = vld [vmem:[%s2787_s14 + $0x368] sm:$0xff]  ;;  %v2268_v34 = vcombine.high %v340_v28, %v344_v29  ;;  %v348_v36 = vld [vmem:[%s2787_s14 + $0x110] sm:$0xff] }
  0x47   : > { %1105 = vmatpush1.bf16.msra.mxu0 %v2287_v62  ;;  %1148 = vmatpush1.bf16.msra.mxu1 %v2289_v63  ;;  %v2344_v48 = vcombine.high %v418_v42, %v422_v43  ;;  %v2346_v49 = vcombine.high %v419_v44, %v423_v45  ;;  %v426_v50 = vld [vmem:[%s2787_s14 + $0x380] sm:$0xff]  ;;  %v427_v52 = vld [vmem:[%s2787_s14 + $0x388] sm:$0xff]  ;;  %v2343_v54 = vcombine.low %v418_v42, %v422_v43  ;;  %v352_v37 = vld [vmem:[%s2787_s14 + $0x130] sm:$0xff] }
  0x48   : > { %1106 = vmatprep.subr.bf16.mxu0 %v2296_v0  ;;  %1149 = vmatprep.subr.bf16.mxu1 %v2298_v1  ;;  %v430_v51 = vld [vmem:[%s2787_s14 + $0x3a0] sm:$0xff]  ;;  %v431_v53 = vld [vmem:[%s2787_s14 + $0x3a8] sm:$0xff]  ;;  %v2345_v55 = vcombine.low %v419_v44, %v423_v45  ;;  %v356_v43 = vld [vmem:[%s2787_s14 + $0x150] sm:$0xff] }
  0x49   : > { %v2352_v56 = vcombine.high %v426_v50, %v430_v51  ;;  %v2354_v57 = vcombine.high %v427_v52, %v431_v53  ;;  %v434_v58 = vld [vmem:[%s2787_s14 + $0x3c0] sm:$0xff]  ;;  %v435_v61 = vld [vmem:[%s2787_s14 + $0x3c8] sm:$0xff]  ;;  %v2351_v63 = vcombine.low %v426_v50, %v430_v51  ;;  %v2353_v0 = vcombine.low %v427_v52, %v431_v53  ;;  %v360_v44 = vld [vmem:[%s2787_s14 + $0x170] sm:$0xff] }
  0x4a   : > { %v438_v60 = vld [vmem:[%s2787_s14 + $0x3e0] sm:$0xff]  ;;  %v439_v62 = vld [vmem:[%s2787_s14 + $0x3e8] sm:$0xff]  ;;  %v357_v45 = vld [vmem:[%s2787_s14 + $0x158] sm:$0xff] }
  0x4b   : > { %1107 = vmatpush1.bf16.msra.mxu0 %v2295_v6  ;;  %1150 = vmatpush1.bf16.msra.mxu1 %v2297_v7  ;;  %v2360_v1 = vcombine.high %v434_v58, %v438_v60  ;;  %v2362_v2 = vcombine.high %v435_v61, %v439_v62  ;;  %v321_v6 = vld [vmem:[%s2787_s14 + $0x38] sm:$0xff]  ;;  %v2359_v7 = vcombine.low %v434_v58, %v438_v60  ;;  %v364_v51 = vld [vmem:[%s2787_s14 + $0x190] sm:$0xff] }
  0x4c   : > { %1108 = vmatprep.subr.bf16.mxu0 %v2304_v8  ;;  %1151 = vmatprep.subr.bf16.mxu1 %v2306_v9  ;;  %v2361_v8 = vcombine.low %v435_v61, %v439_v62  ;;  %v2244_v9 = vcombine.high %v316_v3, %v320_v4  ;;  %v2246_v10 = vcombine.high %v317_v5, %v321_v6  ;;  %v2869_v13 = vld [vmem:[%s241_s15] ss:$8 sps:$4 sm:$0xff]  }
  0x4d   : > { %v368_v52 = vld [vmem:[%s2787_s14 + $0x1b0] sm:$0xff]  ;;  %v365_v53 = vld [vmem:[%s2787_s14 + $0x198] sm:$0xff] }
  0x4e   : > { %v372_v60 = vld [vmem:[%s2787_s14 + $0x1d0] sm:$0xff]  ;;  %v373_v62 = vld [vmem:[%s2787_s14 + $0x1d8] sm:$0xff] }
  0x4f   : > { %1109 = vmatpush1.bf16.msra.mxu0 %v2303_v14  ;;  %1152 = vmatpush1.bf16.msra.mxu1 %v2305_v15  ;;  %v325_v14 = vld [vmem:[%s2787_s14 + $0x58] sm:$0xff]  ;;  %v376_v61 = vld [vmem:[%s2787_s14 + $0x1f0] sm:$0xff] }
  0x50   : > { %1110 = vmatprep.subr.bf16.mxu0 %v2312_v16  ;;  %1153 = vmatprep.subr.bf16.mxu1 %v2314_v17  ;;  %v329_v15 = vld [vmem:[%s2787_s14 + $0x78] sm:$0xff]  ;;  %v2243_v16 = vcombine.low %v316_v3, %v320_v4  ;;  %v2245_v17 = vcombine.low %v317_v5, %v321_v6  ;;  %v380_v4 = vld [vmem:[%s2787_s14 + $0x210] sm:$0xff] }
  0x51   : > { %v2254_v19 = vcombine.high %v325_v14, %v329_v15  ;;  %v384_v5 = vld [vmem:[%s2787_s14 + $0x230] sm:$0xff]  ;;  %v381_v6 = vld [vmem:[%s2787_s14 + $0x218] sm:$0xff] }
  0x53   : > { %1111 = vmatpush1.bf16.msra.mxu0 %v2311_v22  ;;  %1154 = vmatpush1.bf16.msra.mxu1 %v2313_v23  ;;  %v333_v22 = vld [vmem:[%s2787_s14 + $0x98] sm:$0xff] }
  0x54   : > { %1112 = vmatprep.subr.bf16.mxu0 %v2320_v24  ;;  %1155 = vmatprep.subr.bf16.mxu1 %v2322_v25  ;;  %v337_v23 = vld [vmem:[%s2787_s14 + $0xb8] sm:$0xff]  ;;  %v2251_v24 = vcombine.low %v324_v11, %v328_v12  ;;  %v2253_v25 = vcombine.low %v325_v14, %v329_v15  ;;  %v388_v12 = vld [vmem:[%s2787_s14 + $0x250] sm:$0xff] }
  0x55   : > { %v2262_v27 = vcombine.high %v333_v22, %v337_v23  ;;  %v392_v14 = vld [vmem:[%s2787_s14 + $0x270] sm:$0xff]  ;;  %v389_v15 = vld [vmem:[%s2787_s14 + $0x258] sm:$0xff] }
  0x57   : > { %1113 = vmatpush1.bf16.msra.mxu0 %v2319_v30  ;;  %1156 = vmatpush1.bf16.msra.mxu1 %v2321_v31  ;;  %v341_v30 = vld [vmem:[%s2787_s14 + $0xd8] sm:$0xff] }
  0x58   : > { %1114 = vmatprep.subr.bf16.mxu0 %v2328_v32  ;;  %1157 = vmatprep.subr.bf16.mxu1 %v2330_v33  ;;  %v345_v31 = vld [vmem:[%s2787_s14 + $0xf8] sm:$0xff]  ;;  %v2259_v32 = vcombine.low %v332_v20, %v336_v21  ;;  %v2261_v33 = vcombine.low %v333_v22, %v337_v23  ;;  %v396_v21 = vld [vmem:[%s2787_s14 + $0x290] sm:$0xff] }
  0x59   : > { %v2270_v35 = vcombine.high %v341_v30, %v345_v31  ;;  %v400_v22 = vld [vmem:[%s2787_s14 + $0x2b0] sm:$0xff]  ;;  %v397_v23 = vld [vmem:[%s2787_s14 + $0x298] sm:$0xff] }
  0x5b   : > { %1115 = vmatpush1.bf16.msra.mxu0 %v2327_v38  ;;  %1158 = vmatpush1.bf16.msra.mxu1 %v2329_v39  ;;  %v349_v38 = vld [vmem:[%s2787_s14 + $0x118] sm:$0xff] }
  0x5c   : > { %1116 = vmatprep.subr.bf16.mxu0 %v2336_v40  ;;  %1159 = vmatprep.subr.bf16.mxu1 %v2338_v41  ;;  %v353_v39 = vld [vmem:[%s2787_s14 + $0x138] sm:$0xff]  ;;  %v2267_v40 = vcombine.low %v340_v28, %v344_v29  ;;  %v2276_v41 = vcombine.high %v348_v36, %v352_v37  ;;  %v404_v29 = vld [vmem:[%s2787_s14 + $0x2d0] sm:$0xff] }
  0x5d   : > { %v2278_v42 = vcombine.high %v349_v38, %v353_v39 }
  0x5f   : > { %1117 = vmatpush1.bf16.msra.mxu0 %v2335_v46  ;;  %1160 = vmatpush1.bf16.msra.mxu1 %v2337_v47  ;;  %v361_v46 = vld [vmem:[%s2787_s14 + $0x178] sm:$0xff]  ;;  %v2275_v47 = vcombine.low %v348_v36, %v352_v37  ;;  %v412_v37 = vld [vmem:[%s2787_s14 + $0x310] sm:$0xff] }
  0x60   : > { %1118 = vmatprep.subr.bf16.mxu0 %v2344_v48  ;;  %1161 = vmatprep.subr.bf16.mxu1 %v2346_v49  ;;  %v2277_v48 = vcombine.low %v349_v38, %v353_v39  ;;  %v2284_v49 = vcombine.high %v356_v43, %v360_v44  ;;  %v2286_v50 = vcombine.high %v357_v45, %v361_v46  ;;  %v416_v38 = vld [vmem:[%s2787_s14 + $0x330] sm:$0xff]  ;;  %v413_v39 = vld [vmem:[%s2787_s14 + $0x318] sm:$0xff] }
  0x63   : > { %1119 = vmatpush1.bf16.msra.mxu0 %v2343_v54  ;;  %1162 = vmatpush1.bf16.msra.mxu1 %v2345_v55  ;;  %v369_v54 = vld [vmem:[%s2787_s14 + $0x1b8] sm:$0xff]  ;;  %v2283_v55 = vcombine.low %v356_v43, %v360_v44  ;;  %v420_v44 = vld [vmem:[%s2787_s14 + $0x350] sm:$0xff] }
  0x64   : > { %1120 = vmatprep.subr.bf16.mxu0 %v2352_v56  ;;  %1163 = vmatprep.subr.bf16.mxu1 %v2354_v57  ;;  %v2285_v56 = vcombine.low %v357_v45, %v361_v46  ;;  %v2292_v57 = vcombine.high %v364_v51, %v368_v52  ;;  %v2294_v58 = vcombine.high %v365_v53, %v369_v54  ;;  %v424_v45 = vld [vmem:[%s2787_s14 + $0x370] sm:$0xff]  ;;  %v421_v46 = vld [vmem:[%s2787_s14 + $0x358] sm:$0xff] }
  0x67   : > { %1121 = vmatpush1.bf16.msra.mxu0 %v2351_v63  ;;  %1164 = vmatpush1.bf16.msra.mxu1 %v2353_v0  ;;  %v377_v63 = vld [vmem:[%s2787_s14 + $0x1f8] sm:$0xff]  ;;  %v2291_v0 = vcombine.low %v364_v51, %v368_v52  ;;  %v428_v52 = vld [vmem:[%s2787_s14 + $0x390] sm:$0xff] }
  0x68   : > { %1122 = vmatprep.subr.bf16.mxu0 %v2360_v1  ;;  %1165 = vmatprep.subr.bf16.mxu1 %v2362_v2  ;;  %v2293_v1 = vcombine.low %v365_v53, %v369_v54  ;;  %v2300_v2 = vcombine.high %v372_v60, %v376_v61  ;;  %v2302_v3 = vcombine.high %v373_v62, %v377_v63  ;;  %v432_v53 = vld [vmem:[%s2787_s14 + $0x3b0] sm:$0xff]  ;;  %v429_v54 = vld [vmem:[%s2787_s14 + $0x398] sm:$0xff] }
  0x6b   : > { %1123 = vmatpush1.bf16.msra.mxu0 %v2359_v7  ;;  %1166 = vmatpush1.bf16.msra.mxu1 %v2361_v8  ;;  %v385_v7 = vld [vmem:[%s2787_s14 + $0x238] sm:$0xff]  ;;  %v2299_v8 = vcombine.low %v372_v60, %v376_v61  ;;  %v436_v61 = vld [vmem:[%s2787_s14 + $0x3d0] sm:$0xff] }
  0x6c   : > { %1178 = vmatprep.subr.bf16.mxu0 %v2244_v9  ;;  %1221 = vmatprep.subr.bf16.mxu1 %v2246_v10  ;;  %v2301_v9 = vcombine.low %v373_v62, %v377_v63  ;;  %v2308_v10 = vcombine.high %v380_v4, %v384_v5  ;;  %v2310_v11 = vcombine.high %v381_v6, %v385_v7  ;;  %v440_v62 = vld [vmem:[%s2787_s14 + $0x3f0] sm:$0xff]  ;;  %v437_v63 = vld [vmem:[%s2787_s14 + $0x3d8] sm:$0xff] }
  0x6e   : > { %1125 = vmatmul.mubr.bf16.vlgmr.msra.gmra.mrb[0].mxu0 %v2869_v13  ;;  %1168 = vmatmul.mubr.bf16.vlgmr.msra.gmra.mrb[0].mxu1 %v2869_v13 }
  0x6f   : > { %1179 = vmatpush1.bf16.msra.mxu0 %v2243_v16  ;;  %1222 = vmatpush1.bf16.msra.mxu1 %v2245_v17  ;;  %v393_v16 = vld [vmem:[%s2787_s14 + $0x278] sm:$0xff]  ;;  %v2307_v17 = vcombine.low %v380_v4, %v384_v5  ;;  %v2363_v5 = vcombine.low %v436_v61, %v440_v62 }
  0x70   : > { %1180 = vmatprep.subr.bf16.mxu0 %v2252_v18  ;;  %1223 = vmatprep.subr.bf16.mxu1 %v2254_v19  ;;  %v2309_v18 = vcombine.low %v381_v6, %v385_v7  ;;  %v2316_v19 = vcombine.high %v388_v12, %v392_v14  ;;  %v2318_v20 = vcombine.high %v389_v15, %v393_v16  ;;  %v296_v7 = vld [vmem:[#allocation2] sm:$0xff] }
  0x71   : > { %1210 = vmatprep.mubr.bf16.mxu0 %v2823_v59  ;;  %1253 = vmatprep.mubr.bf16.mxu1 %v2823_v59  ;;  %v2269_v59 = vcombine.low %v341_v30, %v345_v31  ;;  %v408_v30 = vld [vmem:[%s2787_s14 + $0x2f0] sm:$0xff]  ;;  %v405_v31 = vld [vmem:[%s2787_s14 + $0x2d8] sm:$0xff] }
  0x73   : > { %1181 = vmatpush1.bf16.msra.mxu0 %v2251_v24  ;;  %1224 = vmatpush1.bf16.msra.mxu1 %v2253_v25  ;;  %v401_v24 = vld [vmem:[%s2787_s14 + $0x2b8] sm:$0xff]  ;;  %v2315_v25 = vcombine.low %v388_v12, %v392_v14  ;;  %v304_v12 = vld [vmem:[#allocation2 + $0x40] sm:$0xff] }
  0x74   : > { %1182 = vmatprep.subr.bf16.mxu0 %v2260_v26  ;;  %1225 = vmatprep.subr.bf16.mxu1 %v2262_v27  ;;  %v2317_v26 = vcombine.low %v389_v15, %v393_v16  ;;  %v2324_v27 = vcombine.high %v396_v21, %v400_v22  ;;  %v2326_v28 = vcombine.high %v397_v23, %v401_v24 }
  0x77   : > { %1183 = vmatpush1.bf16.msra.mxu0 %v2259_v32  ;;  %1226 = vmatpush1.bf16.msra.mxu1 %v2261_v33  ;;  %v409_v32 = vld [vmem:[%s2787_s14 + $0x2f8] sm:$0xff]  ;;  %v2323_v33 = vcombine.low %v396_v21, %v400_v22 }
  0x78   : > { %1184 = vmatprep.subr.bf16.mxu0 %v2268_v34  ;;  %1227 = vmatprep.subr.bf16.mxu1 %v2270_v35  ;;  %v2325_v34 = vcombine.low %v397_v23, %v401_v24  ;;  %v2332_v35 = vcombine.high %v404_v29, %v408_v30  ;;  %v2334_v36 = vcombine.high %v405_v31, %v409_v32  ;;  %v307_v23 = vld [vmem:[#allocation2 + $0x58] sm:$0xff] }
  0x7b   : > { %1185 = vmatpush1.bf16.msra.mxu0 %v2267_v40  ;;  %1228 = vmatpush1.bf16.msra.mxu1 %v2269_v59  ;;  %v417_v40 = vld [vmem:[%s2787_s14 + $0x338] sm:$0xff]  ;;  %v2331_v59 = vcombine.low %v404_v29, %v408_v30 }
  0x7c   : > { %1186 = vmatprep.subr.bf16.mxu0 %v2276_v41  ;;  %1229 = vmatprep.subr.bf16.mxu1 %v2278_v42  ;;  %v2333_v41 = vcombine.low %v405_v31, %v409_v32  ;;  %v2340_v42 = vcombine.high %v412_v37, %v416_v38  ;;  %v2342_v43 = vcombine.high %v413_v39, %v417_v40  ;;  %v300_v31 = vld [vmem:[#allocation2 + $0x20] sm:$0xff]  ;;  %v302_v32 = vld [vmem:[#allocation2 + $0x30] sm:$0xff] }
  0x7f   : > { %1187 = vmatpush1.bf16.msra.mxu0 %v2275_v47  ;;  %1230 = vmatpush1.bf16.msra.mxu1 %v2277_v48  ;;  %v425_v47 = vld [vmem:[%s2787_s14 + $0x378] sm:$0xff]  ;;  %v2339_v48 = vcombine.low %v412_v37, %v416_v38 }
  0x80   : > { %1188 = vmatprep.subr.bf16.mxu0 %v2284_v49  ;;  %1231 = vmatprep.subr.bf16.mxu1 %v2286_v50  ;;  %v2341_v49 = vcombine.low %v413_v39, %v417_v40  ;;  %v2348_v50 = vcombine.high %v420_v44, %v424_v45  ;;  %v2350_v51 = vcombine.high %v421_v46, %v425_v47  ;;  %v310_v40 = vld [vmem:[#allocation2 + $0x70] sm:$0xff] }
  0x83   : > { %1189 = vmatpush1.bf16.msra.mxu0 %v2283_v55  ;;  %1232 = vmatpush1.bf16.msra.mxu1 %v2285_v56  ;;  %v433_v55 = vld [vmem:[%s2787_s14 + $0x3b8] sm:$0xff]  ;;  %v2347_v56 = vcombine.low %v420_v44, %v424_v45 }
  0x84   : > { %1190 = vmatprep.subr.bf16.mxu0 %v2292_v57  ;;  %1233 = vmatprep.subr.bf16.mxu1 %v2294_v58  ;;  %v2349_v57 = vcombine.low %v421_v46, %v425_v47  ;;  %v2356_v58 = vcombine.high %v428_v52, %v432_v53  ;;  %v2358_v60 = vcombine.high %v429_v54, %v433_v55  ;;  %v311_v45 = vld [vmem:[#allocation2 + $0x78] sm:$0xff] }
  0x87   : > { %1191 = vmatpush1.bf16.msra.mxu0 %v2291_v0  ;;  %1234 = vmatpush1.bf16.msra.mxu1 %v2293_v1  ;;  %v441_v0 = vld [vmem:[%s2787_s14 + $0x3f8] sm:$0xff]  ;;  %v2355_v1 = vcombine.low %v428_v52, %v432_v53 }
  0x88   : > { %1192 = vmatprep.subr.bf16.mxu0 %v2300_v2  ;;  %1235 = vmatprep.subr.bf16.mxu1 %v2302_v3  ;;  %v2357_v2 = vcombine.low %v429_v54, %v433_v55  ;;  %v2364_v3 = vcombine.high %v436_v61, %v440_v62  ;;  %v2366_v4 = vcombine.high %v437_v63, %v441_v0  ;;  %v2569_v54 = vld [vmem:[%s3221_s3 + $0x40] sm:$0xff] (!%p2367_p10)   ;;  %v2575_v61 = vld [vmem:[%s3221_s3 + $0x8] sm:$0xff] (!%p2367_p10)  }
  0x89   : > { %v2365_v6 = vcombine.low %v437_v63, %v441_v0  ;;  %v2570_v55 = vld [vmem:[%s3221_s3 + $0xc0] sm:$0xff] (!%p2367_p10)   ;;  %v2576_v62 = vld [vmem:[%s3221_s3 + $0x88] sm:$0xff] (!%p2367_p10)   ;;  %v2577_v63 = vld [vmem:[%s3221_s3 + $0x50] sm:$0xff] (!%p2367_p10)  }
  0x8a   : > { %v2578_v0 = vld [vmem:[%s3221_s3 + $0xd0] sm:$0xff] (!%p2367_p10)  }
  0x8b   : > { %1193 = vmatpush1.bf16.msra.mxu0 %v2299_v8  ;;  %1236 = vmatpush1.bf16.msra.mxu1 %v2301_v9  ;;  %v298_v8 = vld [vmem:[#allocation2 + $0x10] sm:$0xff]  ;;  %v297_v9 = vld [vmem:[#allocation2 + $0x8] sm:$0xff] }
  0x8c   : > { %1194 = vmatprep.subr.bf16.mxu0 %v2308_v10  ;;  %1237 = vmatprep.subr.bf16.mxu1 %v2310_v11  ;;  %v299_v11 = vld [vmem:[#allocation2 + $0x18] sm:$0xff] }
  0x8f   : > { %1195 = vmatpush1.bf16.msra.mxu0 %v2307_v17  ;;  %1238 = vmatpush1.bf16.msra.mxu1 %v2309_v18  ;;  %v306_v17 = vld [vmem:[#allocation2 + $0x50] sm:$0xff]  ;;  %v305_v18 = vld [vmem:[#allocation2 + $0x48] sm:$0xff] }
  0x90   : > { %1196 = vmatprep.subr.bf16.mxu0 %v2316_v19  ;;  %1239 = vmatprep.subr.bf16.mxu1 %v2318_v20 }
  0x93   : > { %1197 = vmatpush1.bf16.msra.mxu0 %v2315_v25  ;;  %1240 = vmatpush1.bf16.msra.mxu1 %v2317_v26 }
  0x94   : > { %1198 = vmatprep.subr.bf16.mxu0 %v2324_v27  ;;  %1241 = vmatprep.subr.bf16.mxu1 %v2326_v28 }
  0x97   : > { %1199 = vmatpush1.bf16.msra.mxu0 %v2323_v33  ;;  %1242 = vmatpush1.bf16.msra.mxu1 %v2325_v34  ;;  %v301_v33 = vld [vmem:[#allocation2 + $0x28] sm:$0xff] }
  0x98   : > { %1200 = vmatprep.subr.bf16.mxu0 %v2332_v35  ;;  %1243 = vmatprep.subr.bf16.mxu1 %v2334_v36  ;;  %v303_v35 = vld [vmem:[#allocation2 + $0x38] sm:$0xff]  ;;  %v308_v36 = vld [vmem:[#allocation2 + $0x60] sm:$0xff] }
  0x9b   : > { %1201 = vmatpush1.bf16.msra.mxu0 %v2331_v59  ;;  %1244 = vmatpush1.bf16.msra.mxu1 %v2333_v41  ;;  %v309_v59 = vld [vmem:[#allocation2 + $0x68] sm:$0xff] }
  0x9c   : > { %1202 = vmatprep.subr.bf16.mxu0 %v2340_v42  ;;  %1245 = vmatprep.subr.bf16.mxu1 %v2342_v43 }
  0x9f   : > { %1203 = vmatpush1.bf16.msra.mxu0 %v2339_v48  ;;  %1246 = vmatpush1.bf16.msra.mxu1 %v2341_v49 }
  0xa0   : > { %1204 = vmatprep.subr.bf16.mxu0 %v2348_v50  ;;  %1247 = vmatprep.subr.bf16.mxu1 %v2350_v51 }
  0xa3   : > { %1205 = vmatpush1.bf16.msra.mxu0 %v2347_v56  ;;  %1248 = vmatpush1.bf16.msra.mxu1 %v2349_v57  ;;  %v2571_v56 = vld [vmem:[%s3221_s3] sm:$0xff] (!%p2367_p10)  }
  0xa4   : > { %1206 = vmatprep.subr.bf16.mxu0 %v2356_v58  ;;  %1249 = vmatprep.subr.bf16.mxu1 %v2358_v60  ;;  %v2572_v57 = vld [vmem:[%s3221_s3 + $0x80] sm:$0xff] (!%p2367_p10)   ;;  %v2573_v58 = vld [vmem:[%s3221_s3 + $0x48] sm:$0xff] (!%p2367_p10)  }
  0xa5   : > { %v2574_v60 = vld [vmem:[%s3221_s3 + $0xc8] sm:$0xff] (!%p2367_p10)  }
  0xa7   : > { %1207 = vmatpush1.bf16.msra.mxu0 %v2355_v1  ;;  %1250 = vmatpush1.bf16.msra.mxu1 %v2357_v2  ;;  %v2579_v1 = vld [vmem:[%s3221_s3 + $0x10] sm:$0xff] (!%p2367_p10)  }
  0xa8   : > { %1208 = vmatprep.subr.bf16.mxu0 %v2364_v3  ;;  %1251 = vmatprep.subr.bf16.mxu1 %v2366_v4  ;;  %v2580_v2 = vld [vmem:[%s3221_s3 + $0x90] sm:$0xff] (!%p2367_p10)   ;;  %v2581_v3 = vld [vmem:[%s3221_s3 + $0x58] sm:$0xff] (!%p2367_p10)  }
  0xa9   : > { %v2582_v4 = vld [vmem:[%s3221_s3 + $0xd8] sm:$0xff] (!%p2367_p10)  }
  0xab   : > { %1209 = vmatpush1.bf16.msra.mxu0 %v2363_v5  ;;  %1252 = vmatpush1.bf16.msra.mxu1 %v2365_v6  ;;  %v2583_v5 = vld [vmem:[%s3221_s3 + $0x18] sm:$0xff] (!%p2367_p10)  }
  0xac   : > { %2453 = vmatprep.subr.bf16.mxu0 (!%p2367_p10), %v2569_v54  ;;  %2475 = vmatprep.subr.bf16.mxu1 (!%p2367_p10), %v2570_v55  ;;  %v2584_v6 = vld [vmem:[%s3221_s3 + $0x98] sm:$0xff] (!%p2367_p10)  }
  0xae   : > { %1211 = vmatmul.mubr.bf16.vlgmr.msra.gmra.mrb[4].mxu0 %v2869_v13  ;;  %1254 = vmatmul.mubr.bf16.vlgmr.msra.gmra.mrb[4].mxu1 %v2869_v13 }
  0xaf   : > { %2454 = vmatpush3.bf16.msra.mxu0 (!%p2367_p10), %v2571_v56  ;;  %2476 = vmatpush3.bf16.msra.mxu1 (!%p2367_p10), %v2572_v57 }
  0xb0   : > { %2455 = vmatprep.subr.bf16.mxu0 (!%p2367_p10), %v2573_v58  ;;  %2477 = vmatprep.subr.bf16.mxu1 (!%p2367_p10), %v2574_v60 }
  0xb3   : > { %2456 = vmatpush3.bf16.msra.mxu0 (!%p2367_p10), %v2575_v61  ;;  %2478 = vmatpush3.bf16.msra.mxu1 (!%p2367_p10), %v2576_v62 }
  0xb4   : > { %2457 = vmatprep.subr.bf16.mxu0 (!%p2367_p10), %v2577_v63  ;;  %2479 = vmatprep.subr.bf16.mxu1 (!%p2367_p10), %v2578_v0 }
  0xb7   : > { %2458 = vmatpush3.bf16.msra.mxu0 (!%p2367_p10), %v2579_v1  ;;  %2480 = vmatpush3.bf16.msra.mxu1 (!%p2367_p10), %v2580_v2 }
  0xb8   : > { %2459 = vmatprep.subr.bf16.mxu0 (!%p2367_p10), %v2581_v3  ;;  %2481 = vmatprep.subr.bf16.mxu1 (!%p2367_p10), %v2582_v4 }
  0xbb   : > { %2460 = vmatpush3.bf16.msra.mxu0 (!%p2367_p10), %v2583_v5  ;;  %2482 = vmatpush3.bf16.msra.mxu1 (!%p2367_p10), %v2584_v6 }
 0x141   : > { %v1126_v10 = vpop.f32.mrb[0].mxu0  ;;  %v1169_v15 = vpop.f32.mrb[0].mxu1 }
 0x142   : > { %v1264_v14 = vadd.f32 %v1126_v10, %v296_v7  ;;  %v1128_v16 = vpop.f32.mrb[1].mxu0  ;;  %v1266_v19 = vadd.f32 %v1169_v15, %v298_v8  ;;  %v1171_v21 = vpop.f32.mrb[1].mxu1  ;;  %v2585_v7 = vld [vmem:[%s3221_s3 + $0x60] sm:$0xff] (!%p2367_p10)   ;;  %v2591_v15 = vld [vmem:[%s3221_s3 + $0x28] sm:$0xff] (!%p2367_p10)  }
 0x143   : > { %v1265_v20 = vadd.f32 %v1128_v16, %v297_v9  ;;  %v1130_v22 = vpop.f32.mrb[2].mxu0  ;;  %v1267_v24 = vadd.f32 %v1171_v21, %v299_v11  ;;  %v1173_v13 = vpop.f32.mrb[2].mxu1  ;;  %v2586_v8 = vld [vmem:[%s3221_s3 + $0xe0] sm:$0xff] (!%p2367_p10)   ;;  %2461 = vmatprep.subr.bf16.mxu0 (!%p2367_p10), %v2585_v7  ;;  %v1318_v11 = vlaneseq (!%p2367_p10)  ;;  %v2592_v16 = vld [vmem:[%s3221_s3 + $0xa8] sm:$0xff] (!%p2367_p10)   ;;  %v2596_v21 = vld [vmem:[%s3221_s3 + $0xb0] sm:$0xff] (!%p2367_p10)  }
 0x144   : > { %1280 = vst [vmem:[#allocation2] sm:$0xff] %v1264_v14  ;;  %v1272_v25 = vadd.f32 %v1130_v22, %v304_v12  ;;  %v1132_v26 = vpop.f32.mrb[3].mxu0  ;;  %1282 = vst [vmem:[#allocation2 + $0x10] sm:$0xff] %v1266_v19  ;;  %v1274_v27 = vadd.f32 %v1173_v13, %v306_v17  ;;  %v1175_v29 = vpop.f32.mrb[3].mxu1  ;;  %v2587_v9 = vld [vmem:[%s3221_s3 + $0x20] sm:$0xff] (!%p2367_p10)   ;;  %2483 = vmatprep.subr.bf16.mxu1 (!%p2367_p10), %v2586_v8  ;;  %v2589_v12 = vld [vmem:[%s3221_s3 + $0x68] sm:$0xff] (!%p2367_p10)  }
 0x145   : > { %1281 = vst [vmem:[#allocation2 + $0x8] sm:$0xff] %v1265_v20  ;;  %v1273_v28 = vadd.f32 %v1132_v26, %v305_v18  ;;  %1283 = vst [vmem:[#allocation2 + $0x18] sm:$0xff] %v1267_v24  ;;  %v1275_v30 = vadd.f32 %v1175_v29, %v307_v23  ;;  %v2588_v10 = vld [vmem:[%s3221_s3 + $0xa0] sm:$0xff] (!%p2367_p10)   ;;  %2462 = vmatpush3.bf16.msra.mxu0 (!%p2367_p10), %v2587_v9  ;;  %v2590_v14 = vld [vmem:[%s3221_s3 + $0xe8] sm:$0xff] (!%p2367_p10)   ;;  %v3008_v17 = vshrl.u32 (!%p2367_p10), %v1318_v11, 7 }
 0x146   : > { %1288 = vst [vmem:[#allocation2 + $0x40] sm:$0xff] %v1272_v25  ;;  %1290 = vst [vmem:[#allocation2 + $0x50] sm:$0xff] %v1274_v27  ;;  %2484 = vmatpush3.bf16.msra.mxu1 (!%p2367_p10), %v2588_v10  ;;  %2463 = vmatprep.subr.bf16.mxu0 (!%p2367_p10), %v2589_v12  ;;  %v2593_v18 = vld [vmem:[%s3221_s3 + $0x70] sm:$0xff] (!%p2367_p10)   ;;  %v2597_v23 = vld [vmem:[%s3221_s3 + $0x78] sm:$0xff] (!%p2367_p10)  }
 0x147   : > { %1289 = vst [vmem:[#allocation2 + $0x48] sm:$0xff] %v1273_v28  ;;  %1291 = vst [vmem:[#allocation2 + $0x58] sm:$0xff] %v1275_v30  ;;  %2485 = vmatprep.subr.bf16.mxu1 (!%p2367_p10), %v2590_v14  ;;  %v2594_v19 = vld [vmem:[%s3221_s3 + $0xf0] sm:$0xff] (!%p2367_p10)   ;;  %v1324_v22 = vsub.s32 (!%p2367_p10), 1, %v3008_v17  ;;  %v1332_v24 = vsub.s32 (!%p2367_p10), 3, %v3008_v17  ;;  %v2598_v25 = vld [vmem:[%s3221_s3 + $0xf8] sm:$0xff] (!%p2367_p10)  }
 0x148   : > { %v2595_v20 = vld [vmem:[%s3221_s3 + $0x30] sm:$0xff] (!%p2367_p10)   ;;  %v1320_v13 = vsub.s32 (!%p2367_p10), 0, %v3008_v17  ;;  %v2599_v26 = vld [vmem:[%s3221_s3 + $0x38] sm:$0xff] (!%p2367_p10)   ;;  %v1328_v27 = vsub.s32 (!%p2367_p10), 2, %v3008_v17  ;;  %v1340_v14 = vsub.s32 (!%p2367_p10), 5, %v3008_v17 }
 0x149   : > { %2464 = vmatpush3.bf16.msra.mxu0 (!%p2367_p10), %v2591_v15  ;;  %v2600_v28 = vld [vmem:[%s3221_s3 + $0xb8] sm:$0xff] (!%p2367_p10)  }
 0x14a   : > { %2486 = vmatpush3.bf16.msra.mxu1 (!%p2367_p10), %v2592_v16  ;;  %2465 = vmatprep.subr.bf16.mxu0 (!%p2367_p10), %v2593_v18  ;;  %v1348_v18 = vsub.s32 (!%p2367_p10), 7, %v3008_v17 }
 0x14b   : > { %2487 = vmatprep.subr.bf16.mxu1 (!%p2367_p10), %v2594_v19  ;;  %v1336_v19 = vsub.s32 (!%p2367_p10), 4, %v3008_v17 }
 0x14c   : > { %v1301_v29 = vld [vmem:[#allocation2 + $0x8] sm:$0xff] (!%p2367_p10) }
 0x14d   : > { %2466 = vmatpush3.bf16.msra.mxu0 (!%p2367_p10), %v2595_v20 }
 0x14e   : > { %2488 = vmatpush3.bf16.msra.mxu1 (!%p2367_p10), %v2596_v21  ;;  %2467 = vmatprep.subr.bf16.mxu0 (!%p2367_p10), %v2597_v23  ;;  %v1309_v30 = vld [vmem:[#allocation2 + $0x48] sm:$0xff] (!%p2367_p10) }
 0x14f   : > { %2489 = vmatprep.subr.bf16.mxu1 (!%p2367_p10), %v2598_v25 }
 0x151   : > { %2468 = vmatpush3.bf16.msra.mxu0 (!%p2367_p10), %v2599_v26 }
 0x152   : > { %2490 = vmatpush3.bf16.msra.mxu1 (!%p2367_p10), %v2600_v28 }
 0x181   : > { %v1212_v34 = vpop.f32.mrb[4].mxu0  ;;  %v1255_v38 = vpop.f32.mrb[4].mxu1  ;;  %1299 = sbr.rel (%p2367_p10) target bundleno = 681 (0x2a9), region = 86 }
 0x182   : > { %v1268_v37 = vadd.f32 %v1212_v34, %v300_v31  ;;  %v1214_v39 = vpop.f32.mrb[5].mxu0  ;;  %v1270_v41 = vadd.f32 %v1255_v38, %v302_v32  ;;  %v1257_v43 = vpop.f32.mrb[5].mxu1  ;;  %v3041_v31 = vld [vmem:[%s3220_s2] sm:$0xff] (!%p2367_p10)  ;;  %v1311_v34 = vld [vmem:[#allocation2 + $0x58] sm:$0xff] (!%p2367_p10) }
 0x183   : > { %v1269_v42 = vadd.f32 %v1214_v39, %v301_v33  ;;  %v1216_v44 = vpop.f32.mrb[6].mxu0  ;;  %v1271_v46 = vadd.f32 %v1257_v43, %v303_v35  ;;  %v1259_v48 = vpop.f32.mrb[6].mxu1  ;;  %v1325_v32 = vrot.slane (!%p2367_p10), %v3041_v31, %v1324_v22  ;;  %v1303_v33 = vld [vmem:[#allocation2 + $0x18] sm:$0xff] (!%p2367_p10)  ;;  %v1333_v35 = vrot.slane (!%p2367_p10), %v3041_v31, %v1332_v24  ;;  %v1300_v43 = vld [vmem:[#allocation2] sm:$0xff] (!%p2367_p10) }
 0x184   : > { %1284 = vst [vmem:[#allocation2 + $0x20] sm:$0xff] %v1268_v37  ;;  %v1276_v47 = vadd.f32 %v1216_v44, %v308_v36  ;;  %v1218_v49 = vpop.f32.mrb[7].mxu0  ;;  %1286 = vst [vmem:[#allocation2 + $0x30] sm:$0xff] %v1270_v41  ;;  %v1278_v50 = vadd.f32 %v1259_v48, %v310_v40  ;;  %v1261_v52 = vpop.f32.mrb[7].mxu1  ;;  %v1321_v36 = vrot.slane (!%p2367_p10), %v3041_v31, %v1320_v13  ;;  %v2601_v37 = vld [vmem:[%s3221_s3 + $0x140] sm:$0xff] (!%p2367_p10)   ;;  %v1344_v24 = vsub.s32 (!%p2367_p10), 6, %v3008_v17 }
 0x185   : > { %1285 = vst [vmem:[#allocation2 + $0x28] sm:$0xff] %v1269_v42  ;;  %v1277_v51 = vadd.f32 %v1218_v49, %v309_v59  ;;  %1287 = vst [vmem:[#allocation2 + $0x38] sm:$0xff] %v1271_v46  ;;  %v1279_v53 = vadd.f32 %v1261_v52, %v311_v45  ;;  %v1329_v38 = vrot.slane (!%p2367_p10), %v3041_v31, %v1328_v27  ;;  %v2602_v42 = vld [vmem:[%s3221_s3 + $0x1c0] sm:$0xff] (!%p2367_p10)   ;;  %2497 = vmatprep.subr.bf16.mxu0 (!%p2367_p10), %v2601_v37  ;;  %v1302_v46 = vld [vmem:[#allocation2 + $0x10] sm:$0xff] (!%p2367_p10) }
 0x186   : > { %1292 = vst [vmem:[#allocation2 + $0x60] sm:$0xff] %v1276_v47  ;;  %1294 = vst [vmem:[#allocation2 + $0x70] sm:$0xff] %v1278_v50  ;;  %v1359_v39 = vadd.f32 (!%p2367_p10), %v1325_v32, %v1301_v29  ;;  %v1367_v40 = vadd.f32 (!%p2367_p10), %v1325_v32, %v1309_v30  ;;  %v1361_v59 = vadd.f32 (!%p2367_p10), %v1333_v35, %v1303_v33  ;;  %v1308_v44 = vld [vmem:[#allocation2 + $0x40] sm:$0xff] (!%p2367_p10)  ;;  %v1310_v47 = vld [vmem:[#allocation2 + $0x50] sm:$0xff] (!%p2367_p10)  ;;  %2519 = vmatprep.subr.bf16.mxu1 (!%p2367_p10), %v2602_v42 }
 0x187   : > { %1293 = vst [vmem:[#allocation2 + $0x68] sm:$0xff] %v1277_v51  ;;  %1295 = vst [vmem:[#allocation2 + $0x78] sm:$0xff] %v1279_v53  ;;  %v3050_v41 = vadd.f32 (!%p2367_p10), %v1333_v35, %v1311_v34  ;;  %v3055_v45 = vadd.f32 (!%p2367_p10), %v1321_v36, %v1300_v43  ;;  %v1366_v51 = vadd.f32 (!%p2367_p10), %v1321_v36, %v1308_v44  ;;  %v2603_v17 = vld [vmem:[%s3221_s3 + $0x100] sm:$0xff] (!%p2367_p10)  }
 0x188   : > { %v2369_v48 = vmul.f32 -1.442695, %v1359_v39  ;;  %v2377_v49 = vmul.f32 -1.442695, %v1367_v40  ;;  %v2371_v50 = vmul.f32 -1.442695, %v1361_v59  ;;  %v3058_v53 = vadd.f32 %v1329_v38, %v1302_v46 }
 0x189   : > { %v2379_v52 = vmul.f32 -1.442695, %v3050_v41  ;;  %v3060_v54 = vadd.f32 %v1329_v38, %v1310_v47  ;;  %v2368_v55 = vmul.f32 -1.442695, %v3055_v45  ;;  %v2376_v56 = vmul.f32 -1.442695, %v1366_v51 }
 0x18a   : > { %2633 = vpow2.f32 %v2369_v48  ;;  %v2370_v57 = vmul.f32 -1.442695, %v3058_v53  ;;  %v1341_v27 = vrot.slane %v3041_v31, %v1340_v14  ;;  %v1349_v30 = vrot.slane %v3041_v31, %v1348_v18  ;;  %v2604_v38 = vld [vmem:[%s3221_s3 + $0x180] sm:$0xff]  }
 0x18b   : > { %2635 = vpow2.f32 %v2377_v49  ;;  %v2378_v58 = vmul.f32 -1.442695, %v3060_v54  ;;  %v1337_v32 = vrot.slane %v3041_v31, %v1336_v19  ;;  %v1304_v48 = vld [vmem:[#allocation2 + $0x20] sm:$0xff] }
 0x18c   : > { %2637 = vpow2.f32 %v2371_v50  ;;  %v1307_v46 = vld [vmem:[#allocation2 + $0x38] sm:$0xff]  ;;  %v2617_v14 = vld [vmem:[%s3221_s3 + $0x160] sm:$0xff]  }
 0x18d   : > { %2639 = vpow2.f32 %v2379_v52  ;;  %v3090_v49 = vadd.f32 %v1349_v30, %v1307_v46  ;;  %v3094_v52 = vadd.f32 %v1337_v32, %v1304_v48  ;;  %v2618_v18 = vld [vmem:[%s3221_s3 + $0x1e0] sm:$0xff]  }
 0x18e   : > { %2641 = vpow2.f32 %v2368_v55  ;;  %v1315_v47 = vld [vmem:[#allocation2 + $0x78] sm:$0xff] }
 0x18f   : > { %2643 = vpow2.f32 %v2376_v56  ;;  %v3092_v50 = vadd.f32 %v1349_v30, %v1315_v47  ;;  %v2631_v47 = vld [vmem:[%s3221_s3 + $0x138] sm:$0xff]  }
 0x190   : > { %2645 = vpow2.f32 %v2370_v57 }
 0x191   : > { %2647 = vpow2.f32 %v2378_v58 }
 0x194   : > { %v2634_v60 = vpop.eup %2633 }
 0x195   : > { %v2636_v61 = vpop.eup %2635  ;;  %v1423_v62 = vadd.f32 1.0, %v2634_v60  ;;  %v2607_v60 = vld [vmem:[%s3221_s3 + $0x108] sm:$0xff]  }
 0x196   : > { %v2638_v63 = vpop.eup %2637  ;;  %v1431_v0 = vadd.f32 1.0, %v2636_v61  ;;  %v2375_v61 = vmul.f32 -1.442695, %v3090_v49 }
 0x197   : > { %v2640_v1 = vpop.eup %2639  ;;  %2649 = vrcp.f32 %v1423_v62  ;;  %v1425_v2 = vadd.f32 1.0, %v2638_v63  ;;  %v2383_v62 = vmul.f32 -1.442695, %v3092_v50 }
 0x198   : > { %v2642_v3 = vpop.eup %2641  ;;  %2651 = vrcp.f32 %v1431_v0  ;;  %v1433_v4 = vadd.f32 1.0, %v2640_v1  ;;  %v2609_v0 = vld [vmem:[%s3221_s3 + $0x150] sm:$0xff]   ;;  %v2372_v1 = vmul.f32 -1.442695, %v3094_v52 }
 0x199   : > { %v2644_v5 = vpop.eup %2643  ;;  %2653 = vrcp.f32 %v1425_v2  ;;  %v1422_v6 = vadd.f32 1.0, %v2642_v3  ;;  %v2608_v3 = vld [vmem:[%s3221_s3 + $0x188] sm:$0xff]  }
 0x19a   : > { %v2646_v7 = vpop.eup %2645  ;;  %2655 = vrcp.f32 %v1433_v4  ;;  %v1430_v8 = vadd.f32 1.0, %v2644_v5  ;;  %v2610_v5 = vld [vmem:[%s3221_s3 + $0x1d0] sm:$0xff]  }
 0x19b   : > { %v2648_v9 = vpop.eup %2647  ;;  %2657 = vrcp.f32 %v1422_v6  ;;  %v1424_v10 = vadd.f32 1.0, %v2646_v7  ;;  %v2611_v7 = vld [vmem:[%s3221_s3 + $0x110] sm:$0xff]  }
 0x19c   : > { %2659 = vrcp.f32 %v1430_v8  ;;  %v1432_v11 = vadd.f32 1.0, %v2648_v9  ;;  %v2613_v9 = vld [vmem:[%s3221_s3 + $0x158] sm:$0xff]  }
 0x19d   : > { %2661 = vrcp.f32 %v1424_v10  ;;  %v2612_v10 = vld [vmem:[%s3221_s3 + $0x190] sm:$0xff]  }
 0x19e   : > { %2663 = vrcp.f32 %v1432_v11  ;;  %v2614_v11 = vld [vmem:[%s3221_s3 + $0x1d8] sm:$0xff]  }
 0x1a1   : > { %v2650_v12 = vpop.eup %2649 }
 0x1a2   : > { %v2652_v15 = vpop.eup %2651  ;;  %v1471_v16 = vmul.f32 %v2650_v12, %v1359_v39  ;;  %v2605_v39 = vld [vmem:[%s3221_s3 + $0x148] sm:$0xff]   ;;  %v2615_v12 = vld [vmem:[%s3221_s3 + $0x118] sm:$0xff]  }
 0x1a3   : > { %v2654_v20 = vpop.eup %2653  ;;  %v1479_v21 = vmul.f32 %v2652_v15, %v1367_v40  ;;  %v1305_v40 = vld [vmem:[#allocation2 + $0x28] sm:$0xff]  ;;  %v2616_v15 = vld [vmem:[%s3221_s3 + $0x198] sm:$0xff]  }
 0x1a4   : > { %v2656_v22 = vpop.eup %2655  ;;  %v1473_v23 = vmul.f32 %v2654_v20, %v1361_v59  ;;  %v1313_v59 = vld [vmem:[#allocation2 + $0x68] sm:$0xff]  ;;  %v3086_v44 = vadd.f32 %v1341_v27, %v1305_v40  ;;  %v2619_v20 = vld [vmem:[%s3221_s3 + $0x120] sm:$0xff]  }
 0x1a5   : > { %v2658_v25 = vpop.eup %2657  ;;  %v1487_v13 = vpack.c.bf16 %v1479_v21, %v1471_v16  ;;  %v1481_v26 = vmul.f32 %v2656_v22, %v3050_v41  ;;  %v1345_v41 = vrot.slane %v3041_v31, %v1344_v24  ;;  %v1314_v31 = vld [vmem:[#allocation2 + $0x70] sm:$0xff] }
 0x1a6   : > { %v2660_v28 = vpop.eup %2659  ;;  %v1470_v29 = vmul.f32 %v2658_v25, %v3055_v45  ;;  %v3088_v45 = vadd.f32 %v1341_v27, %v1313_v59  ;;  %v2373_v56 = vmul.f32 -1.442695, %v3086_v44  ;;  %v2627_v59 = vld [vmem:[%s3221_s3 + $0x130] sm:$0xff]  }
 0x1a7   : > { %v2662_v33 = vpop.eup %2661  ;;  %2045 = vmatprep.mubr.bf16.mxu0 %v1487_v13  ;;  %v1489_v34 = vpack.c.bf16 %v1481_v26, %v1473_v23  ;;  %v1478_v35 = vmul.f32 %v2660_v28, %v1366_v51  ;;  %v1312_v51 = vld [vmem:[#allocation2 + $0x60] sm:$0xff]  ;;  %v3114_v2 = vadd.f32 %v1345_v41, %v1314_v31  ;;  %v2621_v23 = vld [vmem:[%s3221_s3 + $0x168] sm:$0xff]   ;;  %v2632_v31 = vld [vmem:[%s3221_s3 + $0x1b8] sm:$0xff]  }
 0x1a8   : > { %v2664_v36 = vpop.eup %2663  ;;  %v1472_v37 = vmul.f32 %v2662_v33, %v3058_v53  ;;  %v1306_v53 = vld [vmem:[#allocation2 + $0x30] sm:$0xff]  ;;  %v2381_v57 = vmul.f32 -1.442695, %v3088_v45  ;;  %v3101_v58 = vadd.f32 %v1337_v32, %v1312_v51  ;;  %2665 = vpow2.f32 %v2373_v56  ;;  %v2620_v13 = vld [vmem:[%s3221_s3 + $0x1a0] sm:$0xff]   ;;  %v2622_v28 = vld [vmem:[%s3221_s3 + $0x1e8] sm:$0xff]  }
 0x1a9   : > { %2086 = vmatprep.mubr.bf16.mxu1 %v1489_v34  ;;  %v1486_v42 = vpack.c.bf16 %v1478_v35, %v1470_v29  ;;  %v1480_v43 = vmul.f32 %v2664_v36, %v3060_v54  ;;  %v2606_v54 = vld [vmem:[%s3221_s3 + $0x1c8] sm:$0xff]   ;;  %v3108_v63 = vadd.f32 %v1345_v41, %v1306_v53  ;;  %v2382_v8 = vmul.f32 -1.442695, %v3114_v2  ;;  %v2625_v35 = vld [vmem:[%s3221_s3 + $0x170] sm:$0xff]   ;;  %v2629_v41 = vld [vmem:[%s3221_s3 + $0x178] sm:$0xff]  }
 0x1aa   : > { %2667 = vpow2.f32 %v2381_v57  ;;  %v2380_v4 = vmul.f32 -1.442695, %v3101_v58  ;;  %v2623_v32 = vld [vmem:[%s3221_s3 + $0x128] sm:$0xff]  }
 0x1ab   : > { %2046 = vmatmul.mubr.bf16.vlgmr.msra.gmra.mrb[0].mxu0 %v1486_v42  ;;  %v1488_v55 = vpack.c.bf16 %v1480_v43, %v1472_v37  ;;  %2669 = vpow2.f32 %v2375_v61  ;;  %v2374_v6 = vmul.f32 -1.442695, %v3108_v63  ;;  %v2624_v37 = vld [vmem:[%s3221_s3 + $0x1a8] sm:$0xff]   ;;  %v2628_v42 = vld [vmem:[%s3221_s3 + $0x1b0] sm:$0xff]   ;;  %v2630_v43 = vld [vmem:[%s3221_s3 + $0x1f8] sm:$0xff]  }
 0x1ac   : > { %2498 = vmatpush3.bf16.msra.mxu0 %v2603_v17  ;;  %2671 = vpow2.f32 %v2383_v62 }
 0x1ad   : > { %2087 = vmatmul.mubr.bf16.vlgmr.msra.gmra.mrb[0].mxu1 %v1488_v55  ;;  %2499 = vmatprep.subr.bf16.mxu0 %v2605_v39  ;;  %2673 = vpow2.f32 %v2372_v1  ;;  %v2626_v39 = vld [vmem:[%s3221_s3 + $0x1f0] sm:$0xff]  }
 0x1ae   : > { %2520 = vmatpush3.bf16.msra.mxu1 %v2604_v38  ;;  %2675 = vpow2.f32 %v2380_v4 }
 0x1af   : > { %2521 = vmatprep.subr.bf16.mxu1 %v2606_v54  ;;  %2677 = vpow2.f32 %v2374_v6 }
 0x1b0   : > { %2500 = vmatpush3.bf16.msra.mxu0 %v2607_v60  ;;  %2679 = vpow2.f32 %v2382_v8 }
 0x1b1   : > { %2501 = vmatprep.subr.bf16.mxu0 %v2609_v0 }
 0x1b2   : > { %2522 = vmatpush3.bf16.msra.mxu1 %v2608_v3  ;;  %v2666_v16 = vpop.eup %2665 }
 0x1b3   : > { %2523 = vmatprep.subr.bf16.mxu1 %v2610_v5  ;;  %v1427_v21 = vadd.f32 1.0, %v2666_v16 }
 0x1b4   : > { %2502 = vmatpush3.bf16.msra.mxu0 %v2611_v7  ;;  %v2668_v19 = vpop.eup %2667 }
 0x1b5   : > { %2503 = vmatprep.subr.bf16.mxu0 %v2613_v9  ;;  %v2670_v22 = vpop.eup %2669  ;;  %v1435_v24 = vadd.f32 1.0, %v2668_v19  ;;  %2681 = vrcp.f32 %v1427_v21 }
 0x1b6   : > { %2524 = vmatpush3.bf16.msra.mxu1 %v2612_v10  ;;  %v2672_v25 = vpop.eup %2671  ;;  %v1429_v26 = vadd.f32 1.0, %v2670_v22 }
 0x1b7   : > { %2525 = vmatprep.subr.bf16.mxu1 %v2614_v11  ;;  %v2674_v27 = vpop.eup %2673  ;;  %2683 = vrcp.f32 %v1435_v24  ;;  %v1437_v29 = vadd.f32 1.0, %v2672_v25 }
 0x1b8   : > { %2504 = vmatpush3.bf16.msra.mxu0 %v2615_v12  ;;  %v2676_v30 = vpop.eup %2675  ;;  %2685 = vrcp.f32 %v1429_v26  ;;  %v1426_v33 = vadd.f32 1.0, %v2674_v27 }
 0x1b9   : > { %2505 = vmatprep.subr.bf16.mxu0 %v2617_v14  ;;  %v2678_v34 = vpop.eup %2677  ;;  %2687 = vrcp.f32 %v1437_v29  ;;  %v1434_v17 = vadd.f32 1.0, %v2676_v30 }
 0x1ba   : > { %2526 = vmatpush3.bf16.msra.mxu1 %v2616_v15  ;;  %v2680_v36 = vpop.eup %2679  ;;  %2689 = vrcp.f32 %v1426_v33  ;;  %v1428_v38 = vadd.f32 1.0, %v2678_v34 }
 0x1bb   : > { %2527 = vmatprep.subr.bf16.mxu1 %v2618_v18  ;;  %2691 = vrcp.f32 %v1434_v17  ;;  %v1436_v40 = vadd.f32 1.0, %v2680_v36 }
 0x1bc   : > { %2506 = vmatpush3.bf16.msra.mxu0 %v2619_v20  ;;  %2693 = vrcp.f32 %v1428_v38 }
 0x1bd   : > { %2507 = vmatprep.subr.bf16.mxu0 %v2621_v23  ;;  %2695 = vrcp.f32 %v1436_v40 }
 0x1be   : > { %2528 = vmatpush3.bf16.msra.mxu1 %v2620_v13 }
 0x1bf   : > { %2529 = vmatprep.subr.bf16.mxu1 %v2622_v28  ;;  %v2682_v46 = vpop.eup %2681 }
 0x1c0   : > { %2508 = vmatpush3.bf16.msra.mxu0 %v2623_v32  ;;  %v1475_v51 = vmul.f32 %v2682_v46, %v3086_v44 }
 0x1c1   : > { %2509 = vmatprep.subr.bf16.mxu0 %v2625_v35  ;;  %v2684_v48 = vpop.eup %2683 }
 0x1c2   : > { %2530 = vmatpush3.bf16.msra.mxu1 %v2624_v37  ;;  %v2686_v53 = vpop.eup %2685  ;;  %v1483_v55 = vmul.f32 %v2684_v48, %v3088_v45 }
 0x1c3   : > { %2531 = vmatprep.subr.bf16.mxu1 %v2626_v39  ;;  %v2688_v54 = vpop.eup %2687  ;;  %v1477_v56 = vmul.f32 %v2686_v53, %v3090_v49 }
 0x1c4   : > { %2510 = vmatpush3.bf16.msra.mxu0 %v2627_v59  ;;  %v2690_v57 = vpop.eup %2689  ;;  %v1491_v60 = vpack.c.bf16 %v1483_v55, %v1475_v51  ;;  %v1485_v61 = vmul.f32 %v2688_v54, %v3092_v50 }
 0x1c5   : > { %2511 = vmatprep.subr.bf16.mxu0 %v2629_v41  ;;  %v2692_v62 = vpop.eup %2691  ;;  %v1474_v44 = vmul.f32 %v2690_v57, %v3094_v52  ;;  %v2384_v52 = vld [vmem:[%s3222_s4] ss:$0 sm:$0xff] }
 0x1c6   : > { %2532 = vmatpush3.bf16.msra.mxu1 %v2628_v42  ;;  %v2694_v0 = vpop.eup %2693  ;;  %2127 = vmatprep.mubr.bf16.mxu0 %v1491_v60  ;;  %v1493_v1 = vpack.c.bf16 %v1485_v61, %v1477_v56  ;;  %v1482_v3 = vmul.f32 %v2692_v62, %v3101_v58 }
 0x1c7   : > { %2533 = vmatprep.subr.bf16.mxu1 %v2630_v43  ;;  %v2696_v4 = vpop.eup %2695  ;;  %v1476_v45 = vmul.f32 %v2694_v0, %v3108_v63 }
 0x1c8   : > { %2512 = vmatpush3.bf16.msra.mxu0 %v2631_v47  ;;  %2168 = vmatprep.mubr.bf16.mxu1 %v1493_v1  ;;  %v1490_v5 = vpack.c.bf16 %v1482_v3, %v1474_v44  ;;  %v1484_v49 = vmul.f32 %v2696_v4, %v3114_v2 }
 0x1ca   : > { %2534 = vmatpush3.bf16.msra.mxu1 %v2632_v31  ;;  %v1492_v6 = vpack.c.bf16 %v1484_v49, %v1476_v45 }
 0x1cb   : > { %2128 = vmatmul.mubr.bf16.vlgmr.msra.gmra.mrb[4].mxu0 %v1490_v5 }
 0x1cd   : > { %2169 = vmatmul.mubr.bf16.vlgmr.msra.gmra.mrb[4].mxu1 %v1492_v6 }
 0x27e   : > { %v2469_v50 = vpop.f32.mrb[0].mxu0 }
 0x27f   : > { %v2470_v7 = vpop.f32.mrb[1].mxu0 }
 0x280   : > { %v2491_v8 = vpop.f32.mrb[0].mxu1  ;;  %v2471_v9 = vadd.f32 %v2470_v7, %v2469_v50  ;;  %v2472_v10 = vpop.f32.mrb[2].mxu0 }
 0x281   : > { %v2492_v58 = vpop.f32.mrb[1].mxu1  ;;  %v2473_v11 = vpop.f32.mrb[3].mxu0 }
 0x282   : > { %v2048_v12 = vadd.f32 %v2471_v9, %v2384_v52  ;;  %v2493_v63 = vadd.f32 %v2492_v58, %v2491_v8  ;;  %v2494_v14 = vpop.f32.mrb[2].mxu1  ;;  %v2474_v15 = vadd.f32 %v2473_v11, %v2472_v10 }
 0x283   : > { %v2495_v16 = vpop.f32.mrb[3].mxu1 }
 0x284   : > { %v2089_v2 = vadd.f32 %v2493_v63, %v2048_v12  ;;  %v2051_v18 = vadd.f32 %v2474_v15, %v2384_v52  ;;  %v2496_v19 = vadd.f32 %v2495_v16, %v2494_v14 }
 0x286   : > { %v2092_v20 = vadd.f32 %v2496_v19, %v2051_v18 }
 0x29e   : > { %v2513_v21 = vpop.f32.mrb[4].mxu0 }
 0x29f   : > { %v2514_v22 = vpop.f32.mrb[5].mxu0 }
 0x2a0   : > { %v2535_v23 = vpop.f32.mrb[4].mxu1  ;;  %v2515_v24 = vadd.f32 %v2514_v22, %v2513_v21  ;;  %v2516_v25 = vpop.f32.mrb[6].mxu0 }
 0x2a1   : > { %v2536_v13 = vpop.f32.mrb[5].mxu1  ;;  %v2517_v26 = vpop.f32.mrb[7].mxu0 }
 0x2a2   : > { %v2130_v27 = vadd.f32 %v2515_v24, %v2089_v2  ;;  %v2537_v28 = vadd.f32 %v2536_v13, %v2535_v23  ;;  %v2538_v29 = vpop.f32.mrb[6].mxu1  ;;  %v2518_v30 = vadd.f32 %v2517_v26, %v2516_v25 }
 0x2a3   : > { %v2539_v32 = vpop.f32.mrb[7].mxu1 }
 0x2a4   : > { %v2171_v33 = vadd.f32 %v2537_v28, %v2130_v27  ;;  %v2133_v34 = vadd.f32 %v2518_v30, %v2092_v20  ;;  %v2540_v35 = vadd.f32 %v2539_v32, %v2538_v29 }
 0x2a6   : > { %2177 = vst [vmem:[%s3223_s5] sm:$0xff] %v2171_v33  ;;  %v2174_v17 = vadd.f32 %v2540_v35, %v2133_v34 }
 0x2a8   : > { %2178 = vst [vmem:[%s3223_s5 + $0x8] sm:$0xff] %v2174_v17 }
 0x2a9 PF: > { %p12_p11 = scmp.ge.s32.totalorder %s2767_s22, 27   ;;  %s3224_s18 = smov %s2715_s19 }
 0x2aa   : > { %s3225_s19 = smov %s2774_s25  ;;  %s3226_s20 = smov %s2767_s22 }
 0x2ab   :  { %14 = sbr.rel (!%p12_p11) target bundleno = 2 (0x2), region = 120 }

</bundles_post_ra>
